<compile_context>
chip_gen: v7x
topology: tpu7x:2x2x1
jax: 0.10.0
libtpu: 0.0.40
codegen_flags: <defaults>
</compile_context>

<pallas_src>
import functools

import jax
import jax.numpy as jnp
from jax.experimental import pallas as pl
from jax.experimental.pallas import tpu as pltpu


def rnn_fwd_kernel(x_ref, w_ih0_ref, b0_ref,
                   w_a_ref, w_hh1_ref, b1_ref, bhn0_ref, bhn1_ref,
                   se_w1_ref, se_b1_ref, se_w2_ref, se_b2_ref,
                   fc1_w_ref, fc1_b_ref, fc2_w_ref, fc2_b_ref,
                   out_ref, *, B, T, G):
    f32 = jnp.float32
    G3 = 3 * G

    # ---------------- one-time work, off the recurrent chain ----------------
    # Layer-0 input projection over the whole sequence as ONE batched matmul
    # (b_ih0 + b_hh0[r,z] already folded into b0).
    gi0_all = jnp.dot(x_ref[...], w_ih0_ref[...],
                      preferred_element_type=f32) + b0_ref[...]        # (T*B, 3G)
    w_a = w_a_ref[...]        # (G, 6G) = [w_hh0 | w_ih1]: both consumers of h0
    w_hh1 = w_hh1_ref[...]    # (G, 3G)
    # Hoisted broadcasts (JAX does not CSE broadcast_in_dim inside the unrolled loop).
    b1_b = jnp.broadcast_to(b1_ref[...], (B, G3))
    bhn0_b = jnp.broadcast_to(bhn0_ref[...], (B, G))
    bhn1_b = jnp.broadcast_to(bhn1_ref[...], (B, G))

    def cell(gi, gh, b_hn, h_prev):
        # PyTorch GRU gate order r, z, n; every slice is a 128-lane aligned block.
        r = jax.nn.sigmoid(gi[:, 0:G] + gh[:, 0:G])
        z = jax.nn.sigmoid(gi[:, G:2 * G] + gh[:, G:2 * G])
        n = jnp.tanh(gi[:, 2 * G:G3] + r * (gh[:, 2 * G:G3] + b_hn))
        return (1.0 - z) * n + z * h_prev

    # --------- skewed two-layer recurrence: T+1 super-steps instead of 2T ---------
    # Super-step 0: only layer-0 step 0 (h0(-1) = 0 -> its recurrent term is 0).
    gi0 = gi0_all[0:B, :]
    r = jax.nn.sigmoid(gi0[:, 0:G])
    z = jax.nn.sigmoid(gi0[:, G:2 * G])
    n = jnp.tanh(gi0[:, 2 * G:G3] + r * bhn0_b)
    h0 = (1.0 - z) * n                          # h0(0)
    h1 = jnp.zeros((B, G), f32)
    acc1 = jnp.zeros((B, G), f32)               # sum_t h1(t); layer-1 only

    # Super-step s (1..T): layer-0 step s (if s < T) and layer-1 step s-1 in parallel.
    for s in range(1, T + 1):                   # T static & small -> fully unrolled
        # One fused MXU push for both consumers of h0(s-1); the h1 recurrence is an
        # independent second push that overlaps (also the preferred shape on v5e).
        full_a = jnp.dot(h0, w_a, preferred_element_type=f32)          # (B, 6G)
        gi1 = full_a[:, G3:] + b1_b                                    # layer-1 input proj
        gh1 = (jnp.dot(h1, w_hh1, preferred_element_type=f32)
               if s > 1 else jnp.zeros((B, G3), f32))                  # h1(-1) = 0
        new_h1 = cell(gi1, gh1, bhn1_b, h1)                            # h1(s-1)
        acc1 = acc1 + new_h1
        if s < T:
            h0 = cell(gi0_all[s * B:(s + 1) * B, :], full_a[:, 0:G3],
                      bhn0_b, h0)                                      # h0(s)
        h1 = new_h1
    # h1 == h1(T-1) (the only timestep the head uses); acc1 == sum_t h1(t).

    # ----------- SELayer (AdaptiveAvgPool1d over T) + residual + head -----------
    y = acc1 * (1.0 / T)                                               # mean over time
    s_hid = jnp.maximum(jnp.dot(y, se_w1_ref[...], preferred_element_type=f32)
                        + se_b1_ref[...], 0.0)
    gate = jax.nn.sigmoid(jnp.dot(s_hid, se_w2_ref[...], preferred_element_type=f32)
                          + se_b2_ref[...])
    # relu(out*gate + residual) at the last timestep, residual folded into the gate.
    o = jnp.maximum(h1 * (gate + 1.0), 0.0)
    o = jnp.maximum(jnp.dot(o, fc1_w_ref[...], preferred_element_type=f32)
                    + fc1_b_ref[...], 0.0)
    # nn.Dropout(p=0.2) -> identity in eval mode.
    out_ref[...] = (jnp.dot(o, fc2_w_ref[...], preferred_element_type=f32)
                    + fc2_b_ref[...])                                  # (B, 128) lane-dense


def init_raw_params(key, conv_hidden_size, rnn_hidden_size):
    """Deterministic synthetic parameters in the PyTorch layouts."""
    H, Cin = rnn_hidden_size, conv_hidden_size
    Hr = H // 8
    ks = jax.random.split(key, 16)
    sc = 1.0 / float(H) ** 0.5

    def u(k, shape):
        return jax.random.uniform(k, shape, jnp.float32, -sc, sc)

    return {
        "w_ih_l0": u(ks[0], (3 * H, Cin)), "w_hh_l0": u(ks[1], (3 * H, H)),
        "b_ih_l0": u(ks[2], (3 * H,)),     "b_hh_l0": u(ks[3], (3 * H,)),
        "w_ih_l1": u(ks[4], (3 * H, H)),   "w_hh_l1": u(ks[5], (3 * H, H)),
        "b_ih_l1": u(ks[6], (3 * H,)),     "b_hh_l1": u(ks[7], (3 * H,)),
        "se_w1": u(ks[8], (Hr, H)),  "se_b1": u(ks[9], (Hr,)),
        "se_w2": u(ks[10], (H, Hr)), "se_b2": u(ks[11], (H,)),
        "fc1_w": u(ks[12], (H, H)),  "fc1_b": u(ks[13], (H,)),
        "fc2_w": u(ks[14], (2, H)),  "fc2_b": u(ks[15], (2,)),
    }


def prepare_params(raw, conv_hidden_size, rnn_hidden_size):
    """One-time weight prep (not per-call): pre-transpose to (in, out), pad each GRU
    gate (and the hidden width) to its own 128-lane block with zero fill, fold
    b_ih (+ b_hh for r,z) into the input-projection bias, concatenate [w_hh0 | w_ih1]
    into the per-step fused weight, and pad fc2 to a lane-dense 128-wide output."""
    H = rnn_hidden_size
    Hr = H // 8
    G = 128 * ((H + 127) // 128)          # lane-aligned per-gate / hidden width
    GR = 128 * ((Hr + 127) // 128)        # lane-aligned SE reduction width
    f32 = jnp.float32

    def pad2(a, rows, cols):
        return jnp.zeros((rows, cols), f32).at[:a.shape[0], :a.shape[1]].set(a)

    def gate_pad_cols(w_t, rows):         # (in, 3H) -> (rows, 3G), one block per gate
        return jnp.concatenate(
            [pad2(w_t[:, g * H:(g + 1) * H], rows, G) for g in range(3)], axis=1)

    def gate_pad_bias(b):                 # (3H,) -> (1, 3G)
        return jnp.concatenate(
            [pad2(b[g * H:(g + 1) * H][None, :], 1, G) for g in range(3)], axis=1)

    def fold_bias(b_ih, b_hh):            # b_ih (all gates) + b_hh (r,z only)
        b_rz = jnp.concatenate([b_hh[:2 * H], jnp.zeros((H,), f32)])
        return gate_pad_bias(b_ih) + gate_pad_bias(b_rz)

    # Layer 0
    w_ih0 = gate_pad_cols(raw["w_ih_l0"].T, conv_hidden_size)      # (Cin, 3G)
    b0 = fold_bias(raw["b_ih_l0"], raw["b_hh_l0"])                 # (1, 3G)
    bhn0 = pad2(raw["b_hh_l0"][2 * H:][None, :], 1, G)             # (1, G)
    w_hh0 = gate_pad_cols(raw["w_hh_l0"].T, G)                     # (G, 3G)

    # Layer 1
    w_ih1 = gate_pad_cols(raw["w_ih_l1"].T, G)                     # (G, 3G)
    b1 = fold_bias(raw["b_ih_l1"], raw["b_hh_l1"])                 # (1, 3G)
    bhn1 = pad2(raw["b_hh_l1"][2 * H:][None, :], 1, G)             # (1, G)
    w_hh1 = gate_pad_cols(raw["w_hh_l1"].T, G)                     # (G, 3G)

    # Fused per-step weight for both consumers of h0: [w_hh0 | w_ih1]  (G, 6G)
    w_a = jnp.concatenate([w_hh0, w_ih1], axis=1)

    params = {
        "w_ih0": w_ih0, "b0": b0,
        "w_a": w_a, "w_hh1": w_hh1, "b1": b1, "bhn0": bhn0, "bhn1": bhn1,
        "se_w1": pad2(raw["se_w1"].T, G, GR), "se_b1": pad2(raw["se_b1"][None, :], 1, GR),
        "se_w2": pad2(raw["se_w2"].T, GR, G), "se_b2": pad2(raw["se_b2"][None, :], 1, G),
        "fc1_w": pad2(raw["fc1_w"].T, G, G),  "fc1_b": pad2(raw["fc1_b"][None, :], 1, G),
        # fc2 padded to 128 output lanes (lane-dense store); wrapper slices [:, :2].
        "fc2_w": pad2(raw["fc2_w"].T, G, 128), "fc2_b": pad2(raw["fc2_b"][None, :], 1, 128),
    }

    # Padded-lane invariant (review): all padded GRU weight rows/cols and biases must
    # be exactly zero so padded hidden lanes stay 0 through the recurrence
    # (r_pad = z_pad = 0.5, n_pad = 0  =>  h_pad stays 0).
    def _assert_zero(a):
        assert a.size == 0 or float(jnp.max(jnp.abs(a))) == 0.0, \
            "GRU padding invariant violated: non-zero values in padded lanes"

    if H < G:
        _assert_zero(w_a[H:, :])
        _assert_zero(w_hh1[H:, :])
        _assert_zero(w_ih1[H:, :])
        for g in range(6):
            _assert_zero(w_a[:, g * G + H:(g + 1) * G])
        for g in range(3):
            _assert_zero(w_hh1[:, g * G + H:(g + 1) * G])
            _assert_zero(w_ih0[:, g * G + H:(g + 1) * G])
            _assert_zero(b0[:, g * G + H:(g + 1) * G])
            _assert_zero(b1[:, g * G + H:(g + 1) * G])
        _assert_zero(bhn0[:, H:])
        _assert_zero(bhn1[:, H:])

    return params


def rnn_forward(x, kp):
    """x: (B, T, conv_hidden_size) batch-first, matching nn.GRU(batch_first=True)."""
    B, T, Cin = x.shape
    G = kp["bhn0"].shape[1]
    # Layout plumbing in the wrapper: time-major flatten so row t*B + b is (t, b);
    # the kernel then does one batched layer-0 input-projection matmul.
    x_flat = jnp.transpose(x, (1, 0, 2)).reshape(T * B, Cin)

    kernel = functools.partial(rnn_fwd_kernel, B=B, T=T, G=G)
    vmem = pl.BlockSpec(memory_space=pltpu.MemorySpace.VMEM)
    args = (x_flat, kp["w_ih0"], kp["b0"],
            kp["w_a"], kp["w_hh1"], kp["b1"], kp["bhn0"], kp["bhn1"],
            kp["se_w1"], kp["se_b1"], kp["se_w2"], kp["se_b2"],
            kp["fc1_w"], kp["fc1_b"], kp["fc2_w"], kp["fc2_b"])
    out_padded = pl.pallas_call(
        kernel,
        out_shape=jax.ShapeDtypeStruct((B, 128), jnp.float32),   # lane-dense output
        in_specs=[vmem] * len(args),
        out_specs=vmem,
    )(*args)
    return out_padded[:, :2]


def reference_forward(x, raw, H):
    """Pure-JAX reference matching the PyTorch module in eval mode (f32 HIGHEST)."""
    hp = jax.lax.Precision.HIGHEST
    B, T, _ = x.shape

    def cell(xt, h, w_ih, w_hh, b_ih, b_hh):
        gi = jnp.dot(xt, w_ih.T, precision=hp) + b_ih
        gh = jnp.dot(h, w_hh.T, precision=hp) + b_hh
        r = jax.nn.sigmoid(gi[:, :H] + gh[:, :H])
        z = jax.nn.sigmoid(gi[:, H:2 * H] + gh[:, H:2 * H])
        n = jnp.tanh(gi[:, 2 * H:] + r * gh[:, 2 * H:])
        return (1.0 - z) * n + z * h

    h0 = jnp.zeros((B, H), jnp.float32)
    h1 = jnp.zeros((B, H), jnp.float32)
    seq = []
    for t in range(T):
        h0 = cell(x[:, t, :], h0, raw["w_ih_l0"], raw["w_hh_l0"],
                  raw["b_ih_l0"], raw["b_hh_l0"])
        h1 = cell(h0, h1, raw["w_ih_l1"], raw["w_hh_l1"],
                  raw["b_ih_l1"], raw["b_hh_l1"])
        seq.append(h1)
    out = jnp.stack(seq, axis=1)                                   # (B, T, H)
    y = jnp.mean(out, axis=1)                                      # SE avg-pool over T
    s = jax.nn.relu(jnp.dot(y, raw["se_w1"].T, precision=hp) + raw["se_b1"])
    gate = jax.nn.sigmoid(jnp.dot(s, raw["se_w2"].T, precision=hp) + raw["se_b2"])
    o = jax.nn.relu(out * gate[:, None, :] + out)[:, -1, :]
    o = jax.nn.relu(jnp.dot(o, raw["fc1_w"].T, precision=hp) + raw["fc1_b"])
    return jnp.dot(o, raw["fc2_w"].T, precision=hp) + raw["fc2_b"]


if __name__ == "__main__":
    # Small shapes consistent with the module: GRU input = conv_hidden_size,
    # hidden = rnn_hidden_size, num_layers = 2, batch_first sequence input.
    B, T = 2, 8
    conv_hidden_size = 16
    rnn_hidden_size = 32

    key = jax.random.PRNGKey(0)
    kx, kp = jax.random.split(key)
    x = jax.random.normal(kx, (B, T, conv_hidden_size), dtype=jnp.float32)
    raw = init_raw_params(kp, conv_hidden_size, rnn_hidden_size)
    kparams = prepare_params(raw, conv_hidden_size, rnn_hidden_size)

    out = rnn_forward(x, kparams)
    jax.block_until_ready(out)
    assert out.shape == (B, 2) and out.dtype == jnp.float32

    ref = reference_forward(x, raw, rnn_hidden_size)
    err = float(jnp.max(jnp.abs(out - ref)))
    # Kernel dots use default (bf16-pass) MXU precision vs the f32-HIGHEST reference;
    # 2e-3 is a comfortable bound at H=32, T=8 while still catching real bugs.
    assert err < 2e-3, f"kernel/reference mismatch: max abs err = {err}"
    print("KERNEL_OK")
</pallas_src>

<mosaic_0001>
module attributes {stable_mosaic.version = 11 : i64} {
  func.func @rnn_fwd_kernel(%arg0: memref<16x16xf32, #tpu.memory_space<vmem>>, %arg1: memref<16x384xf32, #tpu.memory_space<vmem>>, %arg2: memref<1x384xf32, #tpu.memory_space<vmem>>, %arg3: memref<128x768xf32, #tpu.memory_space<vmem>>, %arg4: memref<128x384xf32, #tpu.memory_space<vmem>>, %arg5: memref<1x384xf32, #tpu.memory_space<vmem>>, %arg6: memref<1x128xf32, #tpu.memory_space<vmem>>, %arg7: memref<1x128xf32, #tpu.memory_space<vmem>>, %arg8: memref<128x128xf32, #tpu.memory_space<vmem>>, %arg9: memref<1x128xf32, #tpu.memory_space<vmem>>, %arg10: memref<128x128xf32, #tpu.memory_space<vmem>>, %arg11: memref<1x128xf32, #tpu.memory_space<vmem>>, %arg12: memref<128x128xf32, #tpu.memory_space<vmem>>, %arg13: memref<1x128xf32, #tpu.memory_space<vmem>>, %arg14: memref<128x128xf32, #tpu.memory_space<vmem>>, %arg15: memref<1x128xf32, #tpu.memory_space<vmem>>, %arg16: memref<2x128xf32, #tpu.memory_space<vmem>>) attributes {dimension_semantics = [], scalar_prefetch = 0 : i64, scratch_operands = 0 : i64, tpu.core_type = #tpu.core_type<tc>} {
    %c0 = arith.constant 0 : index
    %c0_0 = arith.constant 0 : index
    %0 = vector.load %arg0[%c0, %c0_0] : memref<16x16xf32, #tpu.memory_space<vmem>>, vector<16x16xf32>
    %c0_1 = arith.constant 0 : index
    %c0_2 = arith.constant 0 : index
    %1 = vector.load %arg1[%c0_1, %c0_2] : memref<16x384xf32, #tpu.memory_space<vmem>>, vector<16x384xf32>
    %cst = arith.constant dense<0.000000e+00> : vector<16x384xf32>
    %2 = tpu.matmul %0, %1, %cst {dimension_numbers = #tpu.dot_dimension_numbers<[1], [0], [0], [1], [0, 0, 1, 1], [], []>} : vector<16x16xf32>, vector<16x384xf32>, vector<16x384xf32> -> vector<16x384xf32>
    %c0_3 = arith.constant 0 : index
    %c0_4 = arith.constant 0 : index
    %3 = vector.load %arg2[%c0_3, %c0_4] : memref<1x384xf32, #tpu.memory_space<vmem>>, vector<1x384xf32>
    %4 = vector.broadcast %3 : vector<1x384xf32> to vector<16x384xf32>
    %5 = arith.addf %2, %4 : vector<16x384xf32>
    %c0_5 = arith.constant 0 : index
    %c0_6 = arith.constant 0 : index
    %6 = vector.load %arg3[%c0_5, %c0_6] : memref<128x768xf32, #tpu.memory_space<vmem>>, vector<128x768xf32>
    %c0_7 = arith.constant 0 : index
    %c0_8 = arith.constant 0 : index
    %7 = vector.load %arg4[%c0_7, %c0_8] : memref<128x384xf32, #tpu.memory_space<vmem>>, vector<128x384xf32>
    %c0_9 = arith.constant 0 : index
    %c0_10 = arith.constant 0 : index
    %8 = vector.load %arg5[%c0_9, %c0_10] : memref<1x384xf32, #tpu.memory_space<vmem>>, vector<1x384xf32>
    %9 = vector.shape_cast %8 : vector<1x384xf32> to vector<1x384xf32>
    %10 = vector.broadcast %9 : vector<1x384xf32> to vector<2x384xf32>
    %c0_11 = arith.constant 0 : index
    %c0_12 = arith.constant 0 : index
    %11 = vector.load %arg6[%c0_11, %c0_12] : memref<1x128xf32, #tpu.memory_space<vmem>>, vector<1x128xf32>
    %12 = vector.shape_cast %11 : vector<1x128xf32> to vector<1x128xf32>
    %13 = vector.broadcast %12 : vector<1x128xf32> to vector<2x128xf32>
    %c0_13 = arith.constant 0 : index
    %c0_14 = arith.constant 0 : index
    %14 = vector.load %arg7[%c0_13, %c0_14] : memref<1x128xf32, #tpu.memory_space<vmem>>, vector<1x128xf32>
    %15 = vector.shape_cast %14 : vector<1x128xf32> to vector<1x128xf32>
    %16 = vector.broadcast %15 : vector<1x128xf32> to vector<2x128xf32>
    %17 = vector.extract_strided_slice %5 {offsets = [0, 0], sizes = [2, 384], strides = [1, 1]} : vector<16x384xf32> to vector<2x384xf32>
    %18 = vector.extract_strided_slice %17 {offsets = [0, 0], sizes = [2, 128], strides = [1, 1]} : vector<2x384xf32> to vector<2x128xf32>
    %19 = arith.negf %18 : vector<2x128xf32>
    %20 = math.exp %19 : vector<2x128xf32>
    %cst_15 = arith.constant 1.000000e+00 : f32
    %21 = vector.broadcast %cst_15 : f32 to vector<2x128xf32>
    %22 = arith.addf %21, %20 : vector<2x128xf32>
    %23 = arith.divf %21, %22 : vector<2x128xf32>
    %24 = vector.extract_strided_slice %17 {offsets = [0, 128], sizes = [2, 128], strides = [1, 1]} : vector<2x384xf32> to vector<2x128xf32>
    %25 = arith.negf %24 : vector<2x128xf32>
    %26 = math.exp %25 : vector<2x128xf32>
    %cst_16 = arith.constant 1.000000e+00 : f32
    %27 = vector.broadcast %cst_16 : f32 to vector<2x128xf32>
    %28 = arith.addf %27, %26 : vector<2x128xf32>
    %29 = arith.divf %27, %28 : vector<2x128xf32>
    %30 = vector.extract_strided_slice %17 {offsets = [0, 256], sizes = [2, 128], strides = [1, 1]} : vector<2x384xf32> to vector<2x128xf32>
    %31 = arith.mulf %23, %13 : vector<2x128xf32>
    %32 = arith.addf %30, %31 : vector<2x128xf32>
    %33 = math.tanh %32 : vector<2x128xf32>
    %cst_17 = arith.constant 1.000000e+00 : f32
    %34 = vector.broadcast %cst_17 : f32 to vector<2x128xf32>
    %35 = arith.subf %34, %29 : vector<2x128xf32>
    %36 = arith.mulf %35, %33 : vector<2x128xf32>
    %cst_18 = arith.constant 0.000000e+00 : f32
    %37 = vector.broadcast %cst_18 : f32 to vector<2x128xf32>
    %cst_19 = arith.constant 0.000000e+00 : f32
    %38 = vector.broadcast %cst_19 : f32 to vector<2x128xf32>
    %cst_20 = arith.constant dense<0.000000e+00> : vector<2x768xf32>
    %39 = tpu.matmul %36, %6, %cst_20 {dimension_numbers = #tpu.dot_dimension_numbers<[1], [0], [0], [1], [0, 0, 1, 1], [], []>} : vector<2x128xf32>, vector<128x768xf32>, vector<2x768xf32> -> vector<2x768xf32>
    %40 = vector.extract_strided_slice %39 {offsets = [0, 384], sizes = [2, 384], strides = [1, 1]} : vector<2x768xf32> to vector<2x384xf32>
    %41 = arith.addf %40, %10 : vector<2x384xf32>
    %cst_21 = arith.constant 0.000000e+00 : f32
    %42 = vector.broadcast %cst_21 : f32 to vector<2x384xf32>
    %43 = vector.extract_strided_slice %41 {offsets = [0, 0], sizes = [2, 128], strides = [1, 1]} : vector<2x384xf32> to vector<2x128xf32>
    %44 = vector.extract_strided_slice %42 {offsets = [0, 0], sizes = [2, 128], strides = [1, 1]} : vector<2x384xf32> to vector<2x128xf32>
    %45 = arith.addf %43, %44 : vector<2x128xf32>
    %46 = arith.negf %45 : vector<2x128xf32>
    %47 = math.exp %46 : vector<2x128xf32>
    %cst_22 = arith.constant 1.000000e+00 : f32
    %48 = vector.broadcast %cst_22 : f32 to vector<2x128xf32>
    %49 = arith.addf %48, %47 : vector<2x128xf32>
    %50 = arith.divf %48, %49 : vector<2x128xf32>
    %51 = vector.extract_strided_slice %41 {offsets = [0, 128], sizes = [2, 128], strides = [1, 1]} : vector<2x384xf32> to vector<2x128xf32>
    %52 = vector.extract_strided_slice %42 {offsets = [0, 128], sizes = [2, 128], strides = [1, 1]} : vector<2x384xf32> to vector<2x128xf32>
    %53 = arith.addf %51, %52 : vector<2x128xf32>
    %54 = arith.negf %53 : vector<2x128xf32>
    %55 = math.exp %54 : vector<2x128xf32>
    %cst_23 = arith.constant 1.000000e+00 : f32
    %56 = vector.broadcast %cst_23 : f32 to vector<2x128xf32>
    %57 = arith.addf %56, %55 : vector<2x128xf32>
    %58 = arith.divf %56, %57 : vector<2x128xf32>
    %59 = vector.extract_strided_slice %41 {offsets = [0, 256], sizes = [2, 128], strides = [1, 1]} : vector<2x384xf32> to vector<2x128xf32>
    %60 = vector.extract_strided_slice %42 {offsets = [0, 256], sizes = [2, 128], strides = [1, 1]} : vector<2x384xf32> to vector<2x128xf32>
    %61 = arith.addf %60, %16 : vector<2x128xf32>
    %62 = arith.mulf %50, %61 : vector<2x128xf32>
    %63 = arith.addf %59, %62 : vector<2x128xf32>
    %64 = math.tanh %63 : vector<2x128xf32>
    %cst_24 = arith.constant 1.000000e+00 : f32
    %65 = vector.broadcast %cst_24 : f32 to vector<2x128xf32>
    %66 = arith.subf %65, %58 : vector<2x128xf32>
    %67 = arith.mulf %66, %64 : vector<2x128xf32>
    %68 = arith.mulf %58, %37 : vector<2x128xf32>
    %69 = arith.addf %67, %68 : vector<2x128xf32>
    %70 = arith.addf %38, %69 : vector<2x128xf32>
    %71 = vector.extract_strided_slice %5 {offsets = [2, 0], sizes = [2, 384], strides = [1, 1]} : vector<16x384xf32> to vector<2x384xf32>
    %72 = vector.extract_strided_slice %39 {offsets = [0, 0], sizes = [2, 384], strides = [1, 1]} : vector<2x768xf32> to vector<2x384xf32>
    %73 = vector.extract_strided_slice %71 {offsets = [0, 0], sizes = [2, 128], strides = [1, 1]} : vector<2x384xf32> to vector<2x128xf32>
    %74 = vector.extract_strided_slice %72 {offsets = [0, 0], sizes = [2, 128], strides = [1, 1]} : vector<2x384xf32> to vector<2x128xf32>
    %75 = arith.addf %73, %74 : vector<2x128xf32>
    %76 = arith.negf %75 : vector<2x128xf32>
    %77 = math.exp %76 : vector<2x128xf32>
    %cst_25 = arith.constant 1.000000e+00 : f32
    %78 = vector.broadcast %cst_25 : f32 to vector<2x128xf32>
    %79 = arith.addf %78, %77 : vector<2x128xf32>
    %80 = arith.divf %78, %79 : vector<2x128xf32>
    %81 = vector.extract_strided_slice %71 {offsets = [0, 128], sizes = [2, 128], strides = [1, 1]} : vector<2x384xf32> to vector<2x128xf32>
    %82 = vector.extract_strided_slice %72 {offsets = [0, 128], sizes = [2, 128], strides = [1, 1]} : vector<2x384xf32> to vector<2x128xf32>
    %83 = arith.addf %81, %82 : vector<2x128xf32>
    %84 = arith.negf %83 : vector<2x128xf32>
    %85 = math.exp %84 : vector<2x128xf32>
    %cst_26 = arith.constant 1.000000e+00 : f32
    %86 = vector.broadcast %cst_26 : f32 to vector<2x128xf32>
    %87 = arith.addf %86, %85 : vector<2x128xf32>
    %88 = arith.divf %86, %87 : vector<2x128xf32>
    %89 = vector.extract_strided_slice %71 {offsets = [0, 256], sizes = [2, 128], strides = [1, 1]} : vector<2x384xf32> to vector<2x128xf32>
    %90 = vector.extract_strided_slice %72 {offsets = [0, 256], sizes = [2, 128], strides = [1, 1]} : vector<2x384xf32> to vector<2x128xf32>
    %91 = arith.addf %90, %13 : vector<2x128xf32>
    %92 = arith.mulf %80, %91 : vector<2x128xf32>
    %93 = arith.addf %89, %92 : vector<2x128xf32>
    %94 = math.tanh %93 : vector<2x128xf32>
    %cst_27 = arith.constant 1.000000e+00 : f32
    %95 = vector.broadcast %cst_27 : f32 to vector<2x128xf32>
    %96 = arith.subf %95, %88 : vector<2x128xf32>
    %97 = arith.mulf %96, %94 : vector<2x128xf32>
    %98 = arith.mulf %88, %36 : vector<2x128xf32>
    %99 = arith.addf %97, %98 : vector<2x128xf32>
    %cst_28 = arith.constant dense<0.000000e+00> : vector<2x768xf32>
    %100 = tpu.matmul %99, %6, %cst_28 {dimension_numbers = #tpu.dot_dimension_numbers<[1], [0], [0], [1], [0, 0, 1, 1], [], []>} : vector<2x128xf32>, vector<128x768xf32>, vector<2x768xf32> -> vector<2x768xf32>
    %101 = vector.extract_strided_slice %100 {offsets = [0, 384], sizes = [2, 384], strides = [1, 1]} : vector<2x768xf32> to vector<2x384xf32>
    %102 = arith.addf %101, %10 : vector<2x384xf32>
    %cst_29 = arith.constant dense<0.000000e+00> : vector<2x384xf32>
    %103 = tpu.matmul %69, %7, %cst_29 {dimension_numbers = #tpu.dot_dimension_numbers<[1], [0], [0], [1], [0, 0, 1, 1], [], []>} : vector<2x128xf32>, vector<128x384xf32>, vector<2x384xf32> -> vector<2x384xf32>
    %104 = vector.extract_strided_slice %102 {offsets = [0, 0], sizes = [2, 128], strides = [1, 1]} : vector<2x384xf32> to vector<2x128xf32>
    %105 = vector.extract_strided_slice %103 {offsets = [0, 0], sizes = [2, 128], strides = [1, 1]} : vector<2x384xf32> to vector<2x128xf32>
    %106 = arith.addf %104, %105 : vector<2x128xf32>
    %107 = arith.negf %106 : vector<2x128xf32>
    %108 = math.exp %107 : vector<2x128xf32>
    %cst_30 = arith.constant 1.000000e+00 : f32
    %109 = vector.broadcast %cst_30 : f32 to vector<2x128xf32>
    %110 = arith.addf %109, %108 : vector<2x128xf32>
    %111 = arith.divf %109, %110 : vector<2x128xf32>
    %112 = vector.extract_strided_slice %102 {offsets = [0, 128], sizes = [2, 128], strides = [1, 1]} : vector<2x384xf32> to vector<2x128xf32>
    %113 = vector.extract_strided_slice %103 {offsets = [0, 128], sizes = [2, 128], strides = [1, 1]} : vector<2x384xf32> to vector<2x128xf32>
    %114 = arith.addf %112, %113 : vector<2x128xf32>
    %115 = arith.negf %114 : vector<2x128xf32>
    %116 = math.exp %115 : vector<2x128xf32>
    %cst_31 = arith.constant 1.000000e+00 : f32
    %117 = vector.broadcast %cst_31 : f32 to vector<2x128xf32>
    %118 = arith.addf %117, %116 : vector<2x128xf32>
    %119 = arith.divf %117, %118 : vector<2x128xf32>
    %120 = vector.extract_strided_slice %102 {offsets = [0, 256], sizes = [2, 128], strides = [1, 1]} : vector<2x384xf32> to vector<2x128xf32>
    %121 = vector.extract_strided_slice %103 {offsets = [0, 256], sizes = [2, 128], strides = [1, 1]} : vector<2x384xf32> to vector<2x128xf32>
    %122 = arith.addf %121, %16 : vector<2x128xf32>
    %123 = arith.mulf %111, %122 : vector<2x128xf32>
    %124 = arith.addf %120, %123 : vector<2x128xf32>
    %125 = math.tanh %124 : vector<2x128xf32>
    %cst_32 = arith.constant 1.000000e+00 : f32
    %126 = vector.broadcast %cst_32 : f32 to vector<2x128xf32>
    %127 = arith.subf %126, %119 : vector<2x128xf32>
    %128 = arith.mulf %127, %125 : vector<2x128xf32>
    %129 = arith.mulf %119, %69 : vector<2x128xf32>
    %130 = arith.addf %128, %129 : vector<2x128xf32>
    %131 = arith.addf %70, %130 : vector<2x128xf32>
    %132 = vector.extract_strided_slice %5 {offsets = [4, 0], sizes = [2, 384], strides = [1, 1]} : vector<16x384xf32> to vector<2x384xf32>
    %133 = vector.extract_strided_slice %100 {offsets = [0, 0], sizes = [2, 384], strides = [1, 1]} : vector<2x768xf32> to vector<2x384xf32>
    %134 = vector.extract_strided_slice %132 {offsets = [0, 0], sizes = [2, 128], strides = [1, 1]} : vector<2x384xf32> to vector<2x128xf32>
    %135 = vector.extract_strided_slice %133 {offsets = [0, 0], sizes = [2, 128], strides = [1, 1]} : vector<2x384xf32> to vector<2x128xf32>
    %136 = arith.addf %134, %135 : vector<2x128xf32>
    %137 = arith.negf %136 : vector<2x128xf32>
    %138 = math.exp %137 : vector<2x128xf32>
    %cst_33 = arith.constant 1.000000e+00 : f32
    %139 = vector.broadcast %cst_33 : f32 to vector<2x128xf32>
    %140 = arith.addf %139, %138 : vector<2x128xf32>
    %141 = arith.divf %139, %140 : vector<2x128xf32>
    %142 = vector.extract_strided_slice %132 {offsets = [0, 128], sizes = [2, 128], strides = [1, 1]} : vector<2x384xf32> to vector<2x128xf32>
    %143 = vector.extract_strided_slice %133 {offsets = [0, 128], sizes = [2, 128], strides = [1, 1]} : vector<2x384xf32> to vector<2x128xf32>
    %144 = arith.addf %142, %143 : vector<2x128xf32>
    %145 = arith.negf %144 : vector<2x128xf32>
    %146 = math.exp %145 : vector<2x128xf32>
    %cst_34 = arith.constant 1.000000e+00 : f32
    %147 = vector.broadcast %cst_34 : f32 to vector<2x128xf32>
    %148 = arith.addf %147, %146 : vector<2x128xf32>
    %149 = arith.divf %147, %148 : vector<2x128xf32>
    %150 = vector.extract_strided_slice %132 {offsets = [0, 256], sizes = [2, 128], strides = [1, 1]} : vector<2x384xf32> to vector<2x128xf32>
    %151 = vector.extract_strided_slice %133 {offsets = [0, 256], sizes = [2, 128], strides = [1, 1]} : vector<2x384xf32> to vector<2x128xf32>
    %152 = arith.addf %151, %13 : vector<2x128xf32>
    %153 = arith.mulf %141, %152 : vector<2x128xf32>
    %154 = arith.addf %150, %153 : vector<2x128xf32>
    %155 = math.tanh %154 : vector<2x128xf32>
    %cst_35 = arith.constant 1.000000e+00 : f32
    %156 = vector.broadcast %cst_35 : f32 to vector<2x128xf32>
    %157 = arith.subf %156, %149 : vector<2x128xf32>
    %158 = arith.mulf %157, %155 : vector<2x128xf32>
    %159 = arith.mulf %149, %99 : vector<2x128xf32>
    %160 = arith.addf %158, %159 : vector<2x128xf32>
    %cst_36 = arith.constant dense<0.000000e+00> : vector<2x768xf32>
    %161 = tpu.matmul %160, %6, %cst_36 {dimension_numbers = #tpu.dot_dimension_numbers<[1], [0], [0], [1], [0, 0, 1, 1], [], []>} : vector<2x128xf32>, vector<128x768xf32>, vector<2x768xf32> -> vector<2x768xf32>
    %162 = vector.extract_strided_slice %161 {offsets = [0, 384], sizes = [2, 384], strides = [1, 1]} : vector<2x768xf32> to vector<2x384xf32>
    %163 = arith.addf %162, %10 : vector<2x384xf32>
    %cst_37 = arith.constant dense<0.000000e+00> : vector<2x384xf32>
    %164 = tpu.matmul %130, %7, %cst_37 {dimension_numbers = #tpu.dot_dimension_numbers<[1], [0], [0], [1], [0, 0, 1, 1], [], []>} : vector<2x128xf32>, vector<128x384xf32>, vector<2x384xf32> -> vector<2x384xf32>
    %165 = vector.extract_strided_slice %163 {offsets = [0, 0], sizes = [2, 128], strides = [1, 1]} : vector<2x384xf32> to vector<2x128xf32>
    %166 = vector.extract_strided_slice %164 {offsets = [0, 0], sizes = [2, 128], strides = [1, 1]} : vector<2x384xf32> to vector<2x128xf32>
    %167 = arith.addf %165, %166 : vector<2x128xf32>
    %168 = arith.negf %167 : vector<2x128xf32>
    %169 = math.exp %168 : vector<2x128xf32>
    %cst_38 = arith.constant 1.000000e+00 : f32
    %170 = vector.broadcast %cst_38 : f32 to vector<2x128xf32>
    %171 = arith.addf %170, %169 : vector<2x128xf32>
    %172 = arith.divf %170, %171 : vector<2x128xf32>
    %173 = vector.extract_strided_slice %163 {offsets = [0, 128], sizes = [2, 128], strides = [1, 1]} : vector<2x384xf32> to vector<2x128xf32>
    %174 = vector.extract_strided_slice %164 {offsets = [0, 128], sizes = [2, 128], strides = [1, 1]} : vector<2x384xf32> to vector<2x128xf32>
    %175 = arith.addf %173, %174 : vector<2x128xf32>
    %176 = arith.negf %175 : vector<2x128xf32>
    %177 = math.exp %176 : vector<2x128xf32>
    %cst_39 = arith.constant 1.000000e+00 : f32
    %178 = vector.broadcast %cst_39 : f32 to vector<2x128xf32>
    %179 = arith.addf %178, %177 : vector<2x128xf32>
    %180 = arith.divf %178, %179 : vector<2x128xf32>
    %181 = vector.extract_strided_slice %163 {offsets = [0, 256], sizes = [2, 128], strides = [1, 1]} : vector<2x384xf32> to vector<2x128xf32>
    %182 = vector.extract_strided_slice %164 {offsets = [0, 256], sizes = [2, 128], strides = [1, 1]} : vector<2x384xf32> to vector<2x128xf32>
    %183 = arith.addf %182, %16 : vector<2x128xf32>
    %184 = arith.mulf %172, %183 : vector<2x128xf32>
    %185 = arith.addf %181, %184 : vector<2x128xf32>
    %186 = math.tanh %185 : vector<2x128xf32>
    %cst_40 = arith.constant 1.000000e+00 : f32
    %187 = vector.broadcast %cst_40 : f32 to vector<2x128xf32>
    %188 = arith.subf %187, %180 : vector<2x128xf32>
    %189 = arith.mulf %188, %186 : vector<2x128xf32>
    %190 = arith.mulf %180, %130 : vector<2x128xf32>
    %191 = arith.addf %189, %190 : vector<2x128xf32>
    %192 = arith.addf %131, %191 : vector<2x128xf32>
    %193 = vector.extract_strided_slice %5 {offsets = [6, 0], sizes = [2, 384], strides = [1, 1]} : vector<16x384xf32> to vector<2x384xf32>
    %194 = vector.extract_strided_slice %161 {offsets = [0, 0], sizes = [2, 384], strides = [1, 1]} : vector<2x768xf32> to vector<2x384xf32>
    %195 = vector.extract_strided_slice %193 {offsets = [0, 0], sizes = [2, 128], strides = [1, 1]} : vector<2x384xf32> to vector<2x128xf32>
    %196 = vector.extract_strided_slice %194 {offsets = [0, 0], sizes = [2, 128], strides = [1, 1]} : vector<2x384xf32> to vector<2x128xf32>
    %197 = arith.addf %195, %196 : vector<2x128xf32>
    %198 = arith.negf %197 : vector<2x128xf32>
    %199 = math.exp %198 : vector<2x128xf32>
    %cst_41 = arith.constant 1.000000e+00 : f32
    %200 = vector.broadcast %cst_41 : f32 to vector<2x128xf32>
    %201 = arith.addf %200, %199 : vector<2x128xf32>
    %202 = arith.divf %200, %201 : vector<2x128xf32>
    %203 = vector.extract_strided_slice %193 {offsets = [0, 128], sizes = [2, 128], strides = [1, 1]} : vector<2x384xf32> to vector<2x128xf32>
    %204 = vector.extract_strided_slice %194 {offsets = [0, 128], sizes = [2, 128], strides = [1, 1]} : vector<2x384xf32> to vector<2x128xf32>
    %205 = arith.addf %203, %204 : vector<2x128xf32>
    %206 = arith.negf %205 : vector<2x128xf32>
    %207 = math.exp %206 : vector<2x128xf32>
    %cst_42 = arith.constant 1.000000e+00 : f32
    %208 = vector.broadcast %cst_42 : f32 to vector<2x128xf32>
    %209 = arith.addf %208, %207 : vector<2x128xf32>
    %210 = arith.divf %208, %209 : vector<2x128xf32>
    %211 = vector.extract_strided_slice %193 {offsets = [0, 256], sizes = [2, 128], strides = [1, 1]} : vector<2x384xf32> to vector<2x128xf32>
    %212 = vector.extract_strided_slice %194 {offsets = [0, 256], sizes = [2, 128], strides = [1, 1]} : vector<2x384xf32> to vector<2x128xf32>
    %213 = arith.addf %212, %13 : vector<2x128xf32>
    %214 = arith.mulf %202, %213 : vector<2x128xf32>
    %215 = arith.addf %211, %214 : vector<2x128xf32>
    %216 = math.tanh %215 : vector<2x128xf32>
    %cst_43 = arith.constant 1.000000e+00 : f32
    %217 = vector.broadcast %cst_43 : f32 to vector<2x128xf32>
    %218 = arith.subf %217, %210 : vector<2x128xf32>
    %219 = arith.mulf %218, %216 : vector<2x128xf32>
    %220 = arith.mulf %210, %160 : vector<2x128xf32>
    %221 = arith.addf %219, %220 : vector<2x128xf32>
    %cst_44 = arith.constant dense<0.000000e+00> : vector<2x768xf32>
    %222 = tpu.matmul %221, %6, %cst_44 {dimension_numbers = #tpu.dot_dimension_numbers<[1], [0], [0], [1], [0, 0, 1, 1], [], []>} : vector<2x128xf32>, vector<128x768xf32>, vector<2x768xf32> -> vector<2x768xf32>
    %223 = vector.extract_strided_slice %222 {offsets = [0, 384], sizes = [2, 384], strides = [1, 1]} : vector<2x768xf32> to vector<2x384xf32>
    %224 = arith.addf %223, %10 : vector<2x384xf32>
    %cst_45 = arith.constant dense<0.000000e+00> : vector<2x384xf32>
    %225 = tpu.matmul %191, %7, %cst_45 {dimension_numbers = #tpu.dot_dimension_numbers<[1], [0], [0], [1], [0, 0, 1, 1], [], []>} : vector<2x128xf32>, vector<128x384xf32>, vector<2x384xf32> -> vector<2x384xf32>
    %226 = vector.extract_strided_slice %224 {offsets = [0, 0], sizes = [2, 128], strides = [1, 1]} : vector<2x384xf32> to vector<2x128xf32>
    %227 = vector.extract_strided_slice %225 {offsets = [0, 0], sizes = [2, 128], strides = [1, 1]} : vector<2x384xf32> to vector<2x128xf32>
    %228 = arith.addf %226, %227 : vector<2x128xf32>
    %229 = arith.negf %228 : vector<2x128xf32>
    %230 = math.exp %229 : vector<2x128xf32>
    %cst_46 = arith.constant 1.000000e+00 : f32
    %231 = vector.broadcast %cst_46 : f32 to vector<2x128xf32>
    %232 = arith.addf %231, %230 : vector<2x128xf32>
    %233 = arith.divf %231, %232 : vector<2x128xf32>
    %234 = vector.extract_strided_slice %224 {offsets = [0, 128], sizes = [2, 128], strides = [1, 1]} : vector<2x384xf32> to vector<2x128xf32>
    %235 = vector.extract_strided_slice %225 {offsets = [0, 128], sizes = [2, 128], strides = [1, 1]} : vector<2x384xf32> to vector<2x128xf32>
    %236 = arith.addf %234, %235 : vector<2x128xf32>
    %237 = arith.negf %236 : vector<2x128xf32>
    %238 = math.exp %237 : vector<2x128xf32>
    %cst_47 = arith.constant 1.000000e+00 : f32
    %239 = vector.broadcast %cst_47 : f32 to vector<2x128xf32>
    %240 = arith.addf %239, %238 : vector<2x128xf32>
    %241 = arith.divf %239, %240 : vector<2x128xf32>
    %242 = vector.extract_strided_slice %224 {offsets = [0, 256], sizes = [2, 128], strides = [1, 1]} : vector<2x384xf32> to vector<2x128xf32>
    %243 = vector.extract_strided_slice %225 {offsets = [0, 256], sizes = [2, 128], strides = [1, 1]} : vector<2x384xf32> to vector<2x128xf32>
    %244 = arith.addf %243, %16 : vector<2x128xf32>
    %245 = arith.mulf %233, %244 : vector<2x128xf32>
    %246 = arith.addf %242, %245 : vector<2x128xf32>
    %247 = math.tanh %246 : vector<2x128xf32>
    %cst_48 = arith.constant 1.000000e+00 : f32
    %248 = vector.broadcast %cst_48 : f32 to vector<2x128xf32>
    %249 = arith.subf %248, %241 : vector<2x128xf32>
    %250 = arith.mulf %249, %247 : vector<2x128xf32>
    %251 = arith.mulf %241, %191 : vector<2x128xf32>
    %252 = arith.addf %250, %251 : vector<2x128xf32>
    %253 = arith.addf %192, %252 : vector<2x128xf32>
    %254 = vector.extract_strided_slice %5 {offsets = [8, 0], sizes = [2, 384], strides = [1, 1]} : vector<16x384xf32> to vector<2x384xf32>
    %255 = vector.extract_strided_slice %222 {offsets = [0, 0], sizes = [2, 384], strides = [1, 1]} : vector<2x768xf32> to vector<2x384xf32>
    %256 = vector.extract_strided_slice %254 {offsets = [0, 0], sizes = [2, 128], strides = [1, 1]} : vector<2x384xf32> to vector<2x128xf32>
    %257 = vector.extract_strided_slice %255 {offsets = [0, 0], sizes = [2, 128], strides = [1, 1]} : vector<2x384xf32> to vector<2x128xf32>
    %258 = arith.addf %256, %257 : vector<2x128xf32>
    %259 = arith.negf %258 : vector<2x128xf32>
    %260 = math.exp %259 : vector<2x128xf32>
    %cst_49 = arith.constant 1.000000e+00 : f32
    %261 = vector.broadcast %cst_49 : f32 to vector<2x128xf32>
    %262 = arith.addf %261, %260 : vector<2x128xf32>
    %263 = arith.divf %261, %262 : vector<2x128xf32>
    %264 = vector.extract_strided_slice %254 {offsets = [0, 128], sizes = [2, 128], strides = [1, 1]} : vector<2x384xf32> to vector<2x128xf32>
    %265 = vector.extract_strided_slice %255 {offsets = [0, 128], sizes = [2, 128], strides = [1, 1]} : vector<2x384xf32> to vector<2x128xf32>
    %266 = arith.addf %264, %265 : vector<2x128xf32>
    %267 = arith.negf %266 : vector<2x128xf32>
    %268 = math.exp %267 : vector<2x128xf32>
    %cst_50 = arith.constant 1.000000e+00 : f32
    %269 = vector.broadcast %cst_50 : f32 to vector<2x128xf32>
    %270 = arith.addf %269, %268 : vector<2x128xf32>
    %271 = arith.divf %269, %270 : vector<2x128xf32>
    %272 = vector.extract_strided_slice %254 {offsets = [0, 256], sizes = [2, 128], strides = [1, 1]} : vector<2x384xf32> to vector<2x128xf32>
    %273 = vector.extract_strided_slice %255 {offsets = [0, 256], sizes = [2, 128], strides = [1, 1]} : vector<2x384xf32> to vector<2x128xf32>
    %274 = arith.addf %273, %13 : vector<2x128xf32>
    %275 = arith.mulf %263, %274 : vector<2x128xf32>
    %276 = arith.addf %272, %275 : vector<2x128xf32>
    %277 = math.tanh %276 : vector<2x128xf32>
    %cst_51 = arith.constant 1.000000e+00 : f32
    %278 = vector.broadcast %cst_51 : f32 to vector<2x128xf32>
    %279 = arith.subf %278, %271 : vector<2x128xf32>
    %280 = arith.mulf %279, %277 : vector<2x128xf32>
    %281 = arith.mulf %271, %221 : vector<2x128xf32>
    %282 = arith.addf %280, %281 : vector<2x128xf32>
    %cst_52 = arith.constant dense<0.000000e+00> : vector<2x768xf32>
    %283 = tpu.matmul %282, %6, %cst_52 {dimension_numbers = #tpu.dot_dimension_numbers<[1], [0], [0], [1], [0, 0, 1, 1], [], []>} : vector<2x128xf32>, vector<128x768xf32>, vector<2x768xf32> -> vector<2x768xf32>
    %284 = vector.extract_strided_slice %283 {offsets = [0, 384], sizes = [2, 384], strides = [1, 1]} : vector<2x768xf32> to vector<2x384xf32>
    %285 = arith.addf %284, %10 : vector<2x384xf32>
    %cst_53 = arith.constant dense<0.000000e+00> : vector<2x384xf32>
    %286 = tpu.matmul %252, %7, %cst_53 {dimension_numbers = #tpu.dot_dimension_numbers<[1], [0], [0], [1], [0, 0, 1, 1], [], []>} : vector<2x128xf32>, vector<128x384xf32>, vector<2x384xf32> -> vector<2x384xf32>
    %287 = vector.extract_strided_slice %285 {offsets = [0, 0], sizes = [2, 128], strides = [1, 1]} : vector<2x384xf32> to vector<2x128xf32>
    %288 = vector.extract_strided_slice %286 {offsets = [0, 0], sizes = [2, 128], strides = [1, 1]} : vector<2x384xf32> to vector<2x128xf32>
    %289 = arith.addf %287, %288 : vector<2x128xf32>
    %290 = arith.negf %289 : vector<2x128xf32>
    %291 = math.exp %290 : vector<2x128xf32>
    %cst_54 = arith.constant 1.000000e+00 : f32
    %292 = vector.broadcast %cst_54 : f32 to vector<2x128xf32>
    %293 = arith.addf %292, %291 : vector<2x128xf32>
    %294 = arith.divf %292, %293 : vector<2x128xf32>
    %295 = vector.extract_strided_slice %285 {offsets = [0, 128], sizes = [2, 128], strides = [1, 1]} : vector<2x384xf32> to vector<2x128xf32>
    %296 = vector.extract_strided_slice %286 {offsets = [0, 128], sizes = [2, 128], strides = [1, 1]} : vector<2x384xf32> to vector<2x128xf32>
    %297 = arith.addf %295, %296 : vector<2x128xf32>
    %298 = arith.negf %297 : vector<2x128xf32>
    %299 = math.exp %298 : vector<2x128xf32>
    %cst_55 = arith.constant 1.000000e+00 : f32
    %300 = vector.broadcast %cst_55 : f32 to vector<2x128xf32>
    %301 = arith.addf %300, %299 : vector<2x128xf32>
    %302 = arith.divf %300, %301 : vector<2x128xf32>
    %303 = vector.extract_strided_slice %285 {offsets = [0, 256], sizes = [2, 128], strides = [1, 1]} : vector<2x384xf32> to vector<2x128xf32>
    %304 = vector.extract_strided_slice %286 {offsets = [0, 256], sizes = [2, 128], strides = [1, 1]} : vector<2x384xf32> to vector<2x128xf32>
    %305 = arith.addf %304, %16 : vector<2x128xf32>
    %306 = arith.mulf %294, %305 : vector<2x128xf32>
    %307 = arith.addf %303, %306 : vector<2x128xf32>
    %308 = math.tanh %307 : vector<2x128xf32>
    %cst_56 = arith.constant 1.000000e+00 : f32
    %309 = vector.broadcast %cst_56 : f32 to vector<2x128xf32>
    %310 = arith.subf %309, %302 : vector<2x128xf32>
    %311 = arith.mulf %310, %308 : vector<2x128xf32>
    %312 = arith.mulf %302, %252 : vector<2x128xf32>
    %313 = arith.addf %311, %312 : vector<2x128xf32>
    %314 = arith.addf %253, %313 : vector<2x128xf32>
    %315 = vector.extract_strided_slice %5 {offsets = [10, 0], sizes = [2, 384], strides = [1, 1]} : vector<16x384xf32> to vector<2x384xf32>
    %316 = vector.extract_strided_slice %283 {offsets = [0, 0], sizes = [2, 384], strides = [1, 1]} : vector<2x768xf32> to vector<2x384xf32>
    %317 = vector.extract_strided_slice %315 {offsets = [0, 0], sizes = [2, 128], strides = [1, 1]} : vector<2x384xf32> to vector<2x128xf32>
    %318 = vector.extract_strided_slice %316 {offsets = [0, 0], sizes = [2, 128], strides = [1, 1]} : vector<2x384xf32> to vector<2x128xf32>
    %319 = arith.addf %317, %318 : vector<2x128xf32>
    %320 = arith.negf %319 : vector<2x128xf32>
    %321 = math.exp %320 : vector<2x128xf32>
    %cst_57 = arith.constant 1.000000e+00 : f32
    %322 = vector.broadcast %cst_57 : f32 to vector<2x128xf32>
    %323 = arith.addf %322, %321 : vector<2x128xf32>
    %324 = arith.divf %322, %323 : vector<2x128xf32>
    %325 = vector.extract_strided_slice %315 {offsets = [0, 128], sizes = [2, 128], strides = [1, 1]} : vector<2x384xf32> to vector<2x128xf32>
    %326 = vector.extract_strided_slice %316 {offsets = [0, 128], sizes = [2, 128], strides = [1, 1]} : vector<2x384xf32> to vector<2x128xf32>
    %327 = arith.addf %325, %326 : vector<2x128xf32>
    %328 = arith.negf %327 : vector<2x128xf32>
    %329 = math.exp %328 : vector<2x128xf32>
    %cst_58 = arith.constant 1.000000e+00 : f32
    %330 = vector.broadcast %cst_58 : f32 to vector<2x128xf32>
    %331 = arith.addf %330, %329 : vector<2x128xf32>
    %332 = arith.divf %330, %331 : vector<2x128xf32>
    %333 = vector.extract_strided_slice %315 {offsets = [0, 256], sizes = [2, 128], strides = [1, 1]} : vector<2x384xf32> to vector<2x128xf32>
    %334 = vector.extract_strided_slice %316 {offsets = [0, 256], sizes = [2, 128], strides = [1, 1]} : vector<2x384xf32> to vector<2x128xf32>
    %335 = arith.addf %334, %13 : vector<2x128xf32>
    %336 = arith.mulf %324, %335 : vector<2x128xf32>
    %337 = arith.addf %333, %336 : vector<2x128xf32>
    %338 = math.tanh %337 : vector<2x128xf32>
    %cst_59 = arith.constant 1.000000e+00 : f32
    %339 = vector.broadcast %cst_59 : f32 to vector<2x128xf32>
    %340 = arith.subf %339, %332 : vector<2x128xf32>
    %341 = arith.mulf %340, %338 : vector<2x128xf32>
    %342 = arith.mulf %332, %282 : vector<2x128xf32>
    %343 = arith.addf %341, %342 : vector<2x128xf32>
    %cst_60 = arith.constant dense<0.000000e+00> : vector<2x768xf32>
    %344 = tpu.matmul %343, %6, %cst_60 {dimension_numbers = #tpu.dot_dimension_numbers<[1], [0], [0], [1], [0, 0, 1, 1], [], []>} : vector<2x128xf32>, vector<128x768xf32>, vector<2x768xf32> -> vector<2x768xf32>
    %345 = vector.extract_strided_slice %344 {offsets = [0, 384], sizes = [2, 384], strides = [1, 1]} : vector<2x768xf32> to vector<2x384xf32>
    %346 = arith.addf %345, %10 : vector<2x384xf32>
    %cst_61 = arith.constant dense<0.000000e+00> : vector<2x384xf32>
    %347 = tpu.matmul %313, %7, %cst_61 {dimension_numbers = #tpu.dot_dimension_numbers<[1], [0], [0], [1], [0, 0, 1, 1], [], []>} : vector<2x128xf32>, vector<128x384xf32>, vector<2x384xf32> -> vector<2x384xf32>
    %348 = vector.extract_strided_slice %346 {offsets = [0, 0], sizes = [2, 128], strides = [1, 1]} : vector<2x384xf32> to vector<2x128xf32>
    %349 = vector.extract_strided_slice %347 {offsets = [0, 0], sizes = [2, 128], strides = [1, 1]} : vector<2x384xf32> to vector<2x128xf32>
    %350 = arith.addf %348, %349 : vector<2x128xf32>
    %351 = arith.negf %350 : vector<2x128xf32>
    %352 = math.exp %351 : vector<2x128xf32>
    %cst_62 = arith.constant 1.000000e+00 : f32
    %353 = vector.broadcast %cst_62 : f32 to vector<2x128xf32>
    %354 = arith.addf %353, %352 : vector<2x128xf32>
    %355 = arith.divf %353, %354 : vector<2x128xf32>
    %356 = vector.extract_strided_slice %346 {offsets = [0, 128], sizes = [2, 128], strides = [1, 1]} : vector<2x384xf32> to vector<2x128xf32>
    %357 = vector.extract_strided_slice %347 {offsets = [0, 128], sizes = [2, 128], strides = [1, 1]} : vector<2x384xf32> to vector<2x128xf32>
    %358 = arith.addf %356, %357 : vector<2x128xf32>
    %359 = arith.negf %358 : vector<2x128xf32>
    %360 = math.exp %359 : vector<2x128xf32>
    %cst_63 = arith.constant 1.000000e+00 : f32
    %361 = vector.broadcast %cst_63 : f32 to vector<2x128xf32>
    %362 = arith.addf %361, %360 : vector<2x128xf32>
    %363 = arith.divf %361, %362 : vector<2x128xf32>
    %364 = vector.extract_strided_slice %346 {offsets = [0, 256], sizes = [2, 128], strides = [1, 1]} : vector<2x384xf32> to vector<2x128xf32>
    %365 = vector.extract_strided_slice %347 {offsets = [0, 256], sizes = [2, 128], strides = [1, 1]} : vector<2x384xf32> to vector<2x128xf32>
    %366 = arith.addf %365, %16 : vector<2x128xf32>
    %367 = arith.mulf %355, %366 : vector<2x128xf32>
    %368 = arith.addf %364, %367 : vector<2x128xf32>
    %369 = math.tanh %368 : vector<2x128xf32>
    %cst_64 = arith.constant 1.000000e+00 : f32
    %370 = vector.broadcast %cst_64 : f32 to vector<2x128xf32>
    %371 = arith.subf %370, %363 : vector<2x128xf32>
    %372 = arith.mulf %371, %369 : vector<2x128xf32>
    %373 = arith.mulf %363, %313 : vector<2x128xf32>
    %374 = arith.addf %372, %373 : vector<2x128xf32>
    %375 = arith.addf %314, %374 : vector<2x128xf32>
    %376 = vector.extract_strided_slice %5 {offsets = [12, 0], sizes = [2, 384], strides = [1, 1]} : vector<16x384xf32> to vector<2x384xf32>
    %377 = vector.extract_strided_slice %344 {offsets = [0, 0], sizes = [2, 384], strides = [1, 1]} : vector<2x768xf32> to vector<2x384xf32>
    %378 = vector.extract_strided_slice %376 {offsets = [0, 0], sizes = [2, 128], strides = [1, 1]} : vector<2x384xf32> to vector<2x128xf32>
    %379 = vector.extract_strided_slice %377 {offsets = [0, 0], sizes = [2, 128], strides = [1, 1]} : vector<2x384xf32> to vector<2x128xf32>
    %380 = arith.addf %378, %379 : vector<2x128xf32>
    %381 = arith.negf %380 : vector<2x128xf32>
    %382 = math.exp %381 : vector<2x128xf32>
    %cst_65 = arith.constant 1.000000e+00 : f32
    %383 = vector.broadcast %cst_65 : f32 to vector<2x128xf32>
    %384 = arith.addf %383, %382 : vector<2x128xf32>
    %385 = arith.divf %383, %384 : vector<2x128xf32>
    %386 = vector.extract_strided_slice %376 {offsets = [0, 128], sizes = [2, 128], strides = [1, 1]} : vector<2x384xf32> to vector<2x128xf32>
    %387 = vector.extract_strided_slice %377 {offsets = [0, 128], sizes = [2, 128], strides = [1, 1]} : vector<2x384xf32> to vector<2x128xf32>
    %388 = arith.addf %386, %387 : vector<2x128xf32>
    %389 = arith.negf %388 : vector<2x128xf32>
    %390 = math.exp %389 : vector<2x128xf32>
    %cst_66 = arith.constant 1.000000e+00 : f32
    %391 = vector.broadcast %cst_66 : f32 to vector<2x128xf32>
    %392 = arith.addf %391, %390 : vector<2x128xf32>
    %393 = arith.divf %391, %392 : vector<2x128xf32>
    %394 = vector.extract_strided_slice %376 {offsets = [0, 256], sizes = [2, 128], strides = [1, 1]} : vector<2x384xf32> to vector<2x128xf32>
    %395 = vector.extract_strided_slice %377 {offsets = [0, 256], sizes = [2, 128], strides = [1, 1]} : vector<2x384xf32> to vector<2x128xf32>
    %396 = arith.addf %395, %13 : vector<2x128xf32>
    %397 = arith.mulf %385, %396 : vector<2x128xf32>
    %398 = arith.addf %394, %397 : vector<2x128xf32>
    %399 = math.tanh %398 : vector<2x128xf32>
    %cst_67 = arith.constant 1.000000e+00 : f32
    %400 = vector.broadcast %cst_67 : f32 to vector<2x128xf32>
    %401 = arith.subf %400, %393 : vector<2x128xf32>
    %402 = arith.mulf %401, %399 : vector<2x128xf32>
    %403 = arith.mulf %393, %343 : vector<2x128xf32>
    %404 = arith.addf %402, %403 : vector<2x128xf32>
    %cst_68 = arith.constant dense<0.000000e+00> : vector<2x768xf32>
    %405 = tpu.matmul %404, %6, %cst_68 {dimension_numbers = #tpu.dot_dimension_numbers<[1], [0], [0], [1], [0, 0, 1, 1], [], []>} : vector<2x128xf32>, vector<128x768xf32>, vector<2x768xf32> -> vector<2x768xf32>
    %406 = vector.extract_strided_slice %405 {offsets = [0, 384], sizes = [2, 384], strides = [1, 1]} : vector<2x768xf32> to vector<2x384xf32>
    %407 = arith.addf %406, %10 : vector<2x384xf32>
    %cst_69 = arith.constant dense<0.000000e+00> : vector<2x384xf32>
    %408 = tpu.matmul %374, %7, %cst_69 {dimension_numbers = #tpu.dot_dimension_numbers<[1], [0], [0], [1], [0, 0, 1, 1], [], []>} : vector<2x128xf32>, vector<128x384xf32>, vector<2x384xf32> -> vector<2x384xf32>
    %409 = vector.extract_strided_slice %407 {offsets = [0, 0], sizes = [2, 128], strides = [1, 1]} : vector<2x384xf32> to vector<2x128xf32>
    %410 = vector.extract_strided_slice %408 {offsets = [0, 0], sizes = [2, 128], strides = [1, 1]} : vector<2x384xf32> to vector<2x128xf32>
    %411 = arith.addf %409, %410 : vector<2x128xf32>
    %412 = arith.negf %411 : vector<2x128xf32>
    %413 = math.exp %412 : vector<2x128xf32>
    %cst_70 = arith.constant 1.000000e+00 : f32
    %414 = vector.broadcast %cst_70 : f32 to vector<2x128xf32>
    %415 = arith.addf %414, %413 : vector<2x128xf32>
    %416 = arith.divf %414, %415 : vector<2x128xf32>
    %417 = vector.extract_strided_slice %407 {offsets = [0, 128], sizes = [2, 128], strides = [1, 1]} : vector<2x384xf32> to vector<2x128xf32>
    %418 = vector.extract_strided_slice %408 {offsets = [0, 128], sizes = [2, 128], strides = [1, 1]} : vector<2x384xf32> to vector<2x128xf32>
    %419 = arith.addf %417, %418 : vector<2x128xf32>
    %420 = arith.negf %419 : vector<2x128xf32>
    %421 = math.exp %420 : vector<2x128xf32>
    %cst_71 = arith.constant 1.000000e+00 : f32
    %422 = vector.broadcast %cst_71 : f32 to vector<2x128xf32>
    %423 = arith.addf %422, %421 : vector<2x128xf32>
    %424 = arith.divf %422, %423 : vector<2x128xf32>
    %425 = vector.extract_strided_slice %407 {offsets = [0, 256], sizes = [2, 128], strides = [1, 1]} : vector<2x384xf32> to vector<2x128xf32>
    %426 = vector.extract_strided_slice %408 {offsets = [0, 256], sizes = [2, 128], strides = [1, 1]} : vector<2x384xf32> to vector<2x128xf32>
    %427 = arith.addf %426, %16 : vector<2x128xf32>
    %428 = arith.mulf %416, %427 : vector<2x128xf32>
    %429 = arith.addf %425, %428 : vector<2x128xf32>
    %430 = math.tanh %429 : vector<2x128xf32>
    %cst_72 = arith.constant 1.000000e+00 : f32
    %431 = vector.broadcast %cst_72 : f32 to vector<2x128xf32>
    %432 = arith.subf %431, %424 : vector<2x128xf32>
    %433 = arith.mulf %432, %430 : vector<2x128xf32>
    %434 = arith.mulf %424, %374 : vector<2x128xf32>
    %435 = arith.addf %433, %434 : vector<2x128xf32>
    %436 = arith.addf %375, %435 : vector<2x128xf32>
    %437 = vector.extract_strided_slice %5 {offsets = [14, 0], sizes = [2, 384], strides = [1, 1]} : vector<16x384xf32> to vector<2x384xf32>
    %438 = vector.extract_strided_slice %405 {offsets = [0, 0], sizes = [2, 384], strides = [1, 1]} : vector<2x768xf32> to vector<2x384xf32>
    %439 = vector.extract_strided_slice %437 {offsets = [0, 0], sizes = [2, 128], strides = [1, 1]} : vector<2x384xf32> to vector<2x128xf32>
    %440 = vector.extract_strided_slice %438 {offsets = [0, 0], sizes = [2, 128], strides = [1, 1]} : vector<2x384xf32> to vector<2x128xf32>
    %441 = arith.addf %439, %440 : vector<2x128xf32>
    %442 = arith.negf %441 : vector<2x128xf32>
    %443 = math.exp %442 : vector<2x128xf32>
    %cst_73 = arith.constant 1.000000e+00 : f32
    %444 = vector.broadcast %cst_73 : f32 to vector<2x128xf32>
    %445 = arith.addf %444, %443 : vector<2x128xf32>
    %446 = arith.divf %444, %445 : vector<2x128xf32>
    %447 = vector.extract_strided_slice %437 {offsets = [0, 128], sizes = [2, 128], strides = [1, 1]} : vector<2x384xf32> to vector<2x128xf32>
    %448 = vector.extract_strided_slice %438 {offsets = [0, 128], sizes = [2, 128], strides = [1, 1]} : vector<2x384xf32> to vector<2x128xf32>
    %449 = arith.addf %447, %448 : vector<2x128xf32>
    %450 = arith.negf %449 : vector<2x128xf32>
    %451 = math.exp %450 : vector<2x128xf32>
    %cst_74 = arith.constant 1.000000e+00 : f32
    %452 = vector.broadcast %cst_74 : f32 to vector<2x128xf32>
    %453 = arith.addf %452, %451 : vector<2x128xf32>
    %454 = arith.divf %452, %453 : vector<2x128xf32>
    %455 = vector.extract_strided_slice %437 {offsets = [0, 256], sizes = [2, 128], strides = [1, 1]} : vector<2x384xf32> to vector<2x128xf32>
    %456 = vector.extract_strided_slice %438 {offsets = [0, 256], sizes = [2, 128], strides = [1, 1]} : vector<2x384xf32> to vector<2x128xf32>
    %457 = arith.addf %456, %13 : vector<2x128xf32>
    %458 = arith.mulf %446, %457 : vector<2x128xf32>
    %459 = arith.addf %455, %458 : vector<2x128xf32>
    %460 = math.tanh %459 : vector<2x128xf32>
    %cst_75 = arith.constant 1.000000e+00 : f32
    %461 = vector.broadcast %cst_75 : f32 to vector<2x128xf32>
    %462 = arith.subf %461, %454 : vector<2x128xf32>
    %463 = arith.mulf %462, %460 : vector<2x128xf32>
    %464 = arith.mulf %454, %404 : vector<2x128xf32>
    %465 = arith.addf %463, %464 : vector<2x128xf32>
    %cst_76 = arith.constant dense<0.000000e+00> : vector<2x768xf32>
    %466 = tpu.matmul %465, %6, %cst_76 {dimension_numbers = #tpu.dot_dimension_numbers<[1], [0], [0], [1], [0, 0, 1, 1], [], []>} : vector<2x128xf32>, vector<128x768xf32>, vector<2x768xf32> -> vector<2x768xf32>
    %467 = vector.extract_strided_slice %466 {offsets = [0, 384], sizes = [2, 384], strides = [1, 1]} : vector<2x768xf32> to vector<2x384xf32>
    %468 = arith.addf %467, %10 : vector<2x384xf32>
    %cst_77 = arith.constant dense<0.000000e+00> : vector<2x384xf32>
    %469 = tpu.matmul %435, %7, %cst_77 {dimension_numbers = #tpu.dot_dimension_numbers<[1], [0], [0], [1], [0, 0, 1, 1], [], []>} : vector<2x128xf32>, vector<128x384xf32>, vector<2x384xf32> -> vector<2x384xf32>
    %470 = vector.extract_strided_slice %468 {offsets = [0, 0], sizes = [2, 128], strides = [1, 1]} : vector<2x384xf32> to vector<2x128xf32>
    %471 = vector.extract_strided_slice %469 {offsets = [0, 0], sizes = [2, 128], strides = [1, 1]} : vector<2x384xf32> to vector<2x128xf32>
    %472 = arith.addf %470, %471 : vector<2x128xf32>
    %473 = arith.negf %472 : vector<2x128xf32>
    %474 = math.exp %473 : vector<2x128xf32>
    %cst_78 = arith.constant 1.000000e+00 : f32
    %475 = vector.broadcast %cst_78 : f32 to vector<2x128xf32>
    %476 = arith.addf %475, %474 : vector<2x128xf32>
    %477 = arith.divf %475, %476 : vector<2x128xf32>
    %478 = vector.extract_strided_slice %468 {offsets = [0, 128], sizes = [2, 128], strides = [1, 1]} : vector<2x384xf32> to vector<2x128xf32>
    %479 = vector.extract_strided_slice %469 {offsets = [0, 128], sizes = [2, 128], strides = [1, 1]} : vector<2x384xf32> to vector<2x128xf32>
    %480 = arith.addf %478, %479 : vector<2x128xf32>
    %481 = arith.negf %480 : vector<2x128xf32>
    %482 = math.exp %481 : vector<2x128xf32>
    %cst_79 = arith.constant 1.000000e+00 : f32
    %483 = vector.broadcast %cst_79 : f32 to vector<2x128xf32>
    %484 = arith.addf %483, %482 : vector<2x128xf32>
    %485 = arith.divf %483, %484 : vector<2x128xf32>
    %486 = vector.extract_strided_slice %468 {offsets = [0, 256], sizes = [2, 128], strides = [1, 1]} : vector<2x384xf32> to vector<2x128xf32>
    %487 = vector.extract_strided_slice %469 {offsets = [0, 256], sizes = [2, 128], strides = [1, 1]} : vector<2x384xf32> to vector<2x128xf32>
    %488 = arith.addf %487, %16 : vector<2x128xf32>
    %489 = arith.mulf %477, %488 : vector<2x128xf32>
    %490 = arith.addf %486, %489 : vector<2x128xf32>
    %491 = math.tanh %490 : vector<2x128xf32>
    %cst_80 = arith.constant 1.000000e+00 : f32
    %492 = vector.broadcast %cst_80 : f32 to vector<2x128xf32>
    %493 = arith.subf %492, %485 : vector<2x128xf32>
    %494 = arith.mulf %493, %491 : vector<2x128xf32>
    %495 = arith.mulf %485, %435 : vector<2x128xf32>
    %496 = arith.addf %494, %495 : vector<2x128xf32>
    %497 = arith.addf %436, %496 : vector<2x128xf32>
    %cst_81 = arith.constant 1.250000e-01 : f32
    %498 = vector.broadcast %cst_81 : f32 to vector<2x128xf32>
    %499 = arith.mulf %497, %498 : vector<2x128xf32>
    %c0_82 = arith.constant 0 : index
    %c0_83 = arith.constant 0 : index
    %500 = vector.load %arg8[%c0_82, %c0_83] : memref<128x128xf32, #tpu.memory_space<vmem>>, vector<128x128xf32>
    %cst_84 = arith.constant dense<0.000000e+00> : vector<2x128xf32>
    %501 = tpu.matmul %499, %500, %cst_84 {dimension_numbers = #tpu.dot_dimension_numbers<[1], [0], [0], [1], [0, 0, 1, 1], [], []>} : vector<2x128xf32>, vector<128x128xf32>, vector<2x128xf32> -> vector<2x128xf32>
    %c0_85 = arith.constant 0 : index
    %c0_86 = arith.constant 0 : index
    %502 = vector.load %arg9[%c0_85, %c0_86] : memref<1x128xf32, #tpu.memory_space<vmem>>, vector<1x128xf32>
    %503 = vector.broadcast %502 : vector<1x128xf32> to vector<2x128xf32>
    %504 = arith.addf %501, %503 : vector<2x128xf32>
    %cst_87 = arith.constant 0.000000e+00 : f32
    %505 = vector.broadcast %cst_87 : f32 to vector<2x128xf32>
    %506 = arith.maximumf %504, %505 : vector<2x128xf32>
    %c0_88 = arith.constant 0 : index
    %c0_89 = arith.constant 0 : index
    %507 = vector.load %arg10[%c0_88, %c0_89] : memref<128x128xf32, #tpu.memory_space<vmem>>, vector<128x128xf32>
    %cst_90 = arith.constant dense<0.000000e+00> : vector<2x128xf32>
    %508 = tpu.matmul %506, %507, %cst_90 {dimension_numbers = #tpu.dot_dimension_numbers<[1], [0], [0], [1], [0, 0, 1, 1], [], []>} : vector<2x128xf32>, vector<128x128xf32>, vector<2x128xf32> -> vector<2x128xf32>
    %c0_91 = arith.constant 0 : index
    %c0_92 = arith.constant 0 : index
    %509 = vector.load %arg11[%c0_91, %c0_92] : memref<1x128xf32, #tpu.memory_space<vmem>>, vector<1x128xf32>
    %510 = vector.broadcast %509 : vector<1x128xf32> to vector<2x128xf32>
    %511 = arith.addf %508, %510 : vector<2x128xf32>
    %512 = arith.negf %511 : vector<2x128xf32>
    %513 = math.exp %512 : vector<2x128xf32>
    %cst_93 = arith.constant 1.000000e+00 : f32
    %514 = vector.broadcast %cst_93 : f32 to vector<2x128xf32>
    %515 = arith.addf %514, %513 : vector<2x128xf32>
    %516 = arith.divf %514, %515 : vector<2x128xf32>
    %cst_94 = arith.constant 1.000000e+00 : f32
    %517 = vector.broadcast %cst_94 : f32 to vector<2x128xf32>
    %518 = arith.addf %516, %517 : vector<2x128xf32>
    %519 = arith.mulf %496, %518 : vector<2x128xf32>
    %cst_95 = arith.constant 0.000000e+00 : f32
    %520 = vector.broadcast %cst_95 : f32 to vector<2x128xf32>
    %521 = arith.maximumf %519, %520 : vector<2x128xf32>
    %c0_96 = arith.constant 0 : index
    %c0_97 = arith.constant 0 : index
    %522 = vector.load %arg12[%c0_96, %c0_97] : memref<128x128xf32, #tpu.memory_space<vmem>>, vector<128x128xf32>
    %cst_98 = arith.constant dense<0.000000e+00> : vector<2x128xf32>
    %523 = tpu.matmul %521, %522, %cst_98 {dimension_numbers = #tpu.dot_dimension_numbers<[1], [0], [0], [1], [0, 0, 1, 1], [], []>} : vector<2x128xf32>, vector<128x128xf32>, vector<2x128xf32> -> vector<2x128xf32>
    %c0_99 = arith.constant 0 : index
    %c0_100 = arith.constant 0 : index
    %524 = vector.load %arg13[%c0_99, %c0_100] : memref<1x128xf32, #tpu.memory_space<vmem>>, vector<1x128xf32>
    %525 = vector.broadcast %524 : vector<1x128xf32> to vector<2x128xf32>
    %526 = arith.addf %523, %525 : vector<2x128xf32>
    %cst_101 = arith.constant 0.000000e+00 : f32
    %527 = vector.broadcast %cst_101 : f32 to vector<2x128xf32>
    %528 = arith.maximumf %526, %527 : vector<2x128xf32>
    %c0_102 = arith.constant 0 : index
    %c0_103 = arith.constant 0 : index
    %529 = vector.load %arg14[%c0_102, %c0_103] : memref<128x128xf32, #tpu.memory_space<vmem>>, vector<128x128xf32>
    %cst_104 = arith.constant dense<0.000000e+00> : vector<2x128xf32>
    %530 = tpu.matmul %528, %529, %cst_104 {dimension_numbers = #tpu.dot_dimension_numbers<[1], [0], [0], [1], [0, 0, 1, 1], [], []>} : vector<2x128xf32>, vector<128x128xf32>, vector<2x128xf32> -> vector<2x128xf32>
    %c0_105 = arith.constant 0 : index
    %c0_106 = arith.constant 0 : index
    %531 = vector.load %arg15[%c0_105, %c0_106] : memref<1x128xf32, #tpu.memory_space<vmem>>, vector<1x128xf32>
    %532 = vector.broadcast %531 : vector<1x128xf32> to vector<2x128xf32>
    %533 = arith.addf %530, %532 : vector<2x128xf32>
    %c0_107 = arith.constant 0 : index
    %c0_108 = arith.constant 0 : index
    %534 = vector.load %arg16[%c0_107, %c0_108] : memref<2x128xf32, #tpu.memory_space<vmem>>, vector<2x128xf32>
    tpu.vector_store %arg16[%c0_107, %c0_108], %533 {strides = array<i32>} : memref<2x128xf32, #tpu.memory_space<vmem>>, vector<2x128xf32>,
    return
  }
}

</mosaic_0001>

<bundles_post_ra>
// kernel: tpu_custom_call.1
= control target key start
LH: loop header
LB: loop body
LE: loop exit
PB: predicated region body
PF: predicated region fallthrough
CT: control target
= control target key end

     0   :  { %s7542_s0 = inlined_call_operand.hbm [shape: f32[16,16], index: 0, kind: input, shape index: {}]   ;;  %s7543_s1 = inlined_call_operand.hbm [shape: f32[16,384], index: 1, kind: input, shape index: {}]   ;;  %s7544_s2 = inlined_call_operand.vmem [shape: f32[1,384], index: 2, kind: input, shape index: {}]   ;;  %s7545_s3 = inlined_call_operand.hbm [shape: f32[128,768], index: 3, kind: input, shape index: {}]   ;;  %s7546_s4 = inlined_call_operand.hbm [shape: f32[128,384], index: 4, kind: input, shape index: {}]   ;;  %s7547_s5 = inlined_call_operand.vmem [shape: f32[1,384], index: 5, kind: input, shape index: {}]   ;;  %s7548_s6 = inlined_call_operand.vmem [shape: f32[1,128], index: 6, kind: input, shape index: {}]   ;;  %s7549_s7 = inlined_call_operand.vmem [shape: f32[1,128], index: 7, kind: input, shape index: {}]   ;;  %s7550_s8 = inlined_call_operand.hbm [shape: f32[128,128], index: 8, kind: input, shape index: {}]   ;;  %s7551_s9 = inlined_call_operand.vmem [shape: f32[1,128], index: 9, kind: input, shape index: {}]   ;;  %s7552_s10 = inlined_call_operand.hbm [shape: f32[128,128], index: 10, kind: input, shape index: {}]   ;;  %s7553_s11 = inlined_call_operand.vmem [shape: f32[1,128], index: 11, kind: input, shape index: {}]   ;;  %s7554_s12 = inlined_call_operand.hbm [shape: f32[128,128], index: 12, kind: input, shape index: {}]   ;;  %s7555_s13 = inlined_call_operand.vmem [shape: f32[1,128], index: 13, kind: input, shape index: {}]   ;;  %s7556_s14 = inlined_call_operand.hbm [shape: f32[128,128], index: 14, kind: input, shape index: {}]   ;;  %s7557_s15 = inlined_call_operand.vmem [shape: f32[1,128], index: 15, kind: input, shape index: {}]   ;;  %s7558_s16 = inlined_call_operand.hbm [shape: f32[2,128], index: 16, kind: output, shape index: {}]  }
   0x1   :  { %7676 = sst [smem:[#allocation76_spill]] %s7542_s0 }
   0x2   :  { %21 = vsyncpa [#allocation3], 0 }
   0x3   :  { %22 = vsyncpa [#allocation6], 0 }
   0x4   :  { %23 = vsyncpa [#allocation9], 0 }
   0x5   :  { %24 = vsyncpa [#allocation12], 0 }
   0x6   :  { %25 = vsyncpa [#allocation15], 0 }
   0x7   :  { %26 = vsyncpa [#allocation4], 0  ;;  %s6263_s21 = smov [#allocation5]   ;;  %s6053_s25 = scalar_lea.hbm %s7543_s1, 768 }
   0x8   :  { %s44_s22 = sshll.u32 %s6263_s21, 4  ;;  %p6054_p0 = scmp.ne.s32.totalorder %s7543_s1, %s6053_s25  ;;  %s45_s22 = int_to_ptr.vmem [resolvable:$true] %s44_s22 }
   0x9   :  { %p6057_p1 = scmp.lt.u32.totalorder %s6053_s25, %s7543_s1 }
   0xb   :  { %p6059_p2 = pnand %p6057_p1, %p6054_p0 }
   0xd   :  { %6062 = shalt.err (!%p6059_p2)
}
   0xe   :  { %s6063_s30 = scalar_lea.vmem %s45_s22, 768  ;;  %p6068_p4 = scmp.lt.s32.totalorder %s45_s22, %s45_s22 }
   0xf   :  { %p6064_p3 = scmp.ne.s32.totalorder %s45_s22, %s6063_s30  ;;  %p6069_p5 = scmp.lt.s32.totalorder %s6063_s30, %s6063_s30 }
  0x11   :  { %p6070_p6 = por %p6069_p5, %p6068_p4 }
  0x13   :  { %p6071_p7 = pnand %p6070_p6, %p6064_p3 }
  0x15   :  { %6074 = shalt.err (!%p6071_p7)
}
  0x16   :  { %s6264_s0 = smov 384   ;;  %s6265_s17 = smov 24  }
  0x17   :  { %50 = dma.hbm_to_vmem [thread:$0]  %s7543_s1, 768, %s45_s22, [#allocation6], %s6264_s0, %s6264_s0, %s6265_s17  }
  0x18   :  { %s6266_s20 = smov [#allocation8]   ;;  %s6075_s25 = scalar_lea.hbm %s7546_s4, 6144 }
  0x19   :  { %s70_s21 = sshll.u32 %s6266_s20, 4  ;;  %p6076_p8 = scmp.ne.s32.totalorder %s7546_s4, %s6075_s25  ;;  %s71_s21 = int_to_ptr.vmem [resolvable:$true] %s70_s21 }
  0x1a   :  { %p6079_p9 = scmp.lt.u32.totalorder %s6075_s25, %s7546_s4 }
  0x1c   :  { %p6081_p10 = pnand %p6079_p9, %p6076_p8 }
  0x1e   :  { %6084 = shalt.err (!%p6081_p10)
}
  0x1f   :  { %s6085_s30 = scalar_lea.vmem %s71_s21, 6144  ;;  %p6090_p12 = scmp.lt.s32.totalorder %s71_s21, %s71_s21 }
  0x20   :  { %p6086_p11 = scmp.ne.s32.totalorder %s71_s21, %s6085_s30  ;;  %p6091_p13 = scmp.lt.s32.totalorder %s6085_s30, %s6085_s30 }
  0x22   :  { %p6092_p0 = por %p6091_p13, %p6090_p12 }
  0x24   :  { %p6093_p1 = pnand %p6092_p0, %p6086_p11 }
  0x26   :  { %6096 = shalt.err (!%p6093_p1)
}
  0x27   :  { %76 = dma.hbm_to_vmem [thread:$0]  %s7546_s4, 6144, %s71_s21, [#allocation9], %s6264_s0, %s6264_s0, %s6265_s17  }
  0x28   :  { %s6267_s18 = smov [#allocation11]   ;;  %s6268_s20 = smov [#allocation2]  }
  0x29   :  { %s102_s19 = sshll.u32 %s6267_s18, 4  ;;  %s32_s23 = sshll.u32 %s6268_s20, 4  ;;  %s103_s19 = int_to_ptr.vmem [resolvable:$true] %s102_s19  ;;  %s6390_s23 = int_to_ptr.vmem [resolvable:$true] %s32_s23 }
  0x2a   :  { %s6097_s26 = scalar_lea.hbm %s7552_s10, 2048 }
  0x2b   :  { %p6098_p2 = scmp.ne.s32.totalorder %s7552_s10, %s6097_s26  ;;  %p6101_p3 = scmp.lt.u32.totalorder %s6097_s26, %s7552_s10 }
  0x2d   :  { %p6103_p4 = pnand %p6101_p3, %p6098_p2 }
  0x2f   :  { %6106 = shalt.err (!%p6103_p4)
}
  0x30   :  { %s6107_s4 = scalar_lea.vmem %s103_s19, 2048  ;;  %p6112_p6 = scmp.lt.s32.totalorder %s103_s19, %s103_s19 }
  0x31   :  { %p6108_p5 = scmp.ne.s32.totalorder %s103_s19, %s6107_s4  ;;  %p6113_p7 = scmp.lt.s32.totalorder %s6107_s4, %s6107_s4 }
  0x33   :  { %p6114_p8 = por %p6113_p7, %p6112_p6 }
  0x35   :  { %p6115_p9 = pnand %p6114_p8, %p6108_p5 }
  0x37   :  { %6118 = shalt.err (!%p6115_p9)
}
  0x38   :  { %s6269_s0 = smov 128   ;;  %s6270_s17 = smov 8  }
  0x39   :  { %108 = dma.hbm_to_vmem [thread:$0]  %s7552_s10, 2048, %s103_s19, [#allocation12], %s6269_s0, %s6269_s0, %s6270_s17  }
  0x3a   :  { %s7677_s20 = sld [smem:[#allocation76_spill]] }
  0x40   :  { %s6119_s24 = scalar_lea.hbm %s7677_s20, 256 }
  0x41   :  { %p6120_p10 = scmp.ne.s32.totalorder %s7677_s20, %s6119_s24  ;;  %p6123_p11 = scmp.lt.u32.totalorder %s6119_s24, %s7677_s20 }
  0x43   :  { %p6125_p12 = pnand %p6123_p11, %p6120_p10 }
  0x45   :  { %6128 = shalt.err (!%p6125_p12)
}
  0x46   :  { %s6129_s29 = scalar_lea.vmem %s6390_s23, 256  ;;  %p6134_p0 = scmp.lt.s32.totalorder %s6390_s23, %s6390_s23 }
  0x47   :  { %p6130_p13 = scmp.ne.s32.totalorder %s6390_s23, %s6129_s29  ;;  %p6135_p1 = scmp.lt.s32.totalorder %s6129_s29, %s6129_s29 }
  0x49   :  { %p6136_p2 = por %p6135_p1, %p6134_p0 }
  0x4b   :  { %p6137_p3 = pnand %p6136_p2, %p6130_p13 }
  0x4d   :  { %6140 = shalt.err (!%p6137_p3)
}
  0x4e   :  { %38 = dma.hbm_to_vmem [thread:$0]  %s7677_s20, 256, %s6390_s23, [#allocation3], %s6269_s0, %s6269_s0, %s6270_s17  }
  0x4f   :  { %s6271_s30 = smov [#allocation7]   ;;  %s6141_s22 = scalar_lea.hbm %s7545_s3, 12288 }
  0x50   :  { %s58_s4 = sshll.u32 %s6271_s30, 4  ;;  %p6142_p4 = scmp.ne.s32.totalorder %s7545_s3, %s6141_s22  ;;  %s59_s4 = int_to_ptr.vmem [resolvable:$true] %s58_s4 }
  0x51   :  { %p6145_p5 = scmp.lt.u32.totalorder %s6141_s22, %s7545_s3 }
  0x53   :  { %p6147_p6 = pnand %p6145_p5, %p6142_p4 }
  0x55   :  { %6150 = shalt.err (!%p6147_p6)
}
  0x56   :  { %s6151_s27 = scalar_lea.vmem %s59_s4, 12288  ;;  %p6156_p8 = scmp.lt.s32.totalorder %s59_s4, %s59_s4 }
  0x57   :  { %p6152_p7 = scmp.ne.s32.totalorder %s59_s4, %s6151_s27  ;;  %p6157_p9 = scmp.lt.s32.totalorder %s6151_s27, %s6151_s27 }
  0x59   :  { %p6158_p10 = por %p6157_p9, %p6156_p8 }
  0x5b   :  { %p6159_p11 = pnand %p6158_p10, %p6152_p7 }
  0x5d   :  { %6162 = shalt.err (!%p6159_p11)
}
  0x5e   :  { %s6272_s23 = smov 768   ;;  %s6273_s20 = smov 48  }
  0x5f   :  { %64 = dma.hbm_to_vmem [thread:$0]  %s7545_s3, 12288, %s59_s4, [#allocation6], %s6272_s23, %s6272_s23, %s6273_s20  }
  0x60   :  { %s6274_s10 = smov [#allocation10]   ;;  %s6275_s30 = smov [#allocation13]  }
  0x61   :  { %s88_s19 = sshll.u32 %s6274_s10, 4  ;;  %s116_s21 = sshll.u32 %s6275_s30, 4  ;;  %s89_s19 = int_to_ptr.vmem [resolvable:$true] %s88_s19  ;;  %s117_s21 = int_to_ptr.vmem [resolvable:$true] %s116_s21 }
  0x62   :  { %s6163_s18 = scalar_lea.hbm %s7550_s8, 2048 }
  0x63   :  { %p6164_p12 = scmp.ne.s32.totalorder %s7550_s8, %s6163_s18  ;;  %p6167_p13 = scmp.lt.u32.totalorder %s6163_s18, %s7550_s8 }
  0x65   :  { %p6169_p0 = pnand %p6167_p13, %p6164_p12 }
  0x67   :  { %6172 = shalt.err (!%p6169_p0)
}
  0x68   :  { %s6173_s3 = scalar_lea.vmem %s89_s19, 2048  ;;  %p6178_p2 = scmp.lt.s32.totalorder %s89_s19, %s89_s19 }
  0x69   :  { %p6174_p1 = scmp.ne.s32.totalorder %s89_s19, %s6173_s3  ;;  %p6179_p3 = scmp.lt.s32.totalorder %s6173_s3, %s6173_s3 }
  0x6b   :  { %p6180_p4 = por %p6179_p3, %p6178_p2 }
  0x6d   :  { %p6181_p5 = pnand %p6180_p4, %p6174_p1 }
  0x6f   :  { %6184 = shalt.err (!%p6181_p5)
}
  0x70   :  { %94 = dma.hbm_to_vmem [thread:$0]  %s7550_s8, 2048, %s89_s19, [#allocation9], %s6269_s0, %s6269_s0, %s6270_s17  }
  0x71   :  { %s6185_s29 = scalar_lea.hbm %s7554_s12, 2048 }
  0x72   :  { %p6186_p6 = scmp.ne.s32.totalorder %s7554_s12, %s6185_s29  ;;  %p6189_p7 = scmp.lt.u32.totalorder %s6185_s29, %s7554_s12 }
  0x74   :  { %p6191_p8 = pnand %p6189_p7, %p6186_p6 }
  0x76   :  { %6194 = shalt.err (!%p6191_p8)
}
  0x77   :  { %s6195_s18 = scalar_lea.vmem %s117_s21, 2048  ;;  %p6200_p10 = scmp.lt.s32.totalorder %s117_s21, %s117_s21 }
  0x78   :  { %p6196_p9 = scmp.ne.s32.totalorder %s117_s21, %s6195_s18  ;;  %p6201_p11 = scmp.lt.s32.totalorder %s6195_s18, %s6195_s18 }
  0x7a   :  { %p6202_p12 = por %p6201_p11, %p6200_p10 }
  0x7c   :  { %p6203_p13 = pnand %p6202_p12, %p6196_p9 }
  0x7e   :  { %6206 = shalt.err (!%p6203_p13)
}
  0x7f   :  { %122 = dma.hbm_to_vmem [thread:$0]  %s7554_s12, 2048, %s117_s21, [#allocation12], %s6269_s0, %s6269_s0, %s6270_s17  }
  0x80   :  { %s6276_s24 = smov [#allocation14]   ;;  %s6207_s3 = scalar_lea.hbm %s7556_s14, 2048 }
  0x81   :  { %s130_s25 = sshll.u32 %s6276_s24, 4  ;;  %p6208_p0 = scmp.ne.s32.totalorder %s7556_s14, %s6207_s3  ;;  %s131_s25 = int_to_ptr.vmem [resolvable:$true] %s130_s25 }
  0x82   :  { %p6211_p1 = scmp.lt.u32.totalorder %s6207_s3, %s7556_s14 }
  0x84   :  { %p6213_p2 = pnand %p6211_p1, %p6208_p0 }
  0x86   :  { %6216 = shalt.err (!%p6213_p2)
}
  0x87   :  { %s6217_s29 = scalar_lea.vmem %s131_s25, 2048  ;;  %p6222_p4 = scmp.lt.s32.totalorder %s131_s25, %s131_s25 }
  0x88   :  { %p6218_p3 = scmp.ne.s32.totalorder %s131_s25, %s6217_s29  ;;  %p6223_p5 = scmp.lt.s32.totalorder %s6217_s29, %s6217_s29 }
  0x8a   :  { %p6224_p6 = por %p6223_p5, %p6222_p4 }
  0x8c   :  { %p6225_p7 = pnand %p6224_p6, %p6218_p3 }
  0x8e   :  { %6228 = shalt.err (!%p6225_p7)
}
  0x8f   :  { %136 = dma.hbm_to_vmem [thread:$0]  %s7556_s14, 2048, %s131_s25, [#allocation15], %s6269_s0, %s6269_s0, %s6270_s17  }
  0x90   :  { %6251 = dma.done.wait [#allocation3], 256  }
  0x91   :  { %6252 = vsyncadd [#allocation3], 4294967040 }
  0x92   :  { %6253 = dma.done.wait [#allocation6], 13056  }
  0x93   :  { %6254 = vsyncadd [#allocation6], 4294954240 }
  0x94   :  { %6255 = dma.done.wait [#allocation9], 8192  }
  0x95   :  { %6256 = vsyncadd [#allocation9], 4294959104 }
  0x96   :  { %6257 = dma.done.wait [#allocation12], 4096  }
  0x97   :  { %6258 = vsyncadd [#allocation12], 4294963200 }
  0x98   :  { %6259 = dma.done.wait [#allocation15], 2048  }
  0x99   :  { %6260 = vsyncadd [#allocation15], 4294965248  ;;  %v7563_v0 = vmov 0.0   ;;  %v166_v1 = vld [vmem:[#allocation5 + $0x8] sm:$0xff]  ;;  %v169_v2 = vld [vmem:[#allocation5 + $0x20] sm:$0xff]  ;;  %vm188_vm0 = vcmask 130048  }
  0x9a   :  { %259 = vmatprep.mubr.f32.mxu1 %v7563_v0  ;;  %603 = vmatprep.mubr.f32.mxu0 %v7563_v0  ;;  %v165_v3 = vld [vmem:[#allocation5] sm:$0xff]  ;;  %v4636_v4 = vpack.c.bf16 %v169_v2, %v166_v1  ;;  %v168_v5 = vld [vmem:[#allocation5 + $0x18] sm:$0xff]  ;;  %v167_v6 = vld [vmem:[#allocation5 + $0x10] sm:$0xff]  ;;  %vm6279_vm1 = vmmov 0   ;;  %s6280_s23 = smov [#allocation16]  }
  0x9b   :  { %v4638_v7 = vpack.c.bf16 %v168_v5, %v165_v3  ;;  %v170_v8 = vld [vmem:[#allocation5 + $0x28] sm:$0xff]  ;;  %v163_v10 = vld [vmem:[#allocation2] sm:$0xff]  ;;  %v164_v11 = vld [vmem:[#allocation2 + $0x8] sm:$0xff]  ;;  %s3997_s20 = sshll.u32 %s6280_s23, 4  ;;  %s3998_s20 = int_to_ptr.vmem [resolvable:$true] %s3997_s20 }
  0x9c   :  { %4637 = vmatprep.subr.bf16.mxu1 %v4636_v4  ;;  %v4640_v9 = vpack.c.bf16 %v170_v8, %v167_v6  ;;  %v348_v12 = vld [vmem:[#allocation7 + $0x8] sm:$0xff]  ;;  %v354_v13 = vld [vmem:[#allocation7 + $0x38] sm:$0xff]  ;;  %v347_v15 = vld [vmem:[#allocation7] sm:$0xff]  ;;  %s6229_s28 = scalar_lea.vmem %s3998_s20, 32  ;;  %p6234_p9 = scmp.lt.s32.totalorder %s3998_s20, %s3998_s20 }
  0x9d   :  { %4639 = vmatpush1.bf16.msra.mxu1 %v4638_v7  ;;  %v6488_v14 = vpack.c.bf16 %v354_v13, %v348_v12  ;;  %v353_v16 = vld [vmem:[#allocation7 + $0x30] sm:$0xff]  ;;  %v350_v17 = vld [vmem:[#allocation7 + $0x18] sm:$0xff]  ;;  %v356_v19 = vld [vmem:[#allocation7 + $0x48] sm:$0xff]  ;;  %p6230_p8 = scmp.ne.s32.totalorder %s3998_s20, %s6229_s28  ;;  %p6235_p10 = scmp.lt.s32.totalorder %s6229_s28, %s6229_s28 }
  0x9e   :  { %4641 = vmatprep.subr.bf16.mxu1 %v4640_v9  ;;  %v6490_v18 = vpack.c.bf16 %v353_v16, %v347_v15  ;;  %v349_v20 = vld [vmem:[#allocation7 + $0x10] sm:$0xff]  ;;  %v355_v21 = vld [vmem:[#allocation7 + $0x40] sm:$0xff]  ;;  %v6493_v22 = vpack.c.bf16 %v356_v19, %v350_v17  ;;  %v360_v24 = vld [vmem:[#allocation7 + $0x68] sm:$0xff] }
  0x9f   :  { %4645 = vmatprep.subr.bf16.mxu0 %v6488_v14  ;;  %v6495_v23 = vpack.c.bf16 %v355_v21, %v349_v20  ;;  %v366_v25 = vld [vmem:[#allocation7 + $0x98] sm:$0xff]  ;;  %v359_v27 = vld [vmem:[#allocation7 + $0x60] sm:$0xff]  ;;  %v365_v28 = vld [vmem:[#allocation7 + $0x90] sm:$0xff]  ;;  %p6236_p11 = por %p6235_p10, %p6234_p9 }
  0xa0   :  { %4010 = vmatmul.mubr.msk.f32.vlgmr.msra.gmra.mrb[0].mxu1 %vm188_vm0, %v163_v10  ;;  %7678 = vst [vmem:[#allocation23_spill] sm:$0xff] %v6490_v18  ;;  %7679 = vst [vmem:[#allocation24_spill] sm:$0xff] %v6493_v22  ;;  %4647 = vmatpush1.bf16.msra.mxu0 %v6490_v18  ;;  %v6499_v26 = vpack.c.bf16 %v366_v25, %v360_v24  ;;  %v362_v29 = vld [vmem:[#allocation7 + $0x78] sm:$0xff]  ;;  %v6502_v30 = vpack.c.bf16 %v365_v28, %v359_v27  ;;  %v368_v31 = vld [vmem:[#allocation7 + $0xa8] sm:$0xff] }
  0xa1   :  { %4643 = vmatpush3.bf16.msra.mxu1 %v4640_v9  ;;  %265 = vmatprep.mubr.f32.mxu1 %v7563_v0  ;;  %7680 = vst [vmem:[#allocation25_spill] sm:$0xff] %v6495_v23  ;;  %v361_v32 = vld [vmem:[#allocation7 + $0x70] sm:$0xff]  ;;  %v367_v33 = vld [vmem:[#allocation7 + $0xa0] sm:$0xff]  ;;  %v6505_v34 = vpack.c.bf16 %v368_v31, %v362_v29  ;;  %v372_v36 = vld [vmem:[#allocation7 + $0xc8] sm:$0xff]  ;;  %p6237_p12 = pnand %p6236_p11, %p6230_p8 }
  0xa2   :  { %4677 = vmatprep.subr.bf16.mxu1 %v6493_v22  ;;  %7681 = vst [vmem:[#allocation26_spill] sm:$0xff] %v6499_v26  ;;  %7682 = vst [vmem:[#allocation27_spill] sm:$0xff] %v6502_v30  ;;  %4649 = vmatprep.subr.bf16.mxu0 %v6499_v26  ;;  %v6507_v35 = vpack.c.bf16 %v367_v33, %v361_v32  ;;  %v378_v37 = vld [vmem:[#allocation7 + $0xf8] sm:$0xff]  ;;  %v371_v38 = vld [vmem:[#allocation7 + $0xc0] sm:$0xff] }
  0xa3   :  { %7683 = vst [vmem:[#allocation28_spill] sm:$0xff] %v6505_v34  ;;  %v6511_v39 = vpack.c.bf16 %v378_v37, %v372_v36  ;;  %v377_v40 = vld [vmem:[#allocation7 + $0xf0] sm:$0xff]  ;;  %v374_v41 = vld [vmem:[#allocation7 + $0xd8] sm:$0xff]  ;;  %v380_v42 = vld [vmem:[#allocation7 + $0x108] sm:$0xff] }
  0xa4   :  { %4011 = vmatmul.mubr.msk.f32.gmra.mrb[2].mxu1 %vm188_vm0, %v164_v11  ;;  %7684 = vst [vmem:[#allocation29_spill] sm:$0xff] %v6507_v35  ;;  %4651 = vmatpush1.bf16.msra.mxu0 %v6502_v30  ;;  %v6514_v43 = vpack.c.bf16 %v377_v40, %v371_v38  ;;  %v6516_v44 = vpack.c.bf16 %v380_v42, %v374_v41  ;;  %v373_v45 = vld [vmem:[#allocation7 + $0xd0] sm:$0xff]  ;;  %v379_v46 = vld [vmem:[#allocation7 + $0x100] sm:$0xff]  ;;  %v384_v47 = vld [vmem:[#allocation7 + $0x128] sm:$0xff] }
  0xa5   :  { %4248 = vmatprep.mubr.msk.f32.mxu1 %vm188_vm0, %v163_v10  ;;  %7685 = vst [vmem:[#allocation30_spill] sm:$0xff] %v6511_v39  ;;  %4653 = vmatprep.subr.bf16.mxu0 %v6511_v39  ;;  %v6519_v48 = vpack.c.bf16 %v379_v46, %v373_v45  ;;  %v390_v49 = vld [vmem:[#allocation7 + $0x158] sm:$0xff]  ;;  %v383_v50 = vld [vmem:[#allocation7 + $0x120] sm:$0xff]  ;;  %v389_v51 = vld [vmem:[#allocation7 + $0x150] sm:$0xff] }
  0xa6   :  { %7686 = vst [vmem:[#allocation31_spill] sm:$0xff] %v6514_v43  ;;  %7687 = vst [vmem:[#allocation32_spill] sm:$0xff] %v6516_v44  ;;  %v6523_v52 = vpack.c.bf16 %v390_v49, %v384_v47  ;;  %v6525_v53 = vpack.c.bf16 %v389_v51, %v383_v50  ;;  %v386_v54 = vld [vmem:[#allocation7 + $0x138] sm:$0xff]  ;;  %v392_v55 = vld [vmem:[#allocation7 + $0x168] sm:$0xff] }
  0xa7   :  { %7688 = vst [vmem:[#allocation33_spill] sm:$0xff] %v6519_v48  ;;  %v6527_v56 = vpack.c.bf16 %v392_v55, %v386_v54  ;;  %v385_v57 = vld [vmem:[#allocation7 + $0x130] sm:$0xff]  ;;  %v391_v58 = vld [vmem:[#allocation7 + $0x160] sm:$0xff]  ;;  %v396_v60 = vld [vmem:[#allocation7 + $0x188] sm:$0xff] }
  0xa8   :  { %4249 = vmatmul.mubr.msk.f32.vlgmr.msra.gmra.mrb[4].mxu1 %vm188_vm0, %v164_v11  ;;  %4655 = vmatpush1.bf16.msra.mxu0 %v6514_v43  ;;  %7689 = vst [vmem:[#allocation34_spill] sm:$0xff] %v6523_v52  ;;  %7690 = vst [vmem:[#allocation35_spill] sm:$0xff] %v6525_v53  ;;  %v6532_v59 = vpack.c.bf16 %v391_v58, %v385_v57  ;;  %v402_v61 = vld [vmem:[#allocation7 + $0x1b8] sm:$0xff]  ;;  %v395_v63 = vld [vmem:[#allocation7 + $0x180] sm:$0xff] }
  0xa9   :  { %674 = vmatprep.mubr.f32.mxu1 %v7563_v0  ;;  %4679 = vmatpush1.bf16.msra.mxu1 %v6495_v23  ;;  %7691 = vst [vmem:[#allocation36_spill] sm:$0xff] %v6527_v56  ;;  %v6535_v62 = vpack.c.bf16 %v402_v61, %v396_v60  ;;  %v401_v1 = vld [vmem:[#allocation7 + $0x1b0] sm:$0xff]  ;;  %v398_v2 = vld [vmem:[#allocation7 + $0x198] sm:$0xff]  ;;  %v404_v4 = vld [vmem:[#allocation7 + $0x1c8] sm:$0xff] }
  0xaa   :  { %4681 = vmatprep.subr.bf16.mxu1 %v6505_v34  ;;  %4657 = vmatprep.subr.bf16.mxu0 %v6523_v52  ;;  %7692 = vst [vmem:[#allocation37_spill] sm:$0xff] %v6532_v59  ;;  %v6538_v3 = vpack.c.bf16 %v401_v1, %v395_v63  ;;  %v397_v5 = vld [vmem:[#allocation7 + $0x190] sm:$0xff]  ;;  %v403_v6 = vld [vmem:[#allocation7 + $0x1c0] sm:$0xff]  ;;  %v6541_v7 = vpack.c.bf16 %v404_v4, %v398_v2  ;;  %v408_v9 = vld [vmem:[#allocation7 + $0x1e8] sm:$0xff]  ;;  %v173_v2 = vlaneseq }
  0xab   :  { %7693 = vst [vmem:[#allocation38_spill] sm:$0xff] %v6535_v62  ;;  %v6543_v8 = vpack.c.bf16 %v403_v6, %v397_v5  ;;  %v414_v10 = vld [vmem:[#allocation7 + $0x218] sm:$0xff]  ;;  %v407_v12 = vld [vmem:[#allocation7 + $0x1e0] sm:$0xff]  ;;  %v413_v13 = vld [vmem:[#allocation7 + $0x210] sm:$0xff] }
  0xac   :  { %4659 = vmatpush1.bf16.msra.mxu0 %v6525_v53  ;;  %7694 = vst [vmem:[#allocation39_spill] sm:$0xff] %v6538_v3  ;;  %7695 = vst [vmem:[#allocation40_spill] sm:$0xff] %v6541_v7  ;;  %v6547_v11 = vpack.c.bf16 %v414_v10, %v408_v9  ;;  %v410_v15 = vld [vmem:[#allocation7 + $0x1f8] sm:$0xff]  ;;  %v6550_v16 = vpack.c.bf16 %v413_v13, %v407_v12  ;;  %v416_v17 = vld [vmem:[#allocation7 + $0x228] sm:$0xff]  ;;  %v6588_v4 = vshrl.u32 %v173_v2, 7 }
  0xad   :  { %4683 = vmatpush1.bf16.msra.mxu1 %v6507_v35  ;;  %4661 = vmatprep.subr.bf16.mxu0 %v6535_v62  ;;  %7696 = vst [vmem:[#allocation41_spill] sm:$0xff] %v6543_v8  ;;  %v409_v19 = vld [vmem:[#allocation7 + $0x1f0] sm:$0xff]  ;;  %v415_v20 = vld [vmem:[#allocation7 + $0x220] sm:$0xff]  ;;  %v6553_v21 = vpack.c.bf16 %v416_v17, %v410_v15  ;;  %v420_v25 = vld [vmem:[#allocation7 + $0x248] sm:$0xff] }
  0xae   :  { %4685 = vmatprep.subr.bf16.mxu1 %v6516_v44  ;;  %7697 = vst [vmem:[#allocation42_spill] sm:$0xff] %v6547_v11  ;;  %7698 = vst [vmem:[#allocation43_spill] sm:$0xff] %v6550_v16  ;;  %v6555_v24 = vpack.c.bf16 %v415_v20, %v409_v19  ;;  %v426_v27 = vld [vmem:[#allocation7 + $0x278] sm:$0xff]  ;;  %v419_v28 = vld [vmem:[#allocation7 + $0x240] sm:$0xff]  ;;  %v7562_v5 = vsub.s32 0, %v6588_v4  ;;  %v7561_v9 = vsub.s32 1, %v6588_v4 }
  0xaf   :  { %7699 = vst [vmem:[#allocation44_spill] sm:$0xff] %v6553_v21  ;;  %v6558_v29 = vpack.c.bf16 %v426_v27, %v420_v25  ;;  %v425_v31 = vld [vmem:[#allocation7 + $0x270] sm:$0xff]  ;;  %v422_v32 = vld [vmem:[#allocation7 + $0x258] sm:$0xff]  ;;  %v428_v33 = vld [vmem:[#allocation7 + $0x288] sm:$0xff]  ;;  %v7560_v19 = vsub.s32 2, %v6588_v4 }
  0xb0   :  { %4663 = vmatpush1.bf16.msra.mxu0 %v6538_v3  ;;  %7700 = vst [vmem:[#allocation45_spill] sm:$0xff] %v6555_v24  ;;  %v6561_v36 = vpack.c.bf16 %v425_v31, %v419_v28  ;;  %v6563_v37 = vpack.c.bf16 %v428_v33, %v422_v32  ;;  %v421_v38 = vld [vmem:[#allocation7 + $0x250] sm:$0xff]  ;;  %v427_v40 = vld [vmem:[#allocation7 + $0x280] sm:$0xff]  ;;  %v432_v41 = vld [vmem:[#allocation7 + $0x2a8] sm:$0xff] }
  0xb1   :  { %4687 = vmatpush1.bf16.msra.mxu1 %v6519_v48  ;;  %4665 = vmatprep.subr.bf16.mxu0 %v6547_v11  ;;  %7701 = vst [vmem:[#allocation46_spill] sm:$0xff] %v6558_v29  ;;  %v6567_v42 = vpack.c.bf16 %v427_v40, %v421_v38  ;;  %v438_v45 = vld [vmem:[#allocation7 + $0x2d8] sm:$0xff]  ;;  %v431_v46 = vld [vmem:[#allocation7 + $0x2a0] sm:$0xff]  ;;  %v437_v47 = vld [vmem:[#allocation7 + $0x2d0] sm:$0xff] }
  0xb2   :  { %4689 = vmatprep.subr.bf16.mxu1 %v6527_v56  ;;  %7702 = vst [vmem:[#allocation47_spill] sm:$0xff] %v6561_v36  ;;  %7703 = vst [vmem:[#allocation48_spill] sm:$0xff] %v6563_v37  ;;  %v6570_v49 = vpack.c.bf16 %v438_v45, %v432_v41  ;;  %v434_v50 = vld [vmem:[#allocation7 + $0x2b8] sm:$0xff]  ;;  %v440_v51 = vld [vmem:[#allocation7 + $0x2e8] sm:$0xff]  ;;  %v6573_v55 = vpack.c.bf16 %v437_v47, %v431_v46 }
  0xb3   :  { %7704 = vst [vmem:[#allocation49_spill] sm:$0xff] %v6567_v42  ;;  %v433_v54 = vld [vmem:[#allocation7 + $0x2b0] sm:$0xff]  ;;  %v6575_v57 = vpack.c.bf16 %v440_v51, %v434_v50  ;;  %v439_v58 = vld [vmem:[#allocation7 + $0x2e0] sm:$0xff]  ;;  %v352_v60 = vld [vmem:[#allocation7 + $0x28] sm:$0xff] }
  0xb4   :  { %4667 = vmatpush1.bf16.msra.mxu0 %v6550_v16  ;;  %7705 = vst [vmem:[#allocation50_spill] sm:$0xff] %v6570_v49  ;;  %7706 = vst [vmem:[#allocation51_spill] sm:$0xff] %v6573_v55  ;;  %v358_v61 = vld [vmem:[#allocation7 + $0x58] sm:$0xff]  ;;  %v6581_v1 = vpack.c.bf16 %v439_v58, %v433_v54  ;;  %v171_v6 = vld [vmem:[%s7544_s2] sm:$0x7] }
  0xb5   :  { %4691 = vmatpush1.bf16.msra.mxu1 %v6532_v59  ;;  %4669 = vmatprep.subr.bf16.mxu0 %v6558_v29  ;;  %7707 = vst [vmem:[#allocation52_spill] sm:$0xff] %v6575_v57  ;;  %v6578_v63 = vpack.c.bf16 %v358_v61, %v352_v60  ;;  %v176_v10 = vrot.slane %v171_v6, %v7562_v5  ;;  %v6617_v54 = vld [vmem:[%s7548_s6] ss:$0 sm:$0xff] }
  0xb6   :  { %4693 = vmatprep.subr.bf16.mxu1 %v6541_v7  ;;  %7709 = vst [vmem:[#allocation54_spill] sm:$0xff] %v6581_v1  ;;  %v180_v13 = vrot.slane %v171_v6, %v7561_v9  ;;  %v184_v32 = vrot.slane %v171_v6, %v7560_v19  ;;  %7715 = vst [vmem:[#allocation60_spill] sm:$0xff] %v6617_v54  ;;  %v429_v9 = vld [vmem:[#allocation7 + $0x290] sm:$0xff] }
  0xb7   :  { %7708 = vst [vmem:[#allocation53_spill] sm:$0xff] %v6578_v63 }
  0xb8   :  { %4671 = vmatpush1.bf16.msra.mxu0 %v6561_v36 }
  0xb9   :  { %4695 = vmatpush1.bf16.msra.mxu1 %v6543_v8  ;;  %4673 = vmatprep.subr.bf16.mxu0 %v6570_v49 }
  0xba   :  { %4697 = vmatprep.subr.bf16.mxu1 %v6553_v21 }
  0xbc   :  { %4675 = vmatpush1.bf16.msra.mxu0 %v6573_v55 }
  0xbd   :  { %4699 = vmatpush1.bf16.msra.mxu1 %v6555_v24  ;;  %4709 = vmatprep.subr.bf16.mxu0 %v6578_v63 }
  0xbe   :  { %4701 = vmatprep.subr.bf16.mxu1 %v6563_v37 }
  0xc1   :  { %4703 = vmatpush1.bf16.msra.mxu1 %v6567_v42 }
  0xc2   :  { %4705 = vmatprep.subr.bf16.mxu1 %v6575_v57 }
  0xc5   :  { %4707 = vmatpush1.bf16.msra.mxu1 %v6581_v1 }
  0xc6   :  { %4741 = vmatprep.subr.bf16.mxu1 %v6488_v14 }
 0x173   :  { %v261_v12 = vpop.f32.mrb[0].mxu1 }
 0x174   :  { %v6599_v15 = vadd.f32 %v261_v12, %v176_v10  ;;  %v263_v17 = vpop.f32.mrb[1].mxu1  ;;  %v357_v12 = vld [vmem:[#allocation7 + $0x50] sm:$0xff] }
 0x175   :  { %v6603_v25 = vadd.f32 %v263_v17, %v180_v13  ;;  %v370_v17 = vld [vmem:[#allocation7 + $0xb8] sm:$0xff] }
 0x176   :  { %7710 = vst [vmem:[#allocation55_spill] sm:$0xff] %v6599_v15  ;;  %v4016_v20 = vmul.f32 -1.442695, %v6599_v15 }
 0x177   :  { %7711 = vst [vmem:[#allocation56_spill] sm:$0xff] %v6603_v25  ;;  %v267_v27 = vpop.f32.mrb[2].mxu1  ;;  %v4017_v38 = vmul.f32 -1.442695, %v6603_v25 }
 0x178   :  { %5886 = vpow2.f32 %v4016_v20  ;;  %v6605_v28 = vadd.f32 %v267_v27, %v176_v10  ;;  %v269_v31 = vpop.f32.mrb[3].mxu1  ;;  %v351_v10 = vld [vmem:[#allocation7 + $0x20] sm:$0xff] }
 0x179   :  { %v6609_v33 = vadd.f32 %v269_v31, %v180_v13  ;;  %5888 = vpow2.f32 %v4017_v38  ;;  %v364_v13 = vld [vmem:[#allocation7 + $0x88] sm:$0xff]  ;;  %v6623_v31 = vpack.c.bf16 %v357_v12, %v351_v10 }
 0x17a   :  { %7712 = vst [vmem:[#allocation57_spill] sm:$0xff] %v6605_v28 }
 0x17b   :  { %7713 = vst [vmem:[#allocation58_spill] sm:$0xff] %v6609_v33  ;;  %v4250_v40 = vpop.f32.mrb[4].mxu1 }
 0x17c   :  { %v6612_v41 = vadd.f32 %v4250_v40, %v184_v32  ;;  %v338_v45 = vpop.f32.mrb[5].mxu1  ;;  %v363_v40 = vld [vmem:[#allocation7 + $0x80] sm:$0xff] }
 0x17d   :  { %v6619_v58 = vadd.f32 %v338_v45, %v184_v32  ;;  %v6627_v32 = vpack.c.bf16 %v370_v17, %v364_v13  ;;  %v369_v45 = vld [vmem:[#allocation7 + $0xb0] sm:$0xff]  ;;  %v387_v13 = vld [vmem:[#allocation7 + $0x140] sm:$0xff] }
 0x17e   :  { %7714 = vst [vmem:[#allocation59_spill] sm:$0xff] %v6612_v41  ;;  %v393_v17 = vld [vmem:[#allocation7 + $0x170] sm:$0xff] }
 0x17f   :  { %7716 = vst [vmem:[#allocation61_spill] sm:$0xff] %v6619_v58 }
 0x182   :  { %v5887_v46 = vpop.eup %5886 }
 0x183   :  { %v525_v47 = vadd.f32 1.0, %v5887_v46  ;;  %v5889_v50 = vpop.eup %5888  ;;  %v376_v46 = vld [vmem:[#allocation7 + $0xe8] sm:$0xff] }
 0x184   :  { %v531_v51 = vadd.f32 1.0, %v5889_v50  ;;  %v6632_v50 = vpack.c.bf16 %v369_v45, %v363_v40  ;;  %v6650_v40 = vpack.c.bf16 %v393_v17, %v387_v13  ;;  %v411_v13 = vld [vmem:[#allocation7 + $0x200] sm:$0xff]  ;;  %v417_v17 = vld [vmem:[#allocation7 + $0x230] sm:$0xff] }
 0x185   :  { %5890 = vrcp.f32 %v525_v47  ;;  %v382_v47 = vld [vmem:[#allocation7 + $0x118] sm:$0xff]  ;;  %v6666_v19 = vpack.c.bf16 %v417_v17, %v411_v13  ;;  %v435_v17 = vld [vmem:[#allocation7 + $0x2c0] sm:$0xff] }
 0x186   :  { %5892 = vrcp.f32 %v531_v51  ;;  %v6636_v51 = vpack.c.bf16 %v382_v47, %v376_v46  ;;  %v399_v46 = vld [vmem:[#allocation7 + $0x1a0] sm:$0xff]  ;;  %v405_v47 = vld [vmem:[#allocation7 + $0x1d0] sm:$0xff] }
 0x18f   :  { %v5891_v60 = vpop.eup %5890 }
 0x190   :  { %v534_v61 = vmul.f32 %v5891_v60, %v6617_v54  ;;  %v5893_v6 = vpop.eup %5892  ;;  %v375_v60 = vld [vmem:[#allocation7 + $0xe0] sm:$0xff] }
 0x191   :  { %v537_v20 = vsub.f32 1.0, %v5893_v6  ;;  %v394_v6 = vld [vmem:[#allocation7 + $0x178] sm:$0xff] }
 0x192   :  { %v535_v2 = vadd.f32 %v534_v61, %v6619_v58  ;;  %v381_v61 = vld [vmem:[#allocation7 + $0x110] sm:$0xff] }
 0x193   :  { %v6642_v10 = vpack.c.bf16 %v381_v61, %v375_v60  ;;  %v412_v60 = vld [vmem:[#allocation7 + $0x208] sm:$0xff]  ;;  %v418_v61 = vld [vmem:[#allocation7 + $0x238] sm:$0xff] }
 0x194   :  { %5894 = vtanh.f32 %v535_v2  ;;  %v388_v2 = vld [vmem:[#allocation7 + $0x148] sm:$0xff] }
 0x195   :  { %v6645_v12 = vpack.c.bf16 %v394_v6, %v388_v2  ;;  %v6658_v2 = vpack.c.bf16 %v405_v47, %v399_v46  ;;  %v6661_v6 = vpack.c.bf16 %v418_v61, %v412_v60  ;;  %v423_v47 = vld [vmem:[#allocation7 + $0x260] sm:$0xff]  ;;  %v436_v60 = vld [vmem:[#allocation7 + $0x2c8] sm:$0xff]  ;;  %v442_v61 = vld [vmem:[#allocation7 + $0x2f8] sm:$0xff] }
 0x196   :  { %v6674_v5 = vpack.c.bf16 %v429_v9, %v423_v47  ;;  %v6677_v13 = vpack.c.bf16 %v442_v61, %v436_v60  ;;  %v444_v9 = vld [vmem:[#allocation8 + $0x8] sm:$0xff]  ;;  %v491_v60 = vld [vmem:[%s7547_s5] sm:$0x7]  ;;  %v7720_v61 = vsub.s32 0, %v6588_v4 }
 0x197   :  { %7717 = vst [vmem:[#allocation62_spill] sm:$0xff] %v6645_v12 }
 0x19e   :  { %v5895_v27 = vpop.eup %5894 }
 0x19f   :  { %v6625_v38 = vmul.f32 %v5895_v27, %v537_v20  ;;  %v400_v20 = vld [vmem:[#allocation7 + $0x1a8] sm:$0xff]  ;;  %v406_v27 = vld [vmem:[#allocation7 + $0x1d8] sm:$0xff] }
 0x1a0   :  { %v6653_v45 = vpack.c.bf16 %v406_v27, %v400_v20  ;;  %v424_v20 = vld [vmem:[#allocation7 + $0x268] sm:$0xff]  ;;  %v430_v27 = vld [vmem:[#allocation7 + $0x298] sm:$0xff] }
 0x1a1   :  { %604 = vmatmul.mubr.f32.vlgmr.msra.gmra.mrb[0].mxu0 %v6625_v38  ;;  %675 = vmatmul.mubr.f32.vlgmr.msra.gmra.mrb[6].mxu1 %v6625_v38  ;;  %v6669_v46 = vpack.c.bf16 %v430_v27, %v424_v20  ;;  %v447_v27 = vld [vmem:[#allocation8 + $0x20] sm:$0xff] }
 0x1a2   :  { %4711 = vmatpush1.bf16.msra.mxu0 %v6623_v31  ;;  %745 = vmatprep.mubr.f32.mxu0 %v7563_v0  ;;  %v6708_v47 = vpack.c.bf16 %v447_v27, %v444_v9 }
 0x1a3   :  { %4713 = vmatprep.subr.bf16.mxu0 %v6627_v32  ;;  %4743 = vmatpush1.bf16.msra.mxu1 %v6490_v18 }
 0x1a4   :  { %4745 = vmatprep.subr.bf16.mxu1 %v6499_v26  ;;  %879 = vmatprep.mubr.f32.mxu1 %v7563_v0  ;;  %v441_v0 = vld [vmem:[#allocation7 + $0x2f0] sm:$0xff]  ;;  %7719 = vst [vmem:[#allocation63_spill] sm:$0xff] %v6708_v47 }
 0x1a5   :  { %v6682_v20 = vpack.c.bf16 %v441_v0, %v435_v17  ;;  %v7718_v0 = vmov 0.0   ;;  %v6716_v17 = vrot.slane %v491_v60, %v7720_v61 }
 0x1a6   :  { %4715 = vmatpush1.bf16.msra.mxu0 %v6632_v50 }
 0x1a7   :  { %4717 = vmatprep.subr.bf16.mxu0 %v6636_v51  ;;  %4747 = vmatpush1.bf16.msra.mxu1 %v6502_v30  ;;  %7721 = vst [vmem:[#allocation64_spill] sm:$0xff] %v6716_v17 }
 0x1a8   :  { %4749 = vmatprep.subr.bf16.mxu1 %v6511_v39 }
 0x1aa   :  { %4719 = vmatpush1.bf16.msra.mxu0 %v6642_v10 }
 0x1ab   :  { %4721 = vmatprep.subr.bf16.mxu0 %v6645_v12  ;;  %4751 = vmatpush1.bf16.msra.mxu1 %v6514_v43 }
 0x1ac   :  { %4753 = vmatprep.subr.bf16.mxu1 %v6523_v52 }
 0x1ae   :  { %4723 = vmatpush1.bf16.msra.mxu0 %v6650_v40 }
 0x1af   :  { %4725 = vmatprep.subr.bf16.mxu0 %v6653_v45  ;;  %4755 = vmatpush1.bf16.msra.mxu1 %v6525_v53 }
 0x1b0   :  { %4757 = vmatprep.subr.bf16.mxu1 %v6535_v62 }
 0x1b2   :  { %4727 = vmatpush1.bf16.msra.mxu0 %v6658_v2 }
 0x1b3   :  { %4729 = vmatprep.subr.bf16.mxu0 %v6661_v6  ;;  %4759 = vmatpush1.bf16.msra.mxu1 %v6538_v3 }
 0x1b4   :  { %4761 = vmatprep.subr.bf16.mxu1 %v6547_v11 }
 0x1b6   :  { %4731 = vmatpush1.bf16.msra.mxu0 %v6666_v19 }
 0x1b7   :  { %4733 = vmatprep.subr.bf16.mxu0 %v6669_v46  ;;  %4763 = vmatpush1.bf16.msra.mxu1 %v6550_v16 }
 0x1b8   :  { %4765 = vmatprep.subr.bf16.mxu1 %v6558_v29 }
 0x1ba   :  { %4735 = vmatpush1.bf16.msra.mxu0 %v6674_v5 }
 0x1bb   :  { %4737 = vmatprep.subr.bf16.mxu0 %v6677_v13  ;;  %4767 = vmatpush1.bf16.msra.mxu1 %v6561_v36 }
 0x1bc   :  { %4769 = vmatprep.subr.bf16.mxu1 %v6570_v49 }
 0x1be   :  { %4739 = vmatpush1.bf16.msra.mxu0 %v6682_v20 }
 0x1bf   :  { %4773 = vmatprep.subr.bf16.mxu0 %v6493_v22  ;;  %4771 = vmatpush1.bf16.msra.mxu1 %v6573_v55 }
 0x1c0   :  { %4805 = vmatprep.subr.bf16.mxu1 %v6578_v63 }
 0x1c1   :  { %746 = vmatmul.mubr.f32.vlgmr.msra.gmra.mrb[2].mxu0 %v6625_v38 }
 0x1c2   :  { %4775 = vmatpush1.bf16.msra.mxu0 %v6495_v23  ;;  %950 = vmatprep.mubr.f32.mxu0 %v7718_v0 }
 0x1c3   :  { %4777 = vmatprep.subr.bf16.mxu0 %v6505_v34 }
 0x1c6   :  { %4779 = vmatpush1.bf16.msra.mxu0 %v6507_v35 }
 0x1c7   :  { %4781 = vmatprep.subr.bf16.mxu0 %v6516_v44 }
 0x1ca   :  { %4783 = vmatpush1.bf16.msra.mxu0 %v6519_v48 }
 0x1cb   :  { %4785 = vmatprep.subr.bf16.mxu0 %v6527_v56 }
 0x1ce   :  { %4787 = vmatpush1.bf16.msra.mxu0 %v6532_v59 }
 0x1cf   :  { %4789 = vmatprep.subr.bf16.mxu0 %v6541_v7 }
 0x1d2   :  { %4791 = vmatpush1.bf16.msra.mxu0 %v6543_v8 }
 0x1d3   :  { %4793 = vmatprep.subr.bf16.mxu0 %v6553_v21 }
 0x1d6   :  { %4795 = vmatpush1.bf16.msra.mxu0 %v6555_v24 }
 0x1d7   :  { %4797 = vmatprep.subr.bf16.mxu0 %v6563_v37 }
 0x1da   :  { %4799 = vmatpush1.bf16.msra.mxu0 %v6567_v42 }
 0x1db   :  { %4801 = vmatprep.subr.bf16.mxu0 %v6575_v57 }
 0x1de   :  { %4803 = vmatpush1.bf16.msra.mxu0 %v6581_v1 }
 0x1df   :  { %4837 = vmatprep.subr.bf16.mxu0 %v6708_v47 }
 0x274   :  { %v605_v41 = vpop.f32.mrb[0].mxu0  ;;  %v676_v33 = vpop.f32.mrb[6].mxu1 }
 0x275   :  { %v779_v28 = vrot.slane %v605_v41, 6  ;;  %v607_v57 = vpop.f32.mrb[1].mxu0  ;;  %v678_v42 = vpop.f32.mrb[7].mxu1 }
 0x276   :  { %v789_v1 = vrot.slane %v607_v57, 6  ;;  %v752_v37 = vadd.f32 %v678_v42, %v6716_v17  ;;  %v798_v42 = vadd.f32 %v6617_v54, %v676_v33  ;;  %v446_v17 = vld [vmem:[#allocation8 + $0x18] sm:$0xff] }
 0x277   :  { %v781_v9 = vadd.f32 %v779_v28, %v6599_v15 }
 0x278   :  { %v791_v27 = vadd.f32 %v789_v1, %v6603_v25  ;;  %v4018_v47 = vmul.f32 -1.442695, %v752_v37  ;;  %v7722_v1 = vsub.s32 1, %v6588_v4  ;;  %v800_v28 = vrot.slane %v798_v42, 6  ;;  %v453_v25 = vld [vmem:[#allocation8 + $0x50] sm:$0xff] }
 0x279   :  { %v4020_v24 = vmul.f32 -1.442695, %v781_v9  ;;  %v808_v9 = vrot.slane %v6625_v38, 6 }
 0x27a   :  { %v4021_v21 = vmul.f32 -1.442695, %v791_v27  ;;  %5896 = vpow2.f32 %v4018_v47  ;;  %v6724_v37 = vrot.slane %v491_v60, %v7722_v1 }
 0x27b   :  { %5898 = vpow2.f32 %v4020_v24 }
 0x27c   :  { %5900 = vpow2.f32 %v4021_v21  ;;  %v7723_v21 = vsub.s32 2, %v6588_v4 }
 0x27e   :  { %v6728_v24 = vrot.slane %v491_v60, %v7723_v21  ;;  %v443_v21 = vld [vmem:[#allocation8] sm:$0xff] }
 0x280   :  { %7724 = vst [vmem:[#allocation65_spill] sm:$0xff] %v6728_v24 }
 0x284   :  { %v5897_v61 = vpop.eup %5896 }
 0x285   :  { %v5899_v8 = vpop.eup %5898  ;;  %v759_v7 = vadd.f32 1.0, %v5897_v61 }
 0x286   :  { %v5901_v59 = vpop.eup %5900  ;;  %v785_v41 = vadd.f32 1.0, %v5899_v8 }
 0x287   :  { %v795_v56 = vadd.f32 1.0, %v5901_v59  ;;  %5902 = vrcp.f32 %v759_v7 }
 0x288   :  { %5904 = vrcp.f32 %v785_v41 }
 0x289   :  { %5906 = vrcp.f32 %v795_v56  ;;  %v6734_v56 = vld [vmem:[%s7549_s7] ss:$0 sm:$0xff] }
 0x28a   :  { %7725 = vst [vmem:[#allocation66_spill] sm:$0xff] %v6734_v56 }
 0x291   :  { %v5903_v57 = vpop.eup %5902 }
 0x292   :  { %v5905_v47 = vpop.eup %5904  ;;  %v770_v60 = vmul.f32 %v5903_v57, %v6734_v56 }
 0x293   :  { %v5907_v8 = vpop.eup %5906  ;;  %v802_v59 = vmul.f32 %v5905_v47, %v800_v28 }
 0x294   :  { %v747_v7 = vpop.f32.mrb[2].mxu0  ;;  %v810_v33 = vmul.f32 %v5907_v8, %v808_v9  ;;  %v805_v1 = vsub.f32 1.0, %v5907_v8  ;;  %v450_v9 = vld [vmem:[#allocation8 + $0x38] sm:$0xff]  ;;  %v452_v8 = vld [vmem:[#allocation8 + $0x48] sm:$0xff] }
 0x295   :  { %v803_v27 = vadd.f32 %v802_v59, %v6619_v58  ;;  %v753_v61 = vadd.f32 %v747_v7, %v6724_v37  ;;  %v749_v41 = vpop.f32.mrb[3].mxu0  ;;  %v6742_v7 = vpack.c.bf16 %v446_v17, %v443_v21  ;;  %v455_v17 = vld [vmem:[#allocation8 + $0x60] sm:$0xff]  ;;  %v468_v21 = vld [vmem:[#allocation8 + $0xc8] sm:$0xff] }
 0x296   :  { %v754_v4 = vadd.f32 %v749_v41, %v6728_v24  ;;  %v456_v41 = vld [vmem:[#allocation8 + $0x68] sm:$0xff] }
 0x297   :  { %5908 = vtanh.f32 %v803_v27  ;;  %v4019_v38 = vmul.f32 -1.442695, %v753_v61  ;;  %v6747_v27 = vpack.c.bf16 %v453_v25, %v450_v9  ;;  %v449_v61 = vld [vmem:[#allocation8 + $0x30] sm:$0xff]  ;;  %v471_v9 = vld [vmem:[#allocation8 + $0xe0] sm:$0xff] }
 0x298   :  { %v771_v42 = vadd.f32 %v770_v60, %v754_v4  ;;  %v459_v4 = vld [vmem:[#allocation8 + $0x80] sm:$0xff]  ;;  %v462_v60 = vld [vmem:[#allocation8 + $0x98] sm:$0xff] }
 0x299   :  { %5910 = vpow2.f32 %v4019_v38  ;;  %v6757_v25 = vpack.c.bf16 %v459_v4, %v456_v41  ;;  %v465_v38 = vld [vmem:[#allocation8 + $0xb0] sm:$0xff]  ;;  %v6775_v4 = vpack.c.bf16 %v471_v9, %v468_v21 }
 0x29a   :  { %v473_v9 = vld [vmem:[#allocation8 + $0xf0] sm:$0xff] }
 0x2a1   :  { %v5909_v28 = vpop.eup %5908 }
 0x2a2   :  { %v806_v47 = vmul.f32 %v5909_v28, %v805_v1  ;;  %v6767_v1 = vpack.c.bf16 %v465_v38, %v462_v60  ;;  %v461_v28 = vld [vmem:[#allocation8 + $0x90] sm:$0xff]  ;;  %v474_v60 = vld [vmem:[#allocation8 + $0xf8] sm:$0xff] }
 0x2a3   :  { %v5911_v54 = vpop.eup %5910  ;;  %v477_v38 = vld [vmem:[#allocation8 + $0x110] sm:$0xff] }
 0x2a4   :  { %v766_v59 = vadd.f32 1.0, %v5911_v54  ;;  %v6740_v58 = vadd.f32 %v810_v33, %v806_v47  ;;  %v6753_v54 = vpack.c.bf16 %v452_v8, %v449_v61  ;;  %v458_v33 = vld [vmem:[#allocation8 + $0x78] sm:$0xff]  ;;  %7727 = vst [vmem:[#allocation68_spill] sm:$0xff] %v6767_v1  ;;  %v464_v47 = vld [vmem:[#allocation8 + $0xa8] sm:$0xff]  ;;  %v6785_v21 = vpack.c.bf16 %v477_v38, %v474_v60  ;;  %v485_v60 = vld [vmem:[#allocation8 + $0x150] sm:$0xff] }
 0x2a5   :  { %v6771_v61 = vpack.c.bf16 %v464_v47, %v461_v28  ;;  %v488_v38 = vld [vmem:[#allocation8 + $0x168] sm:$0xff] }
 0x2a6   :  { %5912 = vrcp.f32 %v766_v59  ;;  %v6745_v57 = vrot.slane %v6740_v58, 2 }
 0x2a7   :  { %5914 = vtanh.f32 %v771_v42  ;;  %v6763_v42 = vpack.c.bf16 %v458_v33, %v455_v17  ;;  %v467_v17 = vld [vmem:[#allocation8 + $0xc0] sm:$0xff]  ;;  %v470_v33 = vld [vmem:[#allocation8 + $0xd8] sm:$0xff] }
 0x2a8   :  { %880 = vmatmul.mubr.f32.vlgmr.msra.gmra.mrb[8].mxu1 %v6745_v57  ;;  %951 = vmatmul.mubr.f32.vlgmr.msra.gmra.mrb[4].mxu0 %v6745_v57  ;;  %v6779_v28 = vpack.c.bf16 %v470_v33, %v467_v17  ;;  %v489_v17 = vld [vmem:[#allocation8 + $0x170] sm:$0xff] }
 0x2a9   :  { %4807 = vmatpush1.bf16.msra.mxu1 %v6623_v31  ;;  %4839 = vmatpush1.bf16.msra.mxu0 %v6742_v7  ;;  %7726 = vst [vmem:[#allocation67_spill] sm:$0xff] %v6763_v42 }
 0x2aa   :  { %4809 = vmatprep.subr.bf16.mxu1 %v6627_v32  ;;  %4841 = vmatprep.subr.bf16.mxu0 %v6747_v27 }
 0x2ab   :  { %1021 = vmatprep.mubr.f32.mxu1 %v7718_v0  ;;  %1095 = vmatprep.mubr.f32.mxu0 %v7718_v0 }
 0x2ad   :  { %4811 = vmatpush1.bf16.msra.mxu1 %v6632_v50  ;;  %4843 = vmatpush1.bf16.msra.mxu0 %v6753_v54 }
 0x2ae   :  { %4813 = vmatprep.subr.bf16.mxu1 %v6636_v51  ;;  %4845 = vmatprep.subr.bf16.mxu0 %v6757_v25 }
 0x2b0   :  { %v5913_v59 = vpop.eup %5912 }
 0x2b1   :  { %4815 = vmatpush1.bf16.msra.mxu1 %v6642_v10  ;;  %4847 = vmatpush1.bf16.msra.mxu0 %v6763_v42  ;;  %v773_v8 = vsub.f32 1.0, %v5913_v59  ;;  %v5915_v41 = vpop.eup %5914  ;;  %v775_v56 = vmul.f32 0.0, %v5913_v59  ;;  %v483_v42 = vld [vmem:[#allocation8 + $0x140] sm:$0xff] }
 0x2b2   :  { %4817 = vmatprep.subr.bf16.mxu1 %v6645_v12  ;;  %4849 = vmatprep.subr.bf16.mxu0 %v6767_v1  ;;  %v476_v1 = vld [vmem:[#allocation8 + $0x108] sm:$0xff] }
 0x2b3   :  { %v774_v24 = vmul.f32 %v5915_v41, %v773_v8  ;;  %v480_v12 = vld [vmem:[#allocation8 + $0x128] sm:$0xff]  ;;  %v6789_v59 = vpack.c.bf16 %v476_v1, %v473_v9  ;;  %v482_v8 = vld [vmem:[#allocation8 + $0x138] sm:$0xff] }
 0x2b4   :  { %v486_v41 = vld [vmem:[#allocation8 + $0x158] sm:$0xff]  ;;  %v448_v9 = vld [vmem:[#allocation8 + $0x28] sm:$0xff] }
 0x2b5   :  { %4819 = vmatpush1.bf16.msra.mxu1 %v6650_v40  ;;  %4851 = vmatpush1.bf16.msra.mxu0 %v6771_v61  ;;  %v6781_v47 = vadd.f32 %v775_v56, %v774_v24  ;;  %v6793_v24 = vpack.c.bf16 %v483_v42, %v480_v12  ;;  %v479_v56 = vld [vmem:[#allocation8 + $0x120] sm:$0xff]  ;;  %v6801_v1 = vpack.c.bf16 %v489_v17, %v486_v41  ;;  %v445_v42 = vld [vmem:[#allocation8 + $0x10] sm:$0xff]  ;;  %v454_v17 = vld [vmem:[#allocation8 + $0x58] sm:$0xff] }
 0x2b6   :  { %4821 = vmatprep.subr.bf16.mxu1 %v6653_v45  ;;  %4853 = vmatprep.subr.bf16.mxu0 %v6775_v4  ;;  %v6797_v33 = vpack.c.bf16 %v482_v8, %v479_v56  ;;  %v6805_v12 = vpack.c.bf16 %v488_v38, %v485_v60  ;;  %v6811_v56 = vpack.c.bf16 %v448_v9, %v445_v42  ;;  %v7618_v8 = vmov 0.0|0.0   ;;  %v451_v41 = vld [vmem:[#allocation8 + $0x40] sm:$0xff]  ;;  %v457_v38 = vld [vmem:[#allocation8 + $0x70] sm:$0xff]  ;;  %v460_v42 = vld [vmem:[#allocation8 + $0x88] sm:$0xff] }
 0x2b7   :  { %7728 = vst [vmem:[#allocation69_spill] sm:$0xff] %v6781_v47  ;;  %v6818_v60 = vpack.c.bf16 %v454_v17, %v451_v41  ;;  %v463_v9 = vld [vmem:[#allocation8 + $0xa0] sm:$0xff]  ;;  %v466_v41 = vld [vmem:[#allocation8 + $0xb8] sm:$0xff] }
 0x2b8   :  { %v6833_v17 = vpack.c.bf16 %v466_v41, %v463_v9  ;;  %v481_v41 = vld [vmem:[#allocation8 + $0x130] sm:$0xff] }
 0x2b9   :  { %4823 = vmatpush1.bf16.msra.mxu1 %v6658_v2  ;;  %4855 = vmatpush1.bf16.msra.mxu0 %v6779_v28 }
 0x2ba   :  { %4825 = vmatprep.subr.bf16.mxu1 %v6661_v6  ;;  %4857 = vmatprep.subr.bf16.mxu0 %v6785_v21  ;;  %7730 = vst [vmem:[#allocation71_spill] sm:$0xff] %v6833_v17 }
 0x2bd   :  { %4827 = vmatpush1.bf16.msra.mxu1 %v6666_v19  ;;  %4859 = vmatpush1.bf16.msra.mxu0 %v6789_v59 }
 0x2be   :  { %4829 = vmatprep.subr.bf16.mxu1 %v6669_v46  ;;  %4861 = vmatprep.subr.bf16.mxu0 %v6793_v24 }
 0x2c1   :  { %4831 = vmatpush1.bf16.msra.mxu1 %v6674_v5  ;;  %4863 = vmatpush1.bf16.msra.mxu0 %v6797_v33 }
 0x2c2   :  { %4833 = vmatprep.subr.bf16.mxu1 %v6677_v13  ;;  %4865 = vmatprep.subr.bf16.mxu0 %v6801_v1 }
 0x2c5   :  { %4835 = vmatpush1.bf16.msra.mxu1 %v6682_v20  ;;  %4867 = vmatpush1.bf16.msra.mxu0 %v6805_v12 }
 0x2c6   :  { %4868 = vmatprep.subr.bf16.mxu1 %v7618_v8  ;;  %4893 = vmatprep.subr.bf16.mxu0 %v6488_v14 }
 0x2c8   :  { %1022 = vmatmul.mubr.f32.vlgmr.msra.gmra.mrb[10].mxu1 %v6745_v57  ;;  %1096 = vmatmul.mubr.f32.vlgmr.msra.gmra.mrb[6].mxu0 %v6781_v47  ;;  %v6827_v57 = vpack.c.bf16 %v460_v42, %v457_v38  ;;  %v475_v42 = vld [vmem:[#allocation8 + $0x100] sm:$0xff] }
 0x2c9   :  { %4870 = vmatpush3.bf16.msra.mxu1 %v6811_v56  ;;  %4283 = vmatprep.mubr.msk.f32.mxu1 %vm6279_vm1, %v7718_v0 }
 0x2ca   :  { %4871 = vmatprep.subr.bf16.mxu1 %v7618_v8  ;;  %4895 = vmatpush1.bf16.msra.mxu0 %v6490_v18  ;;  %7729 = vst [vmem:[#allocation70_spill] sm:$0xff] %v6827_v57  ;;  %v472_v18 = vld [vmem:[#allocation8 + $0xe8] sm:$0xff] }
 0x2cb   :  { %4897 = vmatprep.subr.bf16.mxu0 %v6499_v26  ;;  %1295 = vmatprep.mubr.f32.mxu0 %v7718_v0  ;;  %v469_v26 = vld [vmem:[#allocation8 + $0xd0] sm:$0xff] }
 0x2cc   :  { %v6839_v38 = vpack.c.bf16 %v472_v18, %v469_v26  ;;  %v487_v26 = vld [vmem:[#allocation8 + $0x160] sm:$0xff] }
 0x2cd   :  { %4873 = vmatpush3.bf16.msra.mxu1 %v6818_v60 }
 0x2ce   :  { %4874 = vmatprep.subr.bf16.mxu1 %v7618_v8  ;;  %4899 = vmatpush1.bf16.msra.mxu0 %v6502_v30  ;;  %7731 = vst [vmem:[#allocation72_spill] sm:$0xff] %v6839_v38 }
 0x2cf   :  { %4901 = vmatprep.subr.bf16.mxu0 %v6511_v39  ;;  %v478_v39 = vld [vmem:[#allocation8 + $0x118] sm:$0xff] }
 0x2d0   :  { %v6845_v9 = vpack.c.bf16 %v478_v39, %v475_v42  ;;  %v7737_v42 = vld [vmem:[#allocation40_spill] sm:$0xff] }
 0x2d1   :  { %4876 = vmatpush3.bf16.msra.mxu1 %v6827_v57 }
 0x2d2   :  { %4877 = vmatprep.subr.bf16.mxu1 %v7618_v8  ;;  %4903 = vmatpush1.bf16.msra.mxu0 %v6514_v43  ;;  %7732 = vst [vmem:[#allocation73_spill] sm:$0xff] %v6845_v9 }
 0x2d3   :  { %4905 = vmatprep.subr.bf16.mxu0 %v6523_v52  ;;  %v484_v52 = vld [vmem:[#allocation8 + $0x148] sm:$0xff] }
 0x2d4   :  { %v6851_v18 = vpack.c.bf16 %v484_v52, %v481_v41  ;;  %v7735_v52 = vld [vmem:[#allocation36_spill] sm:$0xff]  ;;  %v7738_v41 = vld [vmem:[#allocation41_spill] sm:$0xff] }
 0x2d5   :  { %4879 = vmatpush3.bf16.msra.mxu1 %v6833_v17 }
 0x2d6   :  { %4880 = vmatprep.subr.bf16.mxu1 %v7618_v8  ;;  %4907 = vmatpush1.bf16.msra.mxu0 %v6525_v53  ;;  %7733 = vst [vmem:[#allocation74_spill] sm:$0xff] %v6851_v18 }
 0x2d7   :  { %4909 = vmatprep.subr.bf16.mxu0 %v6535_v62  ;;  %v490_v62 = vld [vmem:[#allocation8 + $0x178] sm:$0xff] }
 0x2d8   :  { %v6857_v39 = vpack.c.bf16 %v490_v62, %v487_v26  ;;  %v7736_v62 = vld [vmem:[#allocation37_spill] sm:$0xff]  ;;  %v7739_v26 = vld [vmem:[#allocation44_spill] sm:$0xff] }
 0x2d9   :  { %4882 = vmatpush3.bf16.msra.mxu1 %v6839_v38 }
 0x2da   :  { %4883 = vmatprep.subr.bf16.mxu1 %v7618_v8  ;;  %4911 = vmatpush1.bf16.msra.mxu0 %v6538_v3  ;;  %7734 = vst [vmem:[#allocation75_spill] sm:$0xff] %v6857_v39 }
 0x2db   :  { %4913 = vmatprep.subr.bf16.mxu0 %v6547_v11 }
 0x2dd   :  { %4885 = vmatpush3.bf16.msra.mxu1 %v6845_v9 }
 0x2de   :  { %4886 = vmatprep.subr.bf16.mxu1 %v7618_v8  ;;  %4915 = vmatpush1.bf16.msra.mxu0 %v6550_v16 }
 0x2df   :  { %4917 = vmatprep.subr.bf16.mxu0 %v6558_v29 }
 0x2e1   :  { %4888 = vmatpush3.bf16.msra.mxu1 %v6851_v18 }
 0x2e2   :  { %4889 = vmatprep.subr.bf16.mxu1 %v7618_v8  ;;  %4919 = vmatpush1.bf16.msra.mxu0 %v6561_v36  ;;  %v7740_v8 = vld [vmem:[#allocation45_spill] sm:$0xff] }
 0x2e3   :  { %4921 = vmatprep.subr.bf16.mxu0 %v6570_v49 }
 0x2e5   :  { %4891 = vmatpush3.bf16.msra.mxu1 %v6857_v39 }
 0x2e6   :  { %4925 = vmatprep.subr.bf16.mxu1 %v6493_v22  ;;  %4923 = vmatpush1.bf16.msra.mxu0 %v6573_v55  ;;  %v7746_v22 = vld [vmem:[#allocation56_spill] sm:$0xff] }
 0x2e7   :  { %4957 = vmatprep.subr.bf16.mxu0 %v6578_v63 }
 0x2e8   :  { %4284 = vmatmul.mubr.f32.vlgmr.msra.gmra.mrb[12].mxu1 %v6781_v47 }
 0x2e9   :  { %4927 = vmatpush1.bf16.msra.mxu1 %v6495_v23  ;;  %1366 = vmatprep.mubr.f32.mxu1 %v7718_v0  ;;  %v7741_v23 = vld [vmem:[#allocation48_spill] sm:$0xff] }
 0x2ea   :  { %4929 = vmatprep.subr.bf16.mxu1 %v6505_v34  ;;  %v7742_v34 = vld [vmem:[#allocation49_spill] sm:$0xff] }
 0x2ed   :  { %4931 = vmatpush1.bf16.msra.mxu1 %v6507_v35  ;;  %v7743_v35 = vld [vmem:[#allocation52_spill] sm:$0xff] }
 0x2ee   :  { %4933 = vmatprep.subr.bf16.mxu1 %v6516_v44  ;;  %v7744_v44 = vld [vmem:[#allocation54_spill] sm:$0xff] }
 0x2f1   :  { %4935 = vmatpush1.bf16.msra.mxu1 %v6519_v48  ;;  %v7745_v48 = vld [vmem:[#allocation63_spill] sm:$0xff] }
 0x2f2   :  { %4937 = vmatprep.subr.bf16.mxu1 %v7735_v52 }
 0x2f5   :  { %4939 = vmatpush1.bf16.msra.mxu1 %v7736_v62 }
 0x2f6   :  { %4941 = vmatprep.subr.bf16.mxu1 %v7737_v42 }
 0x2f9   :  { %4943 = vmatpush1.bf16.msra.mxu1 %v7738_v41 }
 0x2fa   :  { %4945 = vmatprep.subr.bf16.mxu1 %v7739_v26 }
 0x2fd   :  { %4947 = vmatpush1.bf16.msra.mxu1 %v7740_v8 }
 0x2fe   :  { %4949 = vmatprep.subr.bf16.mxu1 %v7741_v23 }
 0x301   :  { %4951 = vmatpush1.bf16.msra.mxu1 %v7742_v34 }
 0x302   :  { %4953 = vmatprep.subr.bf16.mxu1 %v7743_v35 }
 0x305   :  { %4955 = vmatpush1.bf16.msra.mxu1 %v7744_v44 }
 0x306   :  { %4989 = vmatprep.subr.bf16.mxu1 %v7745_v48  ;;  %v7747_v48 = vld [vmem:[#allocation60_spill] sm:$0xff] }
 0x37b   :  { %v881_v52 = vpop.f32.mrb[8].mxu1  ;;  %v952_v62 = vpop.f32.mrb[4].mxu0 }
 0x37c   :  { %v1196_v63 = vrot.slane %v881_v52, 4  ;;  %v883_v42 = vpop.f32.mrb[9].mxu1  ;;  %v954_v55 = vpop.f32.mrb[5].mxu0  ;;  %v1215_v36 = vadd.f32 %v7747_v48, %v952_v62 }
 0x37d   :  { %v1206_v41 = vrot.slane %v883_v42, 4  ;;  %v1224_v42 = vrot.slane %v6740_v58, 6 }
 0x37e   :  { %v1198_v26 = vadd.f32 %v1196_v63, %v6599_v15  ;;  %v1217_v52 = vrot.slane %v1215_v36, 4  ;;  %v7748_v15 = vld [vmem:[#allocation64_spill] sm:$0xff] }
 0x37f   :  { %v1208_v8 = vadd.f32 %v1206_v41, %v7746_v22  ;;  %v1028_v41 = vadd.f32 %v954_v55, %v7748_v15 }
 0x380   :  { %v4024_v39 = vmul.f32 -1.442695, %v1198_v26 }
 0x381   :  { %v4025_v23 = vmul.f32 -1.442695, %v1208_v8 }
 0x382   :  { %5916 = vpow2.f32 %v4024_v39 }
 0x383   :  { %5918 = vpow2.f32 %v4025_v23  ;;  %v7749_v23 = vld [vmem:[#allocation61_spill] sm:$0xff] }
 0x38c   :  { %v5917_v34 = vpop.eup %5916 }
 0x38d   :  { %v5919_v35 = vpop.eup %5918  ;;  %v1202_v49 = vadd.f32 1.0, %v5917_v34 }
 0x38e   :  { %v1212_v44 = vadd.f32 1.0, %v5919_v35 }
 0x38f   :  { %5920 = vrcp.f32 %v1202_v49 }
 0x390   :  { %5922 = vrcp.f32 %v1212_v44 }
 0x399   :  { %v5921_v18 = vpop.eup %5920 }
 0x39a   :  { %v5923_v29 = vpop.eup %5922  ;;  %v1219_v63 = vmul.f32 %v5921_v18, %v1217_v52 }
 0x39b   :  { %v1023_v26 = vpop.f32.mrb[10].mxu1  ;;  %v1097_v8 = vpop.f32.mrb[6].mxu0  ;;  %v1226_v39 = vmul.f32 %v5923_v29, %v1224_v42  ;;  %v1222_v48 = vsub.f32 1.0, %v5923_v29  ;;  %v7752_v29 = vld [vmem:[#allocation68_spill] sm:$0xff] }
 0x39c   :  { %v1220_v22 = vadd.f32 %v1219_v63, %v7749_v23  ;;  %v1029_v34 = vadd.f32 %v1023_v26, %v6724_v37  ;;  %v1172_v35 = vadd.f32 %v1097_v8, %v1028_v41  ;;  %v1025_v49 = vpop.f32.mrb[11].mxu1  ;;  %v1099_v44 = vpop.f32.mrb[7].mxu0  ;;  %v7753_v8 = vld [vmem:[#allocation66_spill] sm:$0xff] }
 0x39e   :  { %5924 = vtanh.f32 %v1220_v22  ;;  %v4022_v62 = vmul.f32 -1.442695, %v1172_v35  ;;  %v1179_v36 = vadd.f32 %v1099_v44, %v1029_v34  ;;  %v7754_v44 = vld [vmem:[#allocation65_spill] sm:$0xff] }
 0x3a0   :  { %5926 = vpow2.f32 %v4022_v62  ;;  %v4023_v16 = vmul.f32 -1.442695, %v1179_v36  ;;  %v1030_v62 = vadd.f32 %v1025_v49, %v7754_v44 }
 0x3a2   :  { %5928 = vpow2.f32 %v4023_v16  ;;  %v7751_v16 = vld [vmem:[#allocation62_spill] sm:$0xff] }
 0x3a8   :  { %v5925_v58 = vpop.eup %5924 }
 0x3a9   :  { %v1223_v18 = vmul.f32 %v5925_v58, %v1222_v48  ;;  %v7750_v48 = vld [vmem:[#allocation67_spill] sm:$0xff] }
 0x3aa   :  { %v5927_v55 = vpop.eup %5926 }
 0x3ab   :  { %v6891_v52 = vadd.f32 %v1226_v39, %v1223_v18  ;;  %v1176_v63 = vadd.f32 1.0, %v5927_v55 }
 0x3ac   :  { %v5929_v22 = vpop.eup %5928 }
 0x3ad   :  { %v1229_v42 = vrot.slane %v6891_v52, 4  ;;  %5930 = vrcp.f32 %v1176_v63  ;;  %v1183_v41 = vadd.f32 1.0, %v5929_v22  ;;  %v7755_v63 = vmov 0.0|0.0  }
 0x3af   :  { %1296 = vmatmul.mubr.f32.vlgmr.msra.gmra.mrb[8].mxu0 %v1229_v42  ;;  %1367 = vmatmul.mubr.f32.vlgmr.msra.gmra.mrb[14].mxu1 %v1229_v42  ;;  %5932 = vrcp.f32 %v1183_v41 }
 0x3b0   :  { %4959 = vmatpush1.bf16.msra.mxu0 %v6623_v31  ;;  %4991 = vmatpush1.bf16.msra.mxu1 %v6742_v7 }
 0x3b1   :  { %4961 = vmatprep.subr.bf16.mxu0 %v6627_v32  ;;  %4993 = vmatprep.subr.bf16.mxu1 %v6747_v27 }
 0x3b2   :  { %1437 = vmatprep.mubr.f32.mxu0 %v7718_v0  ;;  %1511 = vmatprep.mubr.f32.mxu1 %v7718_v0 }
 0x3b4   :  { %4963 = vmatpush1.bf16.msra.mxu0 %v6632_v50  ;;  %4995 = vmatpush1.bf16.msra.mxu1 %v6753_v54 }
 0x3b5   :  { %4965 = vmatprep.subr.bf16.mxu0 %v6636_v51  ;;  %4997 = vmatprep.subr.bf16.mxu1 %v6757_v25 }
 0x3b7   :  { %v5931_v35 = vpop.eup %5930 }
 0x3b8   :  { %4967 = vmatpush1.bf16.msra.mxu0 %v6642_v10  ;;  %4999 = vmatpush1.bf16.msra.mxu1 %v7750_v48 }
 0x3b9   :  { %4969 = vmatprep.subr.bf16.mxu0 %v7751_v16  ;;  %5001 = vmatprep.subr.bf16.mxu1 %v7752_v29  ;;  %v5933_v49 = vpop.eup %5932 }
 0x3ba   :  { %v1190_v18 = vsub.f32 1.0, %v5933_v49  ;;  %v1192_v41 = vmul.f32 %v5933_v49, %v6781_v47  ;;  %v7764_v49 = vld [vmem:[#allocation74_spill] sm:$0xff]  ;;  %v7769_v47 = vld [vmem:[#allocation51_spill] sm:$0xff] }
 0x3bb   :  { %v1168_v26 = vpop.f32.mrb[12].mxu1 }
 0x3bc   :  { %v1186_v39 = vadd.f32 %v7753_v8, %v1168_v26  ;;  %v4285_v34 = vpop.f32.mrb[13].mxu1  ;;  %4971 = vmatpush1.bf16.msra.mxu0 %v6650_v40  ;;  %5003 = vmatpush1.bf16.msra.mxu1 %v6771_v61 }
 0x3bd   :  { %4973 = vmatprep.subr.bf16.mxu0 %v6653_v45  ;;  %5005 = vmatprep.subr.bf16.mxu1 %v6775_v4  ;;  %v7758_v34 = vld [vmem:[#allocation26_spill] sm:$0xff] }
 0x3be   :  { %v1187_v36 = vmul.f32 %v5931_v35, %v1186_v39  ;;  %v7757_v39 = vld [vmem:[#allocation23_spill] sm:$0xff]  ;;  %v7760_v35 = vld [vmem:[#allocation34_spill] sm:$0xff] }
 0x3c0   :  { %v1188_v58 = vadd.f32 %v1187_v36, %v1030_v62  ;;  %4975 = vmatpush1.bf16.msra.mxu0 %v6658_v2  ;;  %5007 = vmatpush1.bf16.msra.mxu1 %v6779_v28  ;;  %v7761_v62 = vld [vmem:[#allocation38_spill] sm:$0xff]  ;;  %v7762_v36 = vld [vmem:[#allocation43_spill] sm:$0xff] }
 0x3c1   :  { %4977 = vmatprep.subr.bf16.mxu0 %v6661_v6  ;;  %5009 = vmatprep.subr.bf16.mxu1 %v6785_v21 }
 0x3c2   :  { %5934 = vtanh.f32 %v1188_v58  ;;  %v7763_v58 = vld [vmem:[#allocation46_spill] sm:$0xff] }
 0x3c4   :  { %4979 = vmatpush1.bf16.msra.mxu0 %v6666_v19  ;;  %5011 = vmatpush1.bf16.msra.mxu1 %v6789_v59 }
 0x3c5   :  { %4981 = vmatprep.subr.bf16.mxu0 %v6669_v46  ;;  %5013 = vmatprep.subr.bf16.mxu1 %v6793_v24 }
 0x3c8   :  { %4983 = vmatpush1.bf16.msra.mxu0 %v6674_v5  ;;  %5015 = vmatpush1.bf16.msra.mxu1 %v6797_v33 }
 0x3c9   :  { %4985 = vmatprep.subr.bf16.mxu0 %v6677_v13  ;;  %5017 = vmatprep.subr.bf16.mxu1 %v6801_v1 }
 0x3cc   :  { %v5935_v55 = vpop.eup %5934  ;;  %4987 = vmatpush1.bf16.msra.mxu0 %v6682_v20  ;;  %5019 = vmatpush1.bf16.msra.mxu1 %v6805_v12 }
 0x3cd   :  { %5020 = vmatprep.subr.bf16.mxu0 %v7755_v63  ;;  %v1191_v22 = vmul.f32 %v5935_v55, %v1190_v18  ;;  %5045 = vmatprep.subr.bf16.mxu1 %v6488_v14  ;;  %v7765_v18 = vld [vmem:[#allocation47_spill] sm:$0xff]  ;;  %v7766_v55 = vld [vmem:[#allocation50_spill] sm:$0xff] }
 0x3cf   :  { %1438 = vmatmul.mubr.f32.vlgmr.msra.gmra.mrb[10].mxu0 %v1229_v42  ;;  %v6931_v26 = vadd.f32 %v1192_v41, %v1191_v22  ;;  %v7759_v42 = vld [vmem:[#allocation30_spill] sm:$0xff]  ;;  %v7767_v22 = vld [vmem:[#allocation75_spill] sm:$0xff]  ;;  %v7768_v41 = vld [vmem:[#allocation24_spill] sm:$0xff] }
 0x3d0   :  { %5022 = vmatpush3.bf16.msra.mxu0 %v6811_v56  ;;  %4318 = vmatprep.mubr.msk.f32.mxu0 %vm6279_vm1, %v7718_v0 }
 0x3d1   :  { %7756 = vst [vmem:[#allocation64_spill] sm:$0xff] %v6931_v26  ;;  %1512 = vmatmul.mubr.f32.vlgmr.msra.gmra.mrb[16].mxu1 %v6931_v26  ;;  %5023 = vmatprep.subr.bf16.mxu0 %v7755_v63 }
 0x3d2   :  { %5047 = vmatpush1.bf16.msra.mxu1 %v7757_v39  ;;  %1711 = vmatprep.mubr.f32.mxu1 %v7718_v0 }
 0x3d3   :  { %5049 = vmatprep.subr.bf16.mxu1 %v7758_v34 }
 0x3d4   :  { %5025 = vmatpush3.bf16.msra.mxu0 %v6818_v60 }
 0x3d5   :  { %5026 = vmatprep.subr.bf16.mxu0 %v7755_v63 }
 0x3d6   :  { %5051 = vmatpush1.bf16.msra.mxu1 %v6502_v30 }
 0x3d7   :  { %5053 = vmatprep.subr.bf16.mxu1 %v7759_v42 }
 0x3d8   :  { %5028 = vmatpush3.bf16.msra.mxu0 %v6827_v57 }
 0x3d9   :  { %5029 = vmatprep.subr.bf16.mxu0 %v7755_v63 }
 0x3da   :  { %5055 = vmatpush1.bf16.msra.mxu1 %v6514_v43 }
 0x3db   :  { %5057 = vmatprep.subr.bf16.mxu1 %v7760_v35 }
 0x3dc   :  { %5031 = vmatpush3.bf16.msra.mxu0 %v6833_v17  ;;  %v7788_v17 = vld [vmem:[#allocation56_spill] sm:$0xff] }
 0x3dd   :  { %5032 = vmatprep.subr.bf16.mxu0 %v7755_v63 }
 0x3de   :  { %5059 = vmatpush1.bf16.msra.mxu1 %v6525_v53  ;;  %v7787_v53 = vld [vmem:[#allocation55_spill] sm:$0xff] }
 0x3df   :  { %5061 = vmatprep.subr.bf16.mxu1 %v7761_v62 }
 0x3e0   :  { %5034 = vmatpush3.bf16.msra.mxu0 %v6839_v38 }
 0x3e1   :  { %5035 = vmatprep.subr.bf16.mxu0 %v7755_v63 }
 0x3e2   :  { %5063 = vmatpush1.bf16.msra.mxu1 %v6538_v3  ;;  %v7782_v3 = vld [vmem:[#allocation48_spill] sm:$0xff] }
 0x3e3   :  { %5065 = vmatprep.subr.bf16.mxu1 %v6547_v11  ;;  %v7779_v11 = vld [vmem:[#allocation41_spill] sm:$0xff] }
 0x3e4   :  { %5037 = vmatpush3.bf16.msra.mxu0 %v6845_v9  ;;  %v7770_v9 = vld [vmem:[#allocation53_spill] sm:$0xff] }
 0x3e5   :  { %5038 = vmatprep.subr.bf16.mxu0 %v7755_v63 }
 0x3e6   :  { %5067 = vmatpush1.bf16.msra.mxu1 %v7762_v36  ;;  %v7771_v36 = vld [vmem:[#allocation25_spill] sm:$0xff] }
 0x3e7   :  { %5069 = vmatprep.subr.bf16.mxu1 %v7763_v58  ;;  %v7773_v58 = vld [vmem:[#allocation29_spill] sm:$0xff] }
 0x3e8   :  { %5040 = vmatpush3.bf16.msra.mxu0 %v7764_v49  ;;  %v7772_v49 = vld [vmem:[#allocation28_spill] sm:$0xff] }
 0x3e9   :  { %5041 = vmatprep.subr.bf16.mxu0 %v7755_v63 }
 0x3ea   :  { %5071 = vmatpush1.bf16.msra.mxu1 %v7765_v18  ;;  %v7774_v18 = vld [vmem:[#allocation32_spill] sm:$0xff] }
 0x3eb   :  { %5073 = vmatprep.subr.bf16.mxu1 %v7766_v55  ;;  %v7775_v55 = vld [vmem:[#allocation33_spill] sm:$0xff] }
 0x3ec   :  { %5043 = vmatpush3.bf16.msra.mxu0 %v7767_v22  ;;  %v7776_v22 = vld [vmem:[#allocation36_spill] sm:$0xff] }
 0x3ed   :  { %5077 = vmatprep.subr.bf16.mxu0 %v7768_v41  ;;  %v7777_v41 = vld [vmem:[#allocation37_spill] sm:$0xff] }
 0x3ee   :  { %5075 = vmatpush1.bf16.msra.mxu1 %v7769_v47  ;;  %v7778_v47 = vld [vmem:[#allocation40_spill] sm:$0xff] }
 0x3ef   :  { %4319 = vmatmul.mubr.f32.vlgmr.msra.gmra.mrb[12].mxu0 %v6931_v26  ;;  %5109 = vmatprep.subr.bf16.mxu1 %v7770_v9  ;;  %v7780_v9 = vld [vmem:[#allocation44_spill] sm:$0xff] }
 0x3f0   :  { %5079 = vmatpush1.bf16.msra.mxu0 %v7771_v36  ;;  %1782 = vmatprep.mubr.f32.mxu0 %v7718_v0  ;;  %v7781_v36 = vld [vmem:[#allocation45_spill] sm:$0xff] }
 0x3f1   :  { %5081 = vmatprep.subr.bf16.mxu0 %v7772_v49  ;;  %v7783_v49 = vld [vmem:[#allocation49_spill] sm:$0xff] }
 0x3f4   :  { %5083 = vmatpush1.bf16.msra.mxu0 %v7773_v58  ;;  %v7784_v58 = vld [vmem:[#allocation52_spill] sm:$0xff] }
 0x3f5   :  { %5085 = vmatprep.subr.bf16.mxu0 %v7774_v18  ;;  %v7785_v18 = vld [vmem:[#allocation54_spill] sm:$0xff] }
 0x3f8   :  { %5087 = vmatpush1.bf16.msra.mxu0 %v7775_v55  ;;  %v7786_v55 = vld [vmem:[#allocation63_spill] sm:$0xff] }
 0x3f9   :  { %5089 = vmatprep.subr.bf16.mxu0 %v7776_v22 }
 0x3fc   :  { %5091 = vmatpush1.bf16.msra.mxu0 %v7777_v41 }
 0x3fd   :  { %5093 = vmatprep.subr.bf16.mxu0 %v7778_v47 }
 0x400   :  { %5095 = vmatpush1.bf16.msra.mxu0 %v7779_v11 }
 0x401   :  { %5097 = vmatprep.subr.bf16.mxu0 %v7780_v9 }
 0x404   :  { %5099 = vmatpush1.bf16.msra.mxu0 %v7781_v36 }
 0x405   :  { %5101 = vmatprep.subr.bf16.mxu0 %v7782_v3 }
 0x408   :  { %5103 = vmatpush1.bf16.msra.mxu0 %v7783_v49 }
 0x409   :  { %5105 = vmatprep.subr.bf16.mxu0 %v7784_v58 }
 0x40c   :  { %5107 = vmatpush1.bf16.msra.mxu0 %v7785_v18 }
 0x40d   :  { %5141 = vmatprep.subr.bf16.mxu0 %v7786_v55  ;;  %v7789_v55 = vld [vmem:[#allocation60_spill] sm:$0xff] }
 0x482   :  { %v1297_v22 = vpop.f32.mrb[8].mxu0  ;;  %v1368_v41 = vpop.f32.mrb[14].mxu1 }
 0x483   :  { %v1612_v38 = vrot.slane %v1297_v22, 2  ;;  %v1299_v47 = vpop.f32.mrb[9].mxu0  ;;  %v1370_v62 = vpop.f32.mrb[15].mxu1  ;;  %v1631_v57 = vadd.f32 %v7789_v55, %v1368_v41 }
 0x484   :  { %v1622_v11 = vrot.slane %v1299_v47, 2  ;;  %v1640_v47 = vrot.slane %v6891_v52, 6 }
 0x485   :  { %v1614_v9 = vadd.f32 %v1612_v38, %v7787_v53  ;;  %v1633_v22 = vrot.slane %v1631_v57, 2 }
 0x486   :  { %v1624_v36 = vadd.f32 %v1622_v11, %v7788_v17 }
 0x487   :  { %v4028_v35 = vmul.f32 -1.442695, %v1614_v9 }
 0x488   :  { %v4029_v3 = vmul.f32 -1.442695, %v1624_v36 }
 0x489   :  { %5936 = vpow2.f32 %v4028_v35 }
 0x48a   :  { %5938 = vpow2.f32 %v4029_v3  ;;  %v1444_v3 = vadd.f32 %v1370_v62, %v7748_v15 }
 0x493   :  { %v5937_v49 = vpop.eup %5936 }
 0x494   :  { %v5939_v58 = vpop.eup %5938  ;;  %v1618_v43 = vadd.f32 1.0, %v5937_v49 }
 0x495   :  { %v1628_v18 = vadd.f32 1.0, %v5939_v58 }
 0x496   :  { %5940 = vrcp.f32 %v1618_v43 }
 0x497   :  { %5942 = vrcp.f32 %v1628_v18 }
 0x4a0   :  { %v5941_v42 = vpop.eup %5940 }
 0x4a1   :  { %v5943_v30 = vpop.eup %5942  ;;  %v1635_v53 = vmul.f32 %v5941_v42, %v1633_v22 }
 0x4a2   :  { %v1439_v38 = vpop.f32.mrb[10].mxu0  ;;  %v1642_v11 = vmul.f32 %v5943_v30, %v1640_v47  ;;  %v1638_v18 = vsub.f32 1.0, %v5943_v30 }
 0x4a3   :  { %v1636_v17 = vadd.f32 %v1635_v53, %v7749_v23  ;;  %v1445_v9 = vadd.f32 %v1439_v38, %v6724_v37  ;;  %v1441_v35 = vpop.f32.mrb[11].mxu0 }
 0x4a4   :  { %v1513_v36 = vpop.f32.mrb[16].mxu1 }
 0x4a5   :  { %5944 = vtanh.f32 %v1636_v17  ;;  %v1588_v43 = vadd.f32 %v1513_v36, %v1444_v3  ;;  %v1515_v58 = vpop.f32.mrb[17].mxu1  ;;  %v1446_v3 = vadd.f32 %v1441_v35, %v7754_v44 }
 0x4a6   :  { %v1595_v49 = vadd.f32 %v1515_v58, %v1445_v9 }
 0x4a7   :  { %v4026_v57 = vmul.f32 -1.442695, %v1588_v43 }
 0x4a8   :  { %v4027_v55 = vmul.f32 -1.442695, %v1595_v49 }
 0x4a9   :  { %5946 = vpow2.f32 %v4026_v57 }
 0x4aa   :  { %5948 = vpow2.f32 %v4027_v55  ;;  %v7793_v55 = vld [vmem:[#allocation70_spill] sm:$0xff] }
 0x4af   :  { %v5945_v52 = vpop.eup %5944 }
 0x4b0   :  { %v1639_v42 = vmul.f32 %v5945_v52, %v1638_v18  ;;  %v7791_v18 = vld [vmem:[#allocation27_spill] sm:$0xff]  ;;  %v7792_v52 = vld [vmem:[#allocation30_spill] sm:$0xff] }
 0x4b2   :  { %v1643_v41 = vadd.f32 %v1642_v11, %v1639_v42  ;;  %v7794_v42 = vld [vmem:[#allocation31_spill] sm:$0xff] }
 0x4b3   :  { %v5947_v22 = vpop.eup %5946 }
 0x4b4   :  { %v6994_v23 = vrot.slane %v1643_v41, 6  ;;  %v1592_v62 = vadd.f32 1.0, %v5947_v22  ;;  %v5949_v30 = vpop.eup %5948  ;;  %v7795_v41 = vld [vmem:[#allocation34_spill] sm:$0xff]  ;;  %v7796_v22 = vld [vmem:[#allocation71_spill] sm:$0xff] }
 0x4b5   :  { %v1599_v47 = vadd.f32 1.0, %v5949_v30  ;;  %v7798_v30 = vld [vmem:[#allocation38_spill] sm:$0xff] }
 0x4b6   :  { %1712 = vmatmul.mubr.f32.vlgmr.msra.gmra.mrb[18].mxu1 %v6994_v23  ;;  %1783 = vmatmul.mubr.f32.vlgmr.msra.gmra.mrb[14].mxu0 %v6994_v23  ;;  %5950 = vrcp.f32 %v1592_v62  ;;  %v7797_v62 = vld [vmem:[#allocation35_spill] sm:$0xff] }
 0x4b7   :  { %5111 = vmatpush1.bf16.msra.mxu1 %v6623_v31  ;;  %5143 = vmatpush1.bf16.msra.mxu0 %v6742_v7  ;;  %5952 = vrcp.f32 %v1599_v47  ;;  %v7799_v47 = vld [vmem:[#allocation72_spill] sm:$0xff] }
 0x4b8   :  { %5113 = vmatprep.subr.bf16.mxu1 %v6627_v32  ;;  %5145 = vmatprep.subr.bf16.mxu0 %v6747_v27 }
 0x4b9   :  { %1853 = vmatprep.mubr.f32.mxu1 %v7718_v0  ;;  %1927 = vmatprep.mubr.f32.mxu0 %v7718_v0 }
 0x4bb   :  { %5115 = vmatpush1.bf16.msra.mxu1 %v6632_v50  ;;  %5147 = vmatpush1.bf16.msra.mxu0 %v6753_v54 }
 0x4bc   :  { %5117 = vmatprep.subr.bf16.mxu1 %v6636_v51  ;;  %5149 = vmatprep.subr.bf16.mxu0 %v6757_v25 }
 0x4bf   :  { %5119 = vmatpush1.bf16.msra.mxu1 %v6642_v10  ;;  %5151 = vmatpush1.bf16.msra.mxu0 %v7750_v48 }
 0x4c0   :  { %5121 = vmatprep.subr.bf16.mxu1 %v7751_v16  ;;  %5153 = vmatprep.subr.bf16.mxu0 %v7752_v29  ;;  %v5951_v17 = vpop.eup %5950 }
 0x4c2   :  { %v1584_v53 = vpop.f32.mrb[12].mxu0 }
 0x4c3   :  { %v1602_v38 = vadd.f32 %v7753_v8, %v1584_v53  ;;  %v4320_v11 = vpop.f32.mrb[13].mxu0  ;;  %5123 = vmatpush1.bf16.msra.mxu1 %v6650_v40  ;;  %5155 = vmatpush1.bf16.msra.mxu0 %v6771_v61  ;;  %v5953_v8 = vpop.eup %5952  ;;  %v7800_v53 = vld [vmem:[#allocation39_spill] sm:$0xff] }
 0x4c4   :  { %5125 = vmatprep.subr.bf16.mxu1 %v6653_v45  ;;  %5157 = vmatprep.subr.bf16.mxu0 %v6775_v4  ;;  %v1606_v35 = vsub.f32 1.0, %v5953_v8  ;;  %v1608_v49 = vmul.f32 %v5953_v8, %v6931_v26  ;;  %v7802_v11 = vld [vmem:[#allocation73_spill] sm:$0xff]  ;;  %v7807_v8 = vld [vmem:[#allocation50_spill] sm:$0xff] }
 0x4c5   :  { %v1603_v9 = vmul.f32 %v5951_v17, %v1602_v38  ;;  %v7801_v38 = vld [vmem:[#allocation42_spill] sm:$0xff]  ;;  %v7803_v17 = vld [vmem:[#allocation43_spill] sm:$0xff]  ;;  %v7812_v26 = vld [vmem:[#allocation25_spill] sm:$0xff] }
 0x4c7   :  { %v1604_v36 = vadd.f32 %v1603_v9, %v1446_v3  ;;  %5127 = vmatpush1.bf16.msra.mxu1 %v6658_v2  ;;  %5159 = vmatpush1.bf16.msra.mxu0 %v6779_v28  ;;  %v7804_v3 = vld [vmem:[#allocation46_spill] sm:$0xff] }
 0x4c8   :  { %5129 = vmatprep.subr.bf16.mxu1 %v6661_v6  ;;  %5161 = vmatprep.subr.bf16.mxu0 %v6785_v21  ;;  %v7805_v9 = vld [vmem:[#allocation74_spill] sm:$0xff] }
 0x4c9   :  { %5954 = vtanh.f32 %v1604_v36  ;;  %v7806_v36 = vld [vmem:[#allocation47_spill] sm:$0xff] }
 0x4cb   :  { %5131 = vmatpush1.bf16.msra.mxu1 %v6666_v19  ;;  %5163 = vmatpush1.bf16.msra.mxu0 %v6789_v59 }
 0x4cc   :  { %5133 = vmatprep.subr.bf16.mxu1 %v6669_v46  ;;  %5165 = vmatprep.subr.bf16.mxu0 %v6793_v24 }
 0x4cf   :  { %5135 = vmatpush1.bf16.msra.mxu1 %v6674_v5  ;;  %5167 = vmatpush1.bf16.msra.mxu0 %v6797_v33 }
 0x4d0   :  { %5137 = vmatprep.subr.bf16.mxu1 %v6677_v13  ;;  %5169 = vmatprep.subr.bf16.mxu0 %v6801_v1 }
 0x4d3   :  { %v5955_v43 = vpop.eup %5954  ;;  %5139 = vmatpush1.bf16.msra.mxu1 %v6682_v20  ;;  %5171 = vmatpush1.bf16.msra.mxu0 %v6805_v12 }
 0x4d4   :  { %5172 = vmatprep.subr.bf16.mxu1 %v7755_v63  ;;  %v1607_v58 = vmul.f32 %v5955_v43, %v1606_v35  ;;  %5197 = vmatprep.subr.bf16.mxu0 %v6488_v14  ;;  %v7808_v35 = vld [vmem:[#allocation75_spill] sm:$0xff]  ;;  %v7809_v43 = vld [vmem:[#allocation24_spill] sm:$0xff] }
 0x4d6   :  { %1854 = vmatmul.mubr.f32.vlgmr.msra.gmra.mrb[20].mxu1 %v6994_v23  ;;  %v7036_v57 = vadd.f32 %v1608_v49, %v1607_v58  ;;  %v7810_v58 = vld [vmem:[#allocation51_spill] sm:$0xff]  ;;  %v7811_v49 = vld [vmem:[#allocation53_spill] sm:$0xff] }
 0x4d7   :  { %5174 = vmatpush3.bf16.msra.mxu1 %v6811_v56  ;;  %4353 = vmatprep.mubr.msk.f32.mxu1 %vm6279_vm1, %v7718_v0 }
 0x4d8   :  { %7790 = vst [vmem:[#allocation61_spill] sm:$0xff] %v7036_v57  ;;  %1928 = vmatmul.mubr.f32.vlgmr.msra.gmra.mrb[16].mxu0 %v7036_v57  ;;  %5175 = vmatprep.subr.bf16.mxu1 %v7755_v63 }
 0x4d9   :  { %5199 = vmatpush1.bf16.msra.mxu0 %v7757_v39  ;;  %2113 = vmatprep.mubr.f32.mxu0 %v7718_v0 }
 0x4da   :  { %5201 = vmatprep.subr.bf16.mxu0 %v7758_v34 }
 0x4db   :  { %5177 = vmatpush3.bf16.msra.mxu1 %v6818_v60 }
 0x4dc   :  { %5178 = vmatprep.subr.bf16.mxu1 %v7755_v63 }
 0x4dd   :  { %5203 = vmatpush1.bf16.msra.mxu0 %v7791_v18 }
 0x4de   :  { %5205 = vmatprep.subr.bf16.mxu0 %v7792_v52 }
 0x4df   :  { %5180 = vmatpush3.bf16.msra.mxu1 %v7793_v55 }
 0x4e0   :  { %5181 = vmatprep.subr.bf16.mxu1 %v7755_v63 }
 0x4e1   :  { %5207 = vmatpush1.bf16.msra.mxu0 %v7794_v42 }
 0x4e2   :  { %5209 = vmatprep.subr.bf16.mxu0 %v7795_v41 }
 0x4e3   :  { %5183 = vmatpush3.bf16.msra.mxu1 %v7796_v22 }
 0x4e4   :  { %5184 = vmatprep.subr.bf16.mxu1 %v7755_v63 }
 0x4e5   :  { %5211 = vmatpush1.bf16.msra.mxu0 %v7797_v62 }
 0x4e6   :  { %5213 = vmatprep.subr.bf16.mxu0 %v7798_v30 }
 0x4e7   :  { %5186 = vmatpush3.bf16.msra.mxu1 %v7799_v47 }
 0x4e8   :  { %5187 = vmatprep.subr.bf16.mxu1 %v7755_v63 }
 0x4e9   :  { %5215 = vmatpush1.bf16.msra.mxu0 %v7800_v53  ;;  %v7828_v53 = vld [vmem:[#allocation57_spill] sm:$0xff] }
 0x4ea   :  { %5217 = vmatprep.subr.bf16.mxu0 %v7801_v38  ;;  %v7823_v38 = vld [vmem:[#allocation48_spill] sm:$0xff] }
 0x4eb   :  { %5189 = vmatpush3.bf16.msra.mxu1 %v7802_v11 }
 0x4ec   :  { %5190 = vmatprep.subr.bf16.mxu1 %v7755_v63 }
 0x4ed   :  { %5219 = vmatpush1.bf16.msra.mxu0 %v7803_v17  ;;  %v7814_v17 = vld [vmem:[#allocation29_spill] sm:$0xff] }
 0x4ee   :  { %5221 = vmatprep.subr.bf16.mxu0 %v7804_v3  ;;  %v7813_v3 = vld [vmem:[#allocation28_spill] sm:$0xff] }
 0x4ef   :  { %5192 = vmatpush3.bf16.msra.mxu1 %v7805_v9  ;;  %v7820_v9 = vld [vmem:[#allocation41_spill] sm:$0xff] }
 0x4f0   :  { %5193 = vmatprep.subr.bf16.mxu1 %v7755_v63 }
 0x4f1   :  { %5223 = vmatpush1.bf16.msra.mxu0 %v7806_v36  ;;  %v7815_v36 = vld [vmem:[#allocation32_spill] sm:$0xff] }
 0x4f2   :  { %5225 = vmatprep.subr.bf16.mxu0 %v7807_v8  ;;  %v7816_v8 = vld [vmem:[#allocation33_spill] sm:$0xff] }
 0x4f3   :  { %5195 = vmatpush3.bf16.msra.mxu1 %v7808_v35  ;;  %v7817_v35 = vld [vmem:[#allocation36_spill] sm:$0xff] }
 0x4f4   :  { %5229 = vmatprep.subr.bf16.mxu1 %v7809_v43  ;;  %v7818_v43 = vld [vmem:[#allocation37_spill] sm:$0xff] }
 0x4f5   :  { %5227 = vmatpush1.bf16.msra.mxu0 %v7810_v58  ;;  %v7819_v58 = vld [vmem:[#allocation40_spill] sm:$0xff] }
 0x4f6   :  { %4354 = vmatmul.mubr.f32.vlgmr.msra.gmra.mrb[22].mxu1 %v7036_v57  ;;  %5261 = vmatprep.subr.bf16.mxu0 %v7811_v49  ;;  %v7821_v49 = vld [vmem:[#allocation44_spill] sm:$0xff] }
 0x4f7   :  { %5231 = vmatpush1.bf16.msra.mxu1 %v7812_v26  ;;  %2184 = vmatprep.mubr.f32.mxu1 %v7718_v0  ;;  %v7822_v26 = vld [vmem:[#allocation45_spill] sm:$0xff] }
 0x4f8   :  { %5233 = vmatprep.subr.bf16.mxu1 %v7813_v3  ;;  %v7824_v3 = vld [vmem:[#allocation49_spill] sm:$0xff] }
 0x4fb   :  { %5235 = vmatpush1.bf16.msra.mxu1 %v7814_v17  ;;  %v7825_v17 = vld [vmem:[#allocation52_spill] sm:$0xff] }
 0x4fc   :  { %5237 = vmatprep.subr.bf16.mxu1 %v7815_v36  ;;  %v7826_v36 = vld [vmem:[#allocation54_spill] sm:$0xff] }
 0x4ff   :  { %5239 = vmatpush1.bf16.msra.mxu1 %v7816_v8  ;;  %v7827_v8 = vld [vmem:[#allocation63_spill] sm:$0xff] }
 0x500   :  { %5241 = vmatprep.subr.bf16.mxu1 %v7817_v35 }
 0x503   :  { %5243 = vmatpush1.bf16.msra.mxu1 %v7818_v43 }
 0x504   :  { %5245 = vmatprep.subr.bf16.mxu1 %v7819_v58 }
 0x507   :  { %5247 = vmatpush1.bf16.msra.mxu1 %v7820_v9 }
 0x508   :  { %5249 = vmatprep.subr.bf16.mxu1 %v7821_v49  ;;  %v7829_v49 = vld [vmem:[#allocation58_spill] sm:$0xff] }
 0x50b   :  { %5251 = vmatpush1.bf16.msra.mxu1 %v7822_v26 }
 0x50c   :  { %5253 = vmatprep.subr.bf16.mxu1 %v7823_v38 }
 0x50f   :  { %5255 = vmatpush1.bf16.msra.mxu1 %v7824_v3 }
 0x510   :  { %5257 = vmatprep.subr.bf16.mxu1 %v7825_v17 }
 0x513   :  { %5259 = vmatpush1.bf16.msra.mxu1 %v7826_v36 }
 0x514   :  { %5293 = vmatprep.subr.bf16.mxu1 %v7827_v8  ;;  %v7097_v8 = vld [vmem:[%s7548_s6] ss:$0 sm:$0xff] }
 0x515   :  { %7830 = vst [vmem:[#allocation67_spill] sm:$0xff] %v7097_v8 }
 0x589   :  { %v1713_v35 = vpop.f32.mrb[18].mxu1  ;;  %v1784_v43 = vpop.f32.mrb[14].mxu0 }
 0x58a   :  { %v2027_v58 = vadd.f32 %v1713_v35, %v7828_v53  ;;  %v1715_v11 = vpop.f32.mrb[19].mxu1  ;;  %v1786_v9 = vpop.f32.mrb[15].mxu0  ;;  %v2041_v35 = vadd.f32 %v7097_v8, %v1784_v43 }
 0x58b   :  { %v2034_v62 = vadd.f32 %v1715_v11, %v7829_v49 }
 0x58c   :  { %v4032_v30 = vmul.f32 -1.442695, %v2027_v58  ;;  %v7831_v58 = vld [vmem:[#allocation59_spill] sm:$0xff] }
 0x58d   :  { %v4033_v26 = vmul.f32 -1.442695, %v2034_v62 }
 0x58e   :  { %5956 = vpow2.f32 %v4032_v30 }
 0x58f   :  { %5958 = vpow2.f32 %v4033_v26  ;;  %v1860_v26 = vadd.f32 %v1786_v9, %v7748_v15 }
 0x598   :  { %v5957_v38 = vpop.eup %5956 }
 0x599   :  { %v2031_v3 = vadd.f32 1.0, %v5957_v38  ;;  %v5959_v17 = vpop.eup %5958 }
 0x59a   :  { %v2038_v47 = vadd.f32 1.0, %v5959_v17 }
 0x59b   :  { %5960 = vrcp.f32 %v2031_v3 }
 0x59c   :  { %5962 = vrcp.f32 %v2038_v47 }
 0x5a5   :  { %v5961_v53 = vpop.eup %5960 }
 0x5a6   :  { %v2042_v36 = vmul.f32 %v5961_v53, %v2041_v35  ;;  %v5963_v22 = vpop.eup %5962 }
 0x5a7   :  { %v2045_v43 = vsub.f32 1.0, %v5963_v22  ;;  %v2047_v47 = vmul.f32 %v5963_v22, %v6994_v23 }
 0x5a8   :  { %v2043_v11 = vadd.f32 %v2042_v36, %v7831_v58 }
 0x5a9   :  { %v1855_v30 = vpop.f32.mrb[20].mxu1 }
 0x5aa   :  { %5964 = vtanh.f32 %v2043_v11  ;;  %v1861_v62 = vadd.f32 %v1855_v30, %v6724_v37  ;;  %v1857_v38 = vpop.f32.mrb[21].mxu1 }
 0x5ab   :  { %v1929_v17 = vpop.f32.mrb[16].mxu0 }
 0x5ac   :  { %v2004_v3 = vadd.f32 %v1929_v17, %v1860_v26  ;;  %v1931_v49 = vpop.f32.mrb[17].mxu0  ;;  %v1862_v26 = vadd.f32 %v1857_v38, %v7754_v44 }
 0x5ad   :  { %v2011_v41 = vadd.f32 %v1931_v49, %v1861_v62 }
 0x5ae   :  { %v4030_v42 = vmul.f32 -1.442695, %v2004_v3 }
 0x5af   :  { %v4031_v36 = vmul.f32 -1.442695, %v2011_v41 }
 0x5b0   :  { %5966 = vpow2.f32 %v4030_v42 }
 0x5b1   :  { %5968 = vpow2.f32 %v4031_v36 }
 0x5b4   :  { %v5965_v8 = vpop.eup %5964 }
 0x5b5   :  { %v2046_v53 = vmul.f32 %v5965_v8, %v2045_v43  ;;  %v7129_v8 = vld [vmem:[%s7549_s7] ss:$0 sm:$0xff] }
 0x5b7   :  { %v7104_v35 = vadd.f32 %v2047_v47, %v2046_v53 }
 0x5b9   :  { %2114 = vmatmul.mubr.f32.vlgmr.msra.gmra.mrb[18].mxu0 %v7104_v35  ;;  %2185 = vmatmul.mubr.f32.vlgmr.msra.gmra.mrb[24].mxu1 %v7104_v35 }
 0x5ba   :  { %v5967_v9 = vpop.eup %5966  ;;  %5263 = vmatpush1.bf16.msra.mxu0 %v6623_v31  ;;  %5295 = vmatpush1.bf16.msra.mxu1 %v6742_v7 }
 0x5bb   :  { %5265 = vmatprep.subr.bf16.mxu0 %v6627_v32  ;;  %5297 = vmatprep.subr.bf16.mxu1 %v6747_v27  ;;  %v2008_v23 = vadd.f32 1.0, %v5967_v9  ;;  %v5969_v42 = vpop.eup %5968  ;;  %v7833_v9 = vld [vmem:[#allocation71_spill] sm:$0xff] }
 0x5bc   :  { %2255 = vmatprep.mubr.f32.mxu0 %v7718_v0  ;;  %2329 = vmatprep.mubr.f32.mxu1 %v7718_v0  ;;  %v2015_v41 = vadd.f32 1.0, %v5969_v42  ;;  %v7835_v42 = vld [vmem:[#allocation34_spill] sm:$0xff] }
 0x5bd   :  { %5970 = vrcp.f32 %v2008_v23  ;;  %v7834_v23 = vld [vmem:[#allocation31_spill] sm:$0xff] }
 0x5be   :  { %5267 = vmatpush1.bf16.msra.mxu0 %v6632_v50  ;;  %5299 = vmatpush1.bf16.msra.mxu1 %v6753_v54  ;;  %5972 = vrcp.f32 %v2015_v41  ;;  %v7836_v41 = vld [vmem:[#allocation72_spill] sm:$0xff] }
 0x5bf   :  { %5269 = vmatprep.subr.bf16.mxu0 %v6636_v51  ;;  %5301 = vmatprep.subr.bf16.mxu1 %v6757_v25 }
 0x5c2   :  { %5271 = vmatpush1.bf16.msra.mxu0 %v6642_v10  ;;  %5303 = vmatpush1.bf16.msra.mxu1 %v7750_v48 }
 0x5c3   :  { %5273 = vmatprep.subr.bf16.mxu0 %v7751_v16  ;;  %5305 = vmatprep.subr.bf16.mxu1 %v7752_v29 }
 0x5c6   :  { %5275 = vmatpush1.bf16.msra.mxu0 %v6650_v40  ;;  %5307 = vmatpush1.bf16.msra.mxu1 %v6771_v61 }
 0x5c7   :  { %5277 = vmatprep.subr.bf16.mxu0 %v6653_v45  ;;  %5309 = vmatprep.subr.bf16.mxu1 %v6775_v4  ;;  %v5971_v30 = vpop.eup %5970 }
 0x5c8   :  { %v5973_v38 = vpop.eup %5972 }
 0x5c9   :  { %v2000_v22 = vpop.f32.mrb[22].mxu1  ;;  %v2022_v3 = vsub.f32 1.0, %v5973_v38  ;;  %v2024_v47 = vmul.f32 %v5973_v38, %v7036_v57  ;;  %v7844_v38 = vld [vmem:[#allocation46_spill] sm:$0xff]  ;;  %v7849_v57 = vld [vmem:[#allocation25_spill] sm:$0xff] }
 0x5ca   :  { %v2018_v49 = vadd.f32 %v7129_v8, %v2000_v22  ;;  %v4355_v11 = vpop.f32.mrb[23].mxu1  ;;  %5279 = vmatpush1.bf16.msra.mxu0 %v6658_v2  ;;  %5311 = vmatpush1.bf16.msra.mxu1 %v6779_v28  ;;  %v7837_v22 = vld [vmem:[#allocation35_spill] sm:$0xff] }
 0x5cb   :  { %5281 = vmatprep.subr.bf16.mxu0 %v6661_v6  ;;  %5313 = vmatprep.subr.bf16.mxu1 %v6785_v21  ;;  %v7839_v11 = vld [vmem:[#allocation73_spill] sm:$0xff] }
 0x5cc   :  { %v2019_v62 = vmul.f32 %v5971_v30, %v2018_v49  ;;  %v7838_v49 = vld [vmem:[#allocation38_spill] sm:$0xff]  ;;  %v7840_v30 = vld [vmem:[#allocation39_spill] sm:$0xff] }
 0x5ce   :  { %v2020_v17 = vadd.f32 %v2019_v62, %v1862_v26  ;;  %5283 = vmatpush1.bf16.msra.mxu0 %v6666_v19  ;;  %5315 = vmatpush1.bf16.msra.mxu1 %v6789_v59  ;;  %v7841_v26 = vld [vmem:[#allocation42_spill] sm:$0xff] }
 0x5cf   :  { %5285 = vmatprep.subr.bf16.mxu0 %v6669_v46  ;;  %5317 = vmatprep.subr.bf16.mxu1 %v6793_v24  ;;  %v7842_v62 = vld [vmem:[#allocation74_spill] sm:$0xff] }
 0x5d0   :  { %5974 = vtanh.f32 %v2020_v17  ;;  %v7843_v17 = vld [vmem:[#allocation43_spill] sm:$0xff] }
 0x5d2   :  { %5287 = vmatpush1.bf16.msra.mxu0 %v6674_v5  ;;  %5319 = vmatpush1.bf16.msra.mxu1 %v6797_v33 }
 0x5d3   :  { %5289 = vmatprep.subr.bf16.mxu0 %v6677_v13  ;;  %5321 = vmatprep.subr.bf16.mxu1 %v6801_v1 }
 0x5d6   :  { %5291 = vmatpush1.bf16.msra.mxu0 %v6682_v20  ;;  %5323 = vmatpush1.bf16.msra.mxu1 %v6805_v12 }
 0x5d7   :  { %5324 = vmatprep.subr.bf16.mxu0 %v7755_v63  ;;  %5349 = vmatprep.subr.bf16.mxu1 %v6488_v14 }
 0x5d9   :  { %2256 = vmatmul.mubr.f32.vlgmr.msra.gmra.mrb[20].mxu0 %v7104_v35 }
 0x5da   :  { %v5975_v43 = vpop.eup %5974  ;;  %5326 = vmatpush3.bf16.msra.mxu0 %v6811_v56  ;;  %4388 = vmatprep.mubr.msk.f32.mxu0 %vm6279_vm1, %v7718_v0 }
 0x5db   :  { %5327 = vmatprep.subr.bf16.mxu0 %v7755_v63  ;;  %v2023_v53 = vmul.f32 %v5975_v43, %v2022_v3  ;;  %v7845_v3 = vld [vmem:[#allocation75_spill] sm:$0xff]  ;;  %v7846_v43 = vld [vmem:[#allocation24_spill] sm:$0xff] }
 0x5dd   :  { %v7155_v36 = vadd.f32 %v2024_v47, %v2023_v53  ;;  %v7847_v53 = vld [vmem:[#allocation47_spill] sm:$0xff]  ;;  %v7848_v47 = vld [vmem:[#allocation50_spill] sm:$0xff] }
 0x5de   :  { %5329 = vmatpush3.bf16.msra.mxu0 %v6818_v60 }
 0x5df   :  { %7832 = vst [vmem:[#allocation62_spill] sm:$0xff] %v7155_v36  ;;  %2330 = vmatmul.mubr.f32.vlgmr.msra.gmra.mrb[26].mxu1 %v7155_v36  ;;  %5330 = vmatprep.subr.bf16.mxu0 %v7755_v63 }
 0x5e0   :  { %5351 = vmatpush1.bf16.msra.mxu1 %v7757_v39  ;;  %2530 = vmatprep.mubr.f32.mxu1 %v7718_v0 }
 0x5e1   :  { %5353 = vmatprep.subr.bf16.mxu1 %v7758_v34 }
 0x5e2   :  { %5332 = vmatpush3.bf16.msra.mxu0 %v7793_v55 }
 0x5e3   :  { %5333 = vmatprep.subr.bf16.mxu0 %v7755_v63 }
 0x5e4   :  { %5355 = vmatpush1.bf16.msra.mxu1 %v7791_v18 }
 0x5e5   :  { %5357 = vmatprep.subr.bf16.mxu1 %v7792_v52 }
 0x5e6   :  { %5335 = vmatpush3.bf16.msra.mxu0 %v7833_v9  ;;  %v7868_v9 = vld [vmem:[#allocation58_spill] sm:$0xff] }
 0x5e7   :  { %5336 = vmatprep.subr.bf16.mxu0 %v7755_v63 }
 0x5e8   :  { %5359 = vmatpush1.bf16.msra.mxu1 %v7834_v23 }
 0x5e9   :  { %5361 = vmatprep.subr.bf16.mxu1 %v7835_v42 }
 0x5ea   :  { %5338 = vmatpush3.bf16.msra.mxu0 %v7836_v41 }
 0x5eb   :  { %5339 = vmatprep.subr.bf16.mxu0 %v7755_v63 }
 0x5ec   :  { %5363 = vmatpush1.bf16.msra.mxu1 %v7837_v22  ;;  %v7867_v22 = vld [vmem:[#allocation57_spill] sm:$0xff] }
 0x5ed   :  { %5365 = vmatprep.subr.bf16.mxu1 %v7838_v49 }
 0x5ee   :  { %5341 = vmatpush3.bf16.msra.mxu0 %v7839_v11  ;;  %v7851_v11 = vld [vmem:[#allocation51_spill] sm:$0xff] }
 0x5ef   :  { %5342 = vmatprep.subr.bf16.mxu0 %v7755_v63 }
 0x5f0   :  { %5367 = vmatpush1.bf16.msra.mxu1 %v7840_v30  ;;  %v7860_v30 = vld [vmem:[#allocation44_spill] sm:$0xff] }
 0x5f1   :  { %5369 = vmatprep.subr.bf16.mxu1 %v7841_v26  ;;  %v7857_v26 = vld [vmem:[#allocation37_spill] sm:$0xff] }
 0x5f2   :  { %5344 = vmatpush3.bf16.msra.mxu0 %v7842_v62  ;;  %v7850_v62 = vld [vmem:[#allocation28_spill] sm:$0xff] }
 0x5f3   :  { %5345 = vmatprep.subr.bf16.mxu0 %v7755_v63 }
 0x5f4   :  { %5371 = vmatpush1.bf16.msra.mxu1 %v7843_v17  ;;  %v7852_v17 = vld [vmem:[#allocation53_spill] sm:$0xff] }
 0x5f5   :  { %5373 = vmatprep.subr.bf16.mxu1 %v7844_v38  ;;  %v7853_v38 = vld [vmem:[#allocation29_spill] sm:$0xff] }
 0x5f6   :  { %5347 = vmatpush3.bf16.msra.mxu0 %v7845_v3  ;;  %v7854_v3 = vld [vmem:[#allocation32_spill] sm:$0xff] }
 0x5f7   :  { %5381 = vmatprep.subr.bf16.mxu0 %v7846_v43  ;;  %v7855_v43 = vld [vmem:[#allocation33_spill] sm:$0xff] }
 0x5f8   :  { %5375 = vmatpush1.bf16.msra.mxu1 %v7847_v53  ;;  %v7856_v53 = vld [vmem:[#allocation36_spill] sm:$0xff] }
 0x5f9   :  { %4389 = vmatmul.mubr.f32.vlgmr.msra.gmra.mrb[22].mxu0 %v7155_v36  ;;  %5377 = vmatprep.subr.bf16.mxu1 %v7848_v47  ;;  %v7858_v47 = vld [vmem:[#allocation40_spill] sm:$0xff] }
 0x5fa   :  { %5383 = vmatpush1.bf16.msra.mxu0 %v7849_v57  ;;  %2601 = vmatprep.mubr.f32.mxu0 %v7718_v0  ;;  %v7859_v57 = vld [vmem:[#allocation41_spill] sm:$0xff] }
 0x5fb   :  { %5385 = vmatprep.subr.bf16.mxu0 %v7850_v62  ;;  %v7861_v62 = vld [vmem:[#allocation45_spill] sm:$0xff] }
 0x5fc   :  { %5379 = vmatpush1.bf16.msra.mxu1 %v7851_v11  ;;  %v7862_v11 = vld [vmem:[#allocation48_spill] sm:$0xff] }
 0x5fd   :  { %5413 = vmatprep.subr.bf16.mxu1 %v7852_v17  ;;  %v7863_v17 = vld [vmem:[#allocation49_spill] sm:$0xff] }
 0x5fe   :  { %5387 = vmatpush1.bf16.msra.mxu0 %v7853_v38  ;;  %v7864_v38 = vld [vmem:[#allocation52_spill] sm:$0xff] }
 0x5ff   :  { %5389 = vmatprep.subr.bf16.mxu0 %v7854_v3  ;;  %v7865_v3 = vld [vmem:[#allocation54_spill] sm:$0xff] }
 0x602   :  { %5391 = vmatpush1.bf16.msra.mxu0 %v7855_v43  ;;  %v7866_v43 = vld [vmem:[#allocation63_spill] sm:$0xff] }
 0x603   :  { %5393 = vmatprep.subr.bf16.mxu0 %v7856_v53 }
 0x606   :  { %5395 = vmatpush1.bf16.msra.mxu0 %v7857_v26 }
 0x607   :  { %5397 = vmatprep.subr.bf16.mxu0 %v7858_v47 }
 0x60a   :  { %5399 = vmatpush1.bf16.msra.mxu0 %v7859_v57 }
 0x60b   :  { %5401 = vmatprep.subr.bf16.mxu0 %v7860_v30 }
 0x60e   :  { %5403 = vmatpush1.bf16.msra.mxu0 %v7861_v62 }
 0x60f   :  { %5405 = vmatprep.subr.bf16.mxu0 %v7862_v11 }
 0x612   :  { %5407 = vmatpush1.bf16.msra.mxu0 %v7863_v17 }
 0x613   :  { %5409 = vmatprep.subr.bf16.mxu0 %v7864_v38 }
 0x616   :  { %5411 = vmatpush1.bf16.msra.mxu0 %v7865_v3 }
 0x617   :  { %5445 = vmatprep.subr.bf16.mxu0 %v7866_v43  ;;  %v7869_v43 = vld [vmem:[#allocation67_spill] sm:$0xff] }
 0x68c   :  { %v2115_v53 = vpop.f32.mrb[18].mxu0  ;;  %v2186_v26 = vpop.f32.mrb[24].mxu1 }
 0x68d   :  { %v2430_v41 = vrot.slane %v2115_v53, 6  ;;  %v2117_v47 = vpop.f32.mrb[19].mxu0  ;;  %v2188_v49 = vpop.f32.mrb[25].mxu1  ;;  %v2449_v55 = vadd.f32 %v7869_v43, %v2186_v26 }
 0x68e   :  { %v2440_v57 = vrot.slane %v2117_v47, 6  ;;  %v2459_v47 = vrot.slane %v7104_v35, 6 }
 0x68f   :  { %v2432_v30 = vadd.f32 %v2430_v41, %v7867_v22  ;;  %v2451_v53 = vrot.slane %v2449_v55, 6 }
 0x690   :  { %v2442_v62 = vadd.f32 %v2440_v57, %v7868_v9 }
 0x691   :  { %v4036_v42 = vmul.f32 -1.442695, %v2432_v30 }
 0x692   :  { %v4037_v11 = vmul.f32 -1.442695, %v2442_v62 }
 0x693   :  { %5976 = vpow2.f32 %v4036_v42 }
 0x694   :  { %5978 = vpow2.f32 %v4037_v11  ;;  %v2262_v11 = vadd.f32 %v2188_v49, %v7748_v15 }
 0x69d   :  { %v5977_v17 = vpop.eup %5976 }
 0x69e   :  { %v5979_v38 = vpop.eup %5978  ;;  %v2436_v23 = vadd.f32 1.0, %v5977_v17 }
 0x69f   :  { %v2446_v3 = vadd.f32 1.0, %v5979_v38 }
 0x6a0   :  { %5980 = vrcp.f32 %v2436_v23 }
 0x6a1   :  { %5982 = vrcp.f32 %v2446_v3 }
 0x6aa   :  { %v5981_v52 = vpop.eup %5980 }
 0x6ab   :  { %v5983_v18 = vpop.eup %5982  ;;  %v2453_v41 = vmul.f32 %v5981_v52, %v2451_v53 }
 0x6ac   :  { %v2257_v22 = vpop.f32.mrb[20].mxu0  ;;  %v2461_v57 = vmul.f32 %v5983_v18, %v2459_v47  ;;  %v2456_v3 = vsub.f32 1.0, %v5983_v18 }
 0x6ad   :  { %v2454_v30 = vadd.f32 %v2453_v41, %v7831_v58  ;;  %v2259_v42 = vpop.f32.mrb[21].mxu0  ;;  %v2263_v62 = vadd.f32 %v2257_v22, %v6724_v37 }
 0x6af   :  { %5984 = vtanh.f32 %v2454_v30 }
 0x6b2   :  { %v2331_v23 = vpop.f32.mrb[26].mxu1 }
 0x6b3   :  { %v2406_v17 = vadd.f32 %v2331_v23, %v2262_v11  ;;  %v2333_v38 = vpop.f32.mrb[27].mxu1 }
 0x6b4   :  { %v2413_v26 = vadd.f32 %v2333_v38, %v2263_v62  ;;  %v2264_v62 = vadd.f32 %v2259_v42, %v7754_v44 }
 0x6b5   :  { %v4034_v55 = vmul.f32 -1.442695, %v2406_v17 }
 0x6b6   :  { %v4035_v43 = vmul.f32 -1.442695, %v2413_v26 }
 0x6b7   :  { %5986 = vpow2.f32 %v4034_v55 }
 0x6b8   :  { %5988 = vpow2.f32 %v4035_v43 }
 0x6b9   :  { %v5985_v35 = vpop.eup %5984 }
 0x6ba   :  { %v2457_v52 = vmul.f32 %v5985_v35, %v2456_v3 }
 0x6bc   :  { %v7214_v53 = vadd.f32 %v2461_v57, %v2457_v52  ;;  %v7871_v52 = vld [vmem:[#allocation30_spill] sm:$0xff] }
 0x6be   :  { %v2464_v47 = vrot.slane %v7214_v53, 2 }
 0x6c0   :  { %2531 = vmatmul.mubr.f32.vlgmr.msra.gmra.mrb[28].mxu1 %v2464_v47  ;;  %2602 = vmatmul.mubr.f32.vlgmr.msra.gmra.mrb[24].mxu0 %v2464_v47 }
 0x6c1   :  { %v5987_v49 = vpop.eup %5986  ;;  %5415 = vmatpush1.bf16.msra.mxu1 %v6623_v31  ;;  %5447 = vmatpush1.bf16.msra.mxu0 %v6742_v7 }
 0x6c2   :  { %v2410_v22 = vadd.f32 1.0, %v5987_v49  ;;  %5417 = vmatprep.subr.bf16.mxu1 %v6627_v32  ;;  %5449 = vmatprep.subr.bf16.mxu0 %v6747_v27  ;;  %v5989_v18 = vpop.eup %5988  ;;  %v7873_v49 = vld [vmem:[#allocation31_spill] sm:$0xff] }
 0x6c3   :  { %2672 = vmatprep.mubr.f32.mxu1 %v7718_v0  ;;  %2746 = vmatprep.mubr.f32.mxu0 %v7718_v0  ;;  %v2417_v43 = vadd.f32 1.0, %v5989_v18  ;;  %v7877_v18 = vld [vmem:[#allocation38_spill] sm:$0xff] }
 0x6c4   :  { %5990 = vrcp.f32 %v2410_v22  ;;  %v7874_v22 = vld [vmem:[#allocation34_spill] sm:$0xff] }
 0x6c5   :  { %5419 = vmatpush1.bf16.msra.mxu1 %v6632_v50  ;;  %5451 = vmatpush1.bf16.msra.mxu0 %v6753_v54  ;;  %5992 = vrcp.f32 %v2417_v43  ;;  %v7878_v43 = vld [vmem:[#allocation72_spill] sm:$0xff] }
 0x6c6   :  { %5421 = vmatprep.subr.bf16.mxu1 %v6636_v51  ;;  %5453 = vmatprep.subr.bf16.mxu0 %v6757_v25 }
 0x6c9   :  { %5423 = vmatpush1.bf16.msra.mxu1 %v6642_v10  ;;  %5455 = vmatpush1.bf16.msra.mxu0 %v7750_v48 }
 0x6ca   :  { %5425 = vmatprep.subr.bf16.mxu1 %v7751_v16  ;;  %5457 = vmatprep.subr.bf16.mxu0 %v7752_v29 }
 0x6cc   :  { %v2402_v41 = vpop.f32.mrb[22].mxu0 }
 0x6cd   :  { %v2420_v57 = vadd.f32 %v7129_v8, %v2402_v41  ;;  %v4390_v30 = vpop.f32.mrb[23].mxu0  ;;  %5427 = vmatpush1.bf16.msra.mxu1 %v6650_v40  ;;  %5459 = vmatpush1.bf16.msra.mxu0 %v6771_v61  ;;  %v7879_v41 = vld [vmem:[#allocation39_spill] sm:$0xff] }
 0x6ce   :  { %v5991_v11 = vpop.eup %5990  ;;  %5429 = vmatprep.subr.bf16.mxu1 %v6653_v45  ;;  %5461 = vmatprep.subr.bf16.mxu0 %v6775_v4  ;;  %v7881_v30 = vld [vmem:[#allocation73_spill] sm:$0xff] }
 0x6cf   :  { %v2421_v23 = vmul.f32 %v5991_v11, %v2420_v57  ;;  %v5993_v42 = vpop.eup %5992  ;;  %v7880_v57 = vld [vmem:[#allocation42_spill] sm:$0xff]  ;;  %v7882_v11 = vld [vmem:[#allocation43_spill] sm:$0xff] }
 0x6d0   :  { %v2424_v38 = vsub.f32 1.0, %v5993_v42  ;;  %v2426_v3 = vmul.f32 %v5993_v42, %v7155_v36  ;;  %v7886_v42 = vld [vmem:[#allocation50_spill] sm:$0xff]  ;;  %v7904_v36 = vld [vmem:[#allocation52_spill] sm:$0xff] }
 0x6d1   :  { %v2422_v17 = vadd.f32 %v2421_v23, %v2264_v62  ;;  %5431 = vmatpush1.bf16.msra.mxu1 %v6658_v2  ;;  %5463 = vmatpush1.bf16.msra.mxu0 %v6779_v28  ;;  %v7883_v62 = vld [vmem:[#allocation46_spill] sm:$0xff] }
 0x6d2   :  { %5433 = vmatprep.subr.bf16.mxu1 %v6661_v6  ;;  %5465 = vmatprep.subr.bf16.mxu0 %v6785_v21  ;;  %v7884_v23 = vld [vmem:[#allocation74_spill] sm:$0xff] }
 0x6d3   :  { %5994 = vtanh.f32 %v2422_v17  ;;  %v7885_v17 = vld [vmem:[#allocation47_spill] sm:$0xff] }
 0x6d5   :  { %5435 = vmatpush1.bf16.msra.mxu1 %v6666_v19  ;;  %5467 = vmatpush1.bf16.msra.mxu0 %v6789_v59 }
 0x6d6   :  { %5437 = vmatprep.subr.bf16.mxu1 %v6669_v46  ;;  %5469 = vmatprep.subr.bf16.mxu0 %v6793_v24 }
 0x6d9   :  { %5439 = vmatpush1.bf16.msra.mxu1 %v6674_v5  ;;  %5471 = vmatpush1.bf16.msra.mxu0 %v6797_v33 }
 0x6da   :  { %5441 = vmatprep.subr.bf16.mxu1 %v6677_v13  ;;  %5473 = vmatprep.subr.bf16.mxu0 %v6801_v1 }
 0x6dd   :  { %v5995_v26 = vpop.eup %5994  ;;  %5443 = vmatpush1.bf16.msra.mxu1 %v6682_v20  ;;  %5475 = vmatpush1.bf16.msra.mxu0 %v6805_v12 }
 0x6de   :  { %5476 = vmatprep.subr.bf16.mxu1 %v7755_v63  ;;  %v2425_v55 = vmul.f32 %v5995_v26, %v2424_v38  ;;  %5501 = vmatprep.subr.bf16.mxu0 %v6488_v14  ;;  %v7870_v14 = vld [vmem:[#allocation27_spill] sm:$0xff]  ;;  %v7888_v26 = vld [vmem:[#allocation24_spill] sm:$0xff] }
 0x6df   :  { %v7887_v38 = vld [vmem:[#allocation75_spill] sm:$0xff] }
 0x6e0   :  { %2673 = vmatmul.mubr.f32.vlgmr.msra.gmra.mrb[30].mxu1 %v2464_v47  ;;  %v7254_v35 = vadd.f32 %v2426_v3, %v2425_v55  ;;  %v7872_v47 = vld [vmem:[#allocation70_spill] sm:$0xff]  ;;  %v7889_v55 = vld [vmem:[#allocation51_spill] sm:$0xff]  ;;  %v7890_v3 = vld [vmem:[#allocation53_spill] sm:$0xff] }
 0x6e1   :  { %5478 = vmatpush3.bf16.msra.mxu1 %v6811_v56  ;;  %4423 = vmatprep.mubr.msk.f32.mxu1 %vm6279_vm1, %v7718_v0 }
 0x6e2   :  { %2747 = vmatmul.mubr.f32.vlgmr.msra.gmra.mrb[26].mxu0 %v7254_v35  ;;  %5479 = vmatprep.subr.bf16.mxu1 %v7755_v63 }
 0x6e3   :  { %5503 = vmatpush1.bf16.msra.mxu0 %v7757_v39  ;;  %2946 = vmatprep.mubr.f32.mxu0 %v7718_v0  ;;  %v7875_v39 = vld [vmem:[#allocation71_spill] sm:$0xff] }
 0x6e4   :  { %5505 = vmatprep.subr.bf16.mxu0 %v7758_v34  ;;  %v7876_v34 = vld [vmem:[#allocation35_spill] sm:$0xff] }
 0x6e5   :  { %5481 = vmatpush3.bf16.msra.mxu1 %v6818_v60 }
 0x6e6   :  { %5482 = vmatprep.subr.bf16.mxu1 %v7755_v63 }
 0x6e7   :  { %5507 = vmatpush1.bf16.msra.mxu0 %v7870_v14  ;;  %v7891_v14 = vld [vmem:[#allocation25_spill] sm:$0xff] }
 0x6e8   :  { %5509 = vmatprep.subr.bf16.mxu0 %v7871_v52  ;;  %v7892_v52 = vld [vmem:[#allocation28_spill] sm:$0xff] }
 0x6e9   :  { %5484 = vmatpush3.bf16.msra.mxu1 %v7872_v47 }
 0x6ea   :  { %5485 = vmatprep.subr.bf16.mxu1 %v7755_v63 }
 0x6eb   :  { %5511 = vmatpush1.bf16.msra.mxu0 %v7873_v49  ;;  %v7893_v49 = vld [vmem:[#allocation29_spill] sm:$0xff] }
 0x6ec   :  { %5513 = vmatprep.subr.bf16.mxu0 %v7874_v22  ;;  %v7894_v22 = vld [vmem:[#allocation32_spill] sm:$0xff] }
 0x6ed   :  { %5487 = vmatpush3.bf16.msra.mxu1 %v7875_v39  ;;  %v7907_v39 = vld [vmem:[#allocation57_spill] sm:$0xff] }
 0x6ee   :  { %5488 = vmatprep.subr.bf16.mxu1 %v7755_v63 }
 0x6ef   :  { %5515 = vmatpush1.bf16.msra.mxu0 %v7876_v34  ;;  %v7895_v34 = vld [vmem:[#allocation33_spill] sm:$0xff] }
 0x6f0   :  { %5517 = vmatprep.subr.bf16.mxu0 %v7877_v18  ;;  %v7896_v18 = vld [vmem:[#allocation36_spill] sm:$0xff] }
 0x6f1   :  { %5490 = vmatpush3.bf16.msra.mxu1 %v7878_v43 }
 0x6f2   :  { %5491 = vmatprep.subr.bf16.mxu1 %v7755_v63 }
 0x6f3   :  { %5519 = vmatpush1.bf16.msra.mxu0 %v7879_v41  ;;  %v7897_v41 = vld [vmem:[#allocation37_spill] sm:$0xff] }
 0x6f4   :  { %5521 = vmatprep.subr.bf16.mxu0 %v7880_v57  ;;  %v7898_v57 = vld [vmem:[#allocation40_spill] sm:$0xff] }
 0x6f5   :  { %5493 = vmatpush3.bf16.msra.mxu1 %v7881_v30 }
 0x6f6   :  { %5494 = vmatprep.subr.bf16.mxu1 %v7755_v63 }
 0x6f7   :  { %5523 = vmatpush1.bf16.msra.mxu0 %v7882_v11  ;;  %v7899_v11 = vld [vmem:[#allocation41_spill] sm:$0xff] }
 0x6f8   :  { %5525 = vmatprep.subr.bf16.mxu0 %v7883_v62  ;;  %v7900_v62 = vld [vmem:[#allocation44_spill] sm:$0xff] }
 0x6f9   :  { %5496 = vmatpush3.bf16.msra.mxu1 %v7884_v23 }
 0x6fa   :  { %5497 = vmatprep.subr.bf16.mxu1 %v7755_v63 }
 0x6fb   :  { %5527 = vmatpush1.bf16.msra.mxu0 %v7885_v17  ;;  %v7901_v17 = vld [vmem:[#allocation45_spill] sm:$0xff] }
 0x6fc   :  { %5529 = vmatprep.subr.bf16.mxu0 %v7886_v42  ;;  %v7902_v42 = vld [vmem:[#allocation48_spill] sm:$0xff] }
 0x6fd   :  { %5499 = vmatpush3.bf16.msra.mxu1 %v7887_v38  ;;  %v7906_v38 = vld [vmem:[#allocation63_spill] sm:$0xff] }
 0x6fe   :  { %5533 = vmatprep.subr.bf16.mxu1 %v7888_v26 }
 0x6ff   :  { %5531 = vmatpush1.bf16.msra.mxu0 %v7889_v55  ;;  %v7903_v55 = vld [vmem:[#allocation49_spill] sm:$0xff] }
 0x700   :  { %4424 = vmatmul.mubr.f32.vlgmr.msra.gmra.mrb[32].mxu1 %v7254_v35  ;;  %5565 = vmatprep.subr.bf16.mxu0 %v7890_v3  ;;  %v7905_v3 = vld [vmem:[#allocation54_spill] sm:$0xff] }
 0x701   :  { %5535 = vmatpush1.bf16.msra.mxu1 %v7891_v14  ;;  %3017 = vmatprep.mubr.f32.mxu1 %v7718_v0 }
 0x702   :  { %5537 = vmatprep.subr.bf16.mxu1 %v7892_v52 }
 0x705   :  { %5539 = vmatpush1.bf16.msra.mxu1 %v7893_v49 }
 0x706   :  { %5541 = vmatprep.subr.bf16.mxu1 %v7894_v22 }
 0x709   :  { %5543 = vmatpush1.bf16.msra.mxu1 %v7895_v34 }
 0x70a   :  { %5545 = vmatprep.subr.bf16.mxu1 %v7896_v18 }
 0x70d   :  { %5547 = vmatpush1.bf16.msra.mxu1 %v7897_v41 }
 0x70e   :  { %5549 = vmatprep.subr.bf16.mxu1 %v7898_v57 }
 0x711   :  { %5551 = vmatpush1.bf16.msra.mxu1 %v7899_v11 }
 0x712   :  { %5553 = vmatprep.subr.bf16.mxu1 %v7900_v62 }
 0x715   :  { %5555 = vmatpush1.bf16.msra.mxu1 %v7901_v17 }
 0x716   :  { %5557 = vmatprep.subr.bf16.mxu1 %v7902_v42 }
 0x719   :  { %5559 = vmatpush1.bf16.msra.mxu1 %v7903_v55 }
 0x71a   :  { %5561 = vmatprep.subr.bf16.mxu1 %v7904_v36 }
 0x71d   :  { %5563 = vmatpush1.bf16.msra.mxu1 %v7905_v3 }
 0x71e   :  { %5597 = vmatprep.subr.bf16.mxu1 %v7906_v38  ;;  %v7908_v38 = vld [vmem:[#allocation67_spill] sm:$0xff] }
 0x793   :  { %v2532_v23 = vpop.f32.mrb[28].mxu1  ;;  %v2603_v30 = vpop.f32.mrb[24].mxu0 }
 0x794   :  { %v2847_v43 = vrot.slane %v2532_v23, 4  ;;  %v2534_v57 = vpop.f32.mrb[29].mxu1  ;;  %v2605_v41 = vpop.f32.mrb[25].mxu0  ;;  %v2866_v47 = vadd.f32 %v7908_v38, %v2603_v30 }
 0x795   :  { %v2857_v11 = vrot.slane %v2534_v57, 4  ;;  %v2875_v57 = vrot.slane %v7214_v53, 6 }
 0x796   :  { %v2849_v62 = vadd.f32 %v2847_v43, %v7907_v39  ;;  %v2868_v23 = vrot.slane %v2866_v47, 4 }
 0x797   :  { %v2859_v17 = vadd.f32 %v2857_v11, %v7868_v9 }
 0x798   :  { %v4040_v18 = vmul.f32 -1.442695, %v2849_v62 }
 0x799   :  { %v4041_v42 = vmul.f32 -1.442695, %v2859_v17 }
 0x79a   :  { %5996 = vpow2.f32 %v4040_v18  ;;  %v2679_v18 = vadd.f32 %v2605_v41, %v7748_v15 }
 0x79b   :  { %5998 = vpow2.f32 %v4041_v42 }
 0x7a4   :  { %v5997_v55 = vpop.eup %5996 }
 0x7a5   :  { %v5999_v36 = vpop.eup %5998  ;;  %v2853_v34 = vadd.f32 1.0, %v5997_v55 }
 0x7a6   :  { %v2863_v3 = vadd.f32 1.0, %v5999_v36 }
 0x7a7   :  { %6000 = vrcp.f32 %v2853_v34 }
 0x7a8   :  { %6002 = vrcp.f32 %v2863_v3 }
 0x7b1   :  { %v6001_v22 = vpop.eup %6000 }
 0x7b2   :  { %v6003_v49 = vpop.eup %6002  ;;  %v2870_v43 = vmul.f32 %v6001_v22, %v2868_v23 }
 0x7b3   :  { %v2674_v39 = vpop.f32.mrb[30].mxu1  ;;  %v2877_v11 = vmul.f32 %v6003_v49, %v2875_v57  ;;  %v2873_v55 = vsub.f32 1.0, %v6003_v49 }
 0x7b4   :  { %v2871_v62 = vadd.f32 %v2870_v43, %v7831_v58  ;;  %v2680_v17 = vadd.f32 %v2674_v39, %v6724_v37  ;;  %v2676_v42 = vpop.f32.mrb[31].mxu1 }
 0x7b5   :  { %v2748_v36 = vpop.f32.mrb[26].mxu0 }
 0x7b6   :  { %6004 = vtanh.f32 %v2871_v62  ;;  %v2823_v3 = vadd.f32 %v2748_v36, %v2679_v18  ;;  %v2750_v34 = vpop.f32.mrb[27].mxu0 }
 0x7b7   :  { %v2830_v30 = vadd.f32 %v2750_v34, %v2680_v17  ;;  %v2681_v17 = vadd.f32 %v2676_v42, %v7754_v44 }
 0x7b8   :  { %v4038_v47 = vmul.f32 -1.442695, %v2823_v3 }
 0x7b9   :  { %v4039_v38 = vmul.f32 -1.442695, %v2830_v30 }
 0x7ba   :  { %6006 = vpow2.f32 %v4038_v47 }
 0x7bb   :  { %6008 = vpow2.f32 %v4039_v38 }
 0x7c0   :  { %v6005_v53 = vpop.eup %6004 }
 0x7c1   :  { %v2874_v22 = vmul.f32 %v6005_v53, %v2873_v55 }
 0x7c3   :  { %v7317_v23 = vadd.f32 %v2877_v11, %v2874_v22  ;;  %v7910_v22 = vld [vmem:[#allocation32_spill] sm:$0xff] }
 0x7c4   :  { %v6007_v57 = vpop.eup %6006 }
 0x7c5   :  { %v2880_v41 = vrot.slane %v7317_v23, 4  ;;  %v2827_v43 = vadd.f32 1.0, %v6007_v57  ;;  %v6009_v39 = vpop.eup %6008  ;;  %v7911_v57 = vld [vmem:[#allocation70_spill] sm:$0xff] }
 0x7c6   :  { %v2834_v38 = vadd.f32 1.0, %v6009_v39  ;;  %v7916_v39 = vld [vmem:[#allocation40_spill] sm:$0xff] }
 0x7c7   :  { %2947 = vmatmul.mubr.f32.vlgmr.msra.gmra.mrb[28].mxu0 %v2880_v41  ;;  %3018 = vmatmul.mubr.f32.vlgmr.msra.gmra.mrb[34].mxu1 %v2880_v41  ;;  %6010 = vrcp.f32 %v2827_v43  ;;  %v7913_v43 = vld [vmem:[#allocation36_spill] sm:$0xff] }
 0x7c8   :  { %5567 = vmatpush1.bf16.msra.mxu0 %v6623_v31  ;;  %5599 = vmatpush1.bf16.msra.mxu1 %v6742_v7  ;;  %6012 = vrcp.f32 %v2834_v38  ;;  %v7917_v38 = vld [vmem:[#allocation72_spill] sm:$0xff] }
 0x7c9   :  { %5569 = vmatprep.subr.bf16.mxu0 %v6627_v32  ;;  %5601 = vmatprep.subr.bf16.mxu1 %v6747_v27 }
 0x7ca   :  { %3088 = vmatprep.mubr.f32.mxu0 %v7718_v0  ;;  %3162 = vmatprep.mubr.f32.mxu1 %v7718_v0 }
 0x7cc   :  { %5571 = vmatpush1.bf16.msra.mxu0 %v6632_v50  ;;  %5603 = vmatpush1.bf16.msra.mxu1 %v6753_v54 }
 0x7cd   :  { %5573 = vmatprep.subr.bf16.mxu0 %v6636_v51  ;;  %5605 = vmatprep.subr.bf16.mxu1 %v6757_v25 }
 0x7d0   :  { %5575 = vmatpush1.bf16.msra.mxu0 %v6642_v10  ;;  %5607 = vmatpush1.bf16.msra.mxu1 %v7750_v48 }
 0x7d1   :  { %5577 = vmatprep.subr.bf16.mxu0 %v7751_v16  ;;  %5609 = vmatprep.subr.bf16.mxu1 %v7752_v29  ;;  %v6011_v18 = vpop.eup %6010 }
 0x7d2   :  { %v6013_v42 = vpop.eup %6012 }
 0x7d3   :  { %v2819_v49 = vpop.f32.mrb[32].mxu1  ;;  %v2841_v34 = vsub.f32 1.0, %v6013_v42  ;;  %v2843_v55 = vmul.f32 %v6013_v42, %v7254_v35  ;;  %v7925_v42 = vld [vmem:[#allocation52_spill] sm:$0xff] }
 0x7d4   :  { %v2837_v11 = vadd.f32 %v7129_v8, %v2819_v49  ;;  %v4425_v62 = vpop.f32.mrb[33].mxu1  ;;  %5579 = vmatpush1.bf16.msra.mxu0 %v6650_v40  ;;  %5611 = vmatpush1.bf16.msra.mxu1 %v6771_v61  ;;  %v7918_v49 = vld [vmem:[#allocation41_spill] sm:$0xff] }
 0x7d5   :  { %5581 = vmatprep.subr.bf16.mxu0 %v6653_v45  ;;  %5613 = vmatprep.subr.bf16.mxu1 %v6775_v4  ;;  %v7920_v62 = vld [vmem:[#allocation73_spill] sm:$0xff] }
 0x7d6   :  { %v2838_v36 = vmul.f32 %v6011_v18, %v2837_v11  ;;  %v7919_v11 = vld [vmem:[#allocation44_spill] sm:$0xff]  ;;  %v7921_v18 = vld [vmem:[#allocation45_spill] sm:$0xff] }
 0x7d8   :  { %v2839_v3 = vadd.f32 %v2838_v36, %v2681_v17  ;;  %5583 = vmatpush1.bf16.msra.mxu0 %v6658_v2  ;;  %5615 = vmatpush1.bf16.msra.mxu1 %v6779_v28  ;;  %v7922_v17 = vld [vmem:[#allocation48_spill] sm:$0xff]  ;;  %v7923_v36 = vld [vmem:[#allocation74_spill] sm:$0xff] }
 0x7d9   :  { %5585 = vmatprep.subr.bf16.mxu0 %v6661_v6  ;;  %5617 = vmatprep.subr.bf16.mxu1 %v6785_v21 }
 0x7da   :  { %6014 = vtanh.f32 %v2839_v3  ;;  %v7924_v3 = vld [vmem:[#allocation49_spill] sm:$0xff] }
 0x7dc   :  { %5587 = vmatpush1.bf16.msra.mxu0 %v6666_v19  ;;  %5619 = vmatpush1.bf16.msra.mxu1 %v6789_v59 }
 0x7dd   :  { %5589 = vmatprep.subr.bf16.mxu0 %v6669_v46  ;;  %5621 = vmatprep.subr.bf16.mxu1 %v6793_v24 }
 0x7e0   :  { %5591 = vmatpush1.bf16.msra.mxu0 %v6674_v5  ;;  %5623 = vmatpush1.bf16.msra.mxu1 %v6797_v33 }
 0x7e1   :  { %5593 = vmatprep.subr.bf16.mxu0 %v6677_v13  ;;  %5625 = vmatprep.subr.bf16.mxu1 %v6801_v1 }
 0x7e4   :  { %v6015_v30 = vpop.eup %6014  ;;  %5595 = vmatpush1.bf16.msra.mxu0 %v6682_v20  ;;  %5627 = vmatpush1.bf16.msra.mxu1 %v6805_v12 }
 0x7e5   :  { %5628 = vmatprep.subr.bf16.mxu0 %v7755_v63  ;;  %v2842_v47 = vmul.f32 %v6015_v30, %v2841_v34  ;;  %5653 = vmatprep.subr.bf16.mxu1 %v7888_v26  ;;  %v7909_v26 = vld [vmem:[#allocation29_spill] sm:$0xff]  ;;  %v7926_v34 = vld [vmem:[#allocation75_spill] sm:$0xff] }
 0x7e6   :  { %v7927_v30 = vld [vmem:[#allocation53_spill] sm:$0xff] }
 0x7e7   :  { %3089 = vmatmul.mubr.f32.vlgmr.msra.gmra.mrb[30].mxu0 %v2880_v41  ;;  %v7357_v53 = vadd.f32 %v2843_v55, %v2842_v47  ;;  %v7912_v41 = vld [vmem:[#allocation33_spill] sm:$0xff]  ;;  %v7928_v47 = vld [vmem:[#allocation54_spill] sm:$0xff]  ;;  %v7929_v55 = vld [vmem:[#allocation63_spill] sm:$0xff] }
 0x7e8   :  { %5630 = vmatpush3.bf16.msra.mxu0 %v6811_v56  ;;  %4458 = vmatprep.mubr.msk.f32.mxu0 %vm6279_vm1, %v7718_v0 }
 0x7e9   :  { %3163 = vmatmul.mubr.f32.vlgmr.msra.gmra.mrb[36].mxu1 %v7357_v53  ;;  %5631 = vmatprep.subr.bf16.mxu0 %v7755_v63 }
 0x7ea   :  { %5655 = vmatpush1.bf16.msra.mxu1 %v7891_v14  ;;  %3362 = vmatprep.mubr.f32.mxu1 %v7718_v0  ;;  %v7914_v14 = vld [vmem:[#allocation71_spill] sm:$0xff] }
 0x7eb   :  { %5657 = vmatprep.subr.bf16.mxu1 %v7892_v52  ;;  %v7915_v52 = vld [vmem:[#allocation37_spill] sm:$0xff] }
 0x7ec   :  { %5633 = vmatpush3.bf16.msra.mxu0 %v6818_v60 }
 0x7ed   :  { %5634 = vmatprep.subr.bf16.mxu0 %v7755_v63 }
 0x7ee   :  { %5659 = vmatpush1.bf16.msra.mxu1 %v7909_v26  ;;  %v7931_v26 = vld [vmem:[#allocation67_spill] sm:$0xff] }
 0x7ef   :  { %5661 = vmatprep.subr.bf16.mxu1 %v7910_v22 }
 0x7f0   :  { %5636 = vmatpush3.bf16.msra.mxu0 %v7911_v57 }
 0x7f1   :  { %5637 = vmatprep.subr.bf16.mxu0 %v7755_v63 }
 0x7f2   :  { %5663 = vmatpush1.bf16.msra.mxu1 %v7912_v41 }
 0x7f3   :  { %5665 = vmatprep.subr.bf16.mxu1 %v7913_v43 }
 0x7f4   :  { %5639 = vmatpush3.bf16.msra.mxu0 %v7914_v14 }
 0x7f5   :  { %5640 = vmatprep.subr.bf16.mxu0 %v7755_v63 }
 0x7f6   :  { %5667 = vmatpush1.bf16.msra.mxu1 %v7915_v52  ;;  %v3291_v52 = vrot.slane %v7317_v23, 6 }
 0x7f7   :  { %5669 = vmatprep.subr.bf16.mxu1 %v7916_v39 }
 0x7f8   :  { %5642 = vmatpush3.bf16.msra.mxu0 %v7917_v38 }
 0x7f9   :  { %5643 = vmatprep.subr.bf16.mxu0 %v7755_v63 }
 0x7fa   :  { %5671 = vmatpush1.bf16.msra.mxu1 %v7918_v49 }
 0x7fb   :  { %5673 = vmatprep.subr.bf16.mxu1 %v7919_v11 }
 0x7fc   :  { %5645 = vmatpush3.bf16.msra.mxu0 %v7920_v62 }
 0x7fd   :  { %5646 = vmatprep.subr.bf16.mxu0 %v7755_v63 }
 0x7fe   :  { %5675 = vmatpush1.bf16.msra.mxu1 %v7921_v18 }
 0x7ff   :  { %5677 = vmatprep.subr.bf16.mxu1 %v7922_v17 }
 0x800   :  { %5648 = vmatpush3.bf16.msra.mxu0 %v7923_v36 }
 0x801   :  { %5649 = vmatprep.subr.bf16.mxu0 %v7755_v63 }
 0x802   :  { %5679 = vmatpush1.bf16.msra.mxu1 %v7924_v3 }
 0x803   :  { %5681 = vmatprep.subr.bf16.mxu1 %v7925_v42 }
 0x804   :  { %5651 = vmatpush3.bf16.msra.mxu0 %v7926_v34 }
 0x805   :  { %5685 = vmatprep.subr.bf16.mxu0 %v7927_v30 }
 0x806   :  { %5683 = vmatpush1.bf16.msra.mxu1 %v7928_v47 }
 0x807   :  { %4459 = vmatmul.mubr.f32.vlgmr.msra.gmra.mrb[32].mxu0 %v7357_v53  ;;  %5717 = vmatprep.subr.bf16.mxu1 %v7929_v55 }
 0x808   :  { %5687 = vmatpush1.bf16.msra.mxu0 %v6623_v31  ;;  %3432 = vmatprep.mubr.f32.mxu0 %v7718_v0 }
 0x809   :  { %5689 = vmatprep.subr.bf16.mxu0 %v6627_v32 }
 0x80c   :  { %5691 = vmatpush1.bf16.msra.mxu0 %v6632_v50 }
 0x80d   :  { %5693 = vmatprep.subr.bf16.mxu0 %v6636_v51 }
 0x810   :  { %5695 = vmatpush1.bf16.msra.mxu0 %v6642_v10 }
 0x811   :  { %5697 = vmatprep.subr.bf16.mxu0 %v7751_v16 }
 0x814   :  { %5699 = vmatpush1.bf16.msra.mxu0 %v6650_v40 }
 0x815   :  { %5701 = vmatprep.subr.bf16.mxu0 %v6653_v45  ;;  %v7930_v45 = vld [vmem:[#allocation57_spill] sm:$0xff] }
 0x818   :  { %5703 = vmatpush1.bf16.msra.mxu0 %v6658_v2 }
 0x819   :  { %5705 = vmatprep.subr.bf16.mxu0 %v6661_v6 }
 0x81c   :  { %5707 = vmatpush1.bf16.msra.mxu0 %v6666_v19 }
 0x81d   :  { %5709 = vmatprep.subr.bf16.mxu0 %v6669_v46 }
 0x820   :  { %5711 = vmatpush1.bf16.msra.mxu0 %v6674_v5 }
 0x821   :  { %5713 = vmatprep.subr.bf16.mxu0 %v6677_v13 }
 0x824   :  { %5715 = vmatpush1.bf16.msra.mxu0 %v6682_v20 }
 0x825   :  { %5748 = vmatprep.subr.bf16.mxu0 %v7755_v63 }
 0x89a   :  { %v2948_v31 = vpop.f32.mrb[28].mxu0  ;;  %v3019_v32 = vpop.f32.mrb[34].mxu1 }
 0x89b   :  { %v3263_v50 = vrot.slane %v2948_v31, 2  ;;  %v2950_v51 = vpop.f32.mrb[29].mxu0  ;;  %v3021_v10 = vpop.f32.mrb[35].mxu1  ;;  %v3282_v22 = vadd.f32 %v7931_v26, %v3019_v32  ;;  %v3618_v26 = vld [vmem:[#allocation10 + $0x58] sm:$0xff] }
 0x89c   :  { %v3273_v40 = vrot.slane %v2950_v51, 2  ;;  %v3095_v17 = vadd.f32 %v3021_v10, %v7748_v15 }
 0x89d   :  { %v3265_v2 = vadd.f32 %v3263_v50, %v7930_v45  ;;  %v3284_v41 = vrot.slane %v3282_v22, 2 }
 0x89e   :  { %v3275_v19 = vadd.f32 %v3273_v40, %v7868_v9 }
 0x89f   :  { %v4044_v6 = vmul.f32 -1.442695, %v3265_v2 }
 0x8a0   :  { %v4045_v46 = vmul.f32 -1.442695, %v3275_v19 }
 0x8a1   :  { %6016 = vpow2.f32 %v4044_v6  ;;  %v3614_v6 = vld [vmem:[#allocation10 + $0x38] sm:$0xff] }
 0x8a2   :  { %6018 = vpow2.f32 %v4045_v46 }
 0x8ab   :  { %v6017_v5 = vpop.eup %6016 }
 0x8ac   :  { %v6019_v13 = vpop.eup %6018  ;;  %v3269_v16 = vadd.f32 1.0, %v6017_v5  ;;  %v3615_v5 = vld [vmem:[#allocation10 + $0x40] sm:$0xff] }
 0x8ad   :  { %v3279_v20 = vadd.f32 1.0, %v6019_v13  ;;  %v3616_v13 = vld [vmem:[#allocation10 + $0x48] sm:$0xff] }
 0x8ae   :  { %6020 = vrcp.f32 %v3269_v16  ;;  %v5785_v16 = vpack.c.bf16 %v3616_v13, %v3615_v5  ;;  %v7933_v5 = vld [vmem:[#allocation64_spill] sm:$0xff] }
 0x8af   :  { %6022 = vrcp.f32 %v3279_v20  ;;  %v3617_v20 = vld [vmem:[#allocation10 + $0x50] sm:$0xff] }
 0x8b0   :  { %v5788_v22 = vpack.c.bf16 %v3618_v26, %v3617_v20 }
 0x8b8   :  { %v6021_v43 = vpop.eup %6020 }
 0x8b9   :  { %v6023_v39 = vpop.eup %6022  ;;  %v3286_v49 = vmul.f32 %v6021_v43, %v3284_v41  ;;  %v3619_v41 = vld [vmem:[#allocation10 + $0x60] sm:$0xff]  ;;  %v3620_v43 = vld [vmem:[#allocation10 + $0x68] sm:$0xff] }
 0x8ba   :  { %v3090_v11 = vpop.f32.mrb[30].mxu0  ;;  %v3293_v9 = vmul.f32 %v6023_v39, %v3291_v52  ;;  %v3289_v50 = vsub.f32 1.0, %v6023_v39  ;;  %v5791_v52 = vpack.c.bf16 %v3620_v43, %v3619_v41  ;;  %v3621_v39 = vld [vmem:[#allocation10 + $0x70] sm:$0xff] }
 0x8bb   :  { %v3287_v18 = vadd.f32 %v3286_v49, %v7831_v58  ;;  %v3096_v3 = vadd.f32 %v3090_v11, %v6724_v37  ;;  %v3092_v42 = vpop.f32.mrb[31].mxu0  ;;  %v3622_v49 = vld [vmem:[#allocation10 + $0x78] sm:$0xff] }
 0x8bc   :  { %v3164_v30 = vpop.f32.mrb[36].mxu1  ;;  %v5794_v11 = vpack.c.bf16 %v3622_v49, %v3621_v39 }
 0x8bd   :  { %6024 = vtanh.f32 %v3287_v18  ;;  %v3239_v47 = vadd.f32 %v3164_v30, %v3095_v17  ;;  %v3166_v55 = vpop.f32.mrb[37].mxu1  ;;  %v3702_v18 = vld [vmem:[#allocation11 + $0x8] sm:$0xff]  ;;  %v3703_v17 = vld [vmem:[#allocation11 + $0x10] sm:$0xff] }
 0x8be   :  { %v3246_v31 = vadd.f32 %v3166_v55, %v3096_v3  ;;  %v3706_v55 = vld [vmem:[#allocation11 + $0x28] sm:$0xff] }
 0x8bf   :  { %v4042_v32 = vmul.f32 -1.442695, %v3239_v47  ;;  %v3705_v47 = vld [vmem:[#allocation11 + $0x20] sm:$0xff] }
 0x8c0   :  { %v4043_v51 = vmul.f32 -1.442695, %v3246_v31  ;;  %v5803_v31 = vpack.c.bf16 %v3706_v55, %v3705_v47 }
 0x8c1   :  { %6026 = vpow2.f32 %v4042_v32  ;;  %v3707_v32 = vld [vmem:[#allocation11 + $0x30] sm:$0xff] }
 0x8c2   :  { %6028 = vpow2.f32 %v4043_v51  ;;  %v3709_v51 = vld [vmem:[#allocation11 + $0x40] sm:$0xff] }
 0x8c7   :  { %v6025_v23 = vpop.eup %6024 }
 0x8c8   :  { %v3290_v40 = vmul.f32 %v6025_v23, %v3289_v50  ;;  %v3708_v50 = vld [vmem:[#allocation11 + $0x38] sm:$0xff] }
 0x8c9   :  { %v5806_v23 = vpack.c.bf16 %v3708_v50, %v3707_v32  ;;  %v3803_v32 = vld [vmem:[#allocation13] sm:$0xff]  ;;  %v3804_v50 = vld [vmem:[#allocation13 + $0x8] sm:$0xff] }
 0x8ca   :  { %v3294_v45 = vadd.f32 %v3293_v9, %v3290_v40  ;;  %v3701_v9 = vld [vmem:[#allocation11] sm:$0xff]  ;;  %v3710_v40 = vld [vmem:[#allocation11 + $0x48] sm:$0xff] }
 0x8cb   :  { %v6027_v2 = vpop.eup %6026  ;;  %v5797_v3 = vpack.c.bf16 %v3702_v18, %v3701_v9 }
 0x8cc   :  { %v3296_v58 = vrot.slane %v3294_v45, 6  ;;  %v3243_v19 = vadd.f32 1.0, %v6027_v2  ;;  %v5809_v45 = vpack.c.bf16 %v3710_v40, %v3709_v51  ;;  %v3711_v2 = vld [vmem:[#allocation11 + $0x50] sm:$0xff]  ;;  %v3806_v40 = vld [vmem:[#allocation13 + $0x18] sm:$0xff] }
 0x8cd   :  { %v3805_v51 = vld [vmem:[#allocation13 + $0x10] sm:$0xff] }
 0x8ce   :  { %3363 = vmatmul.mubr.f32.vlgmr.msra.gmra.mrb[38].mxu1 %v3296_v58  ;;  %3433 = vmatmul.mubr.f32.vlgmr.msra.gmra.mrb[34].mxu0 %v3296_v58  ;;  %6030 = vrcp.f32 %v3243_v19  ;;  %v3712_v58 = vld [vmem:[#allocation11 + $0x58] sm:$0xff] }
 0x8cf   :  { %5719 = vmatpush1.bf16.msra.mxu1 %v6742_v7  ;;  %5750 = vmatpush3.bf16.msra.mxu0 %v6811_v56  ;;  %v6029_v7 = vpop.eup %6028  ;;  %v5812_v19 = vpack.c.bf16 %v3712_v58, %v3711_v2  ;;  %v3807_v2 = vld [vmem:[#allocation13 + $0x20] sm:$0xff]  ;;  %v3808_v58 = vld [vmem:[#allocation13 + $0x28] sm:$0xff] }
 0x8d0   :  { %5721 = vmatprep.subr.bf16.mxu1 %v6747_v27  ;;  %5751 = vmatprep.subr.bf16.mxu0 %v7755_v63  ;;  %v3250_v27 = vadd.f32 1.0, %v6029_v7  ;;  %v3713_v7 = vld [vmem:[#allocation11 + $0x60] sm:$0xff] }
 0x8d1   :  { %3506 = vmatprep.mubr.f32.mxu1 %v7718_v0  ;;  %4493 = vmatprep.mubr.msk.f32.mxu0 %vm6279_vm1, %v7718_v0 }
 0x8d2   :  { %6032 = vrcp.f32 %v3250_v27  ;;  %v3714_v27 = vld [vmem:[#allocation11 + $0x68] sm:$0xff] }
 0x8d3   :  { %5723 = vmatpush1.bf16.msra.mxu1 %v6753_v54  ;;  %5753 = vmatpush3.bf16.msra.mxu0 %v6818_v60  ;;  %v3097_v60 = vadd.f32 %v3092_v42, %v7754_v44  ;;  %v3704_v42 = vld [vmem:[#allocation11 + $0x18] sm:$0xff] }
 0x8d4   :  { %5725 = vmatprep.subr.bf16.mxu1 %v6757_v25  ;;  %5754 = vmatprep.subr.bf16.mxu0 %v7755_v63  ;;  %v5800_v30 = vpack.c.bf16 %v3704_v42, %v3703_v17  ;;  %v3715_v42 = vld [vmem:[#allocation11 + $0x70] sm:$0xff] }
 0x8d7   :  { %5727 = vmatpush1.bf16.msra.mxu1 %v7750_v48  ;;  %5756 = vmatpush3.bf16.msra.mxu0 %v7911_v57  ;;  %v3610_v57 = vld [vmem:[#allocation10 + $0x18] sm:$0xff] }
 0x8d8   :  { %5729 = vmatprep.subr.bf16.mxu1 %v7752_v29  ;;  %5757 = vmatprep.subr.bf16.mxu0 %v7755_v63  ;;  %v6031_v25 = vpop.eup %6030 }
 0x8da   :  { %v3235_v56 = vpop.f32.mrb[32].mxu0 }
 0x8db   :  { %v3253_v10 = vadd.f32 %v7129_v8, %v3235_v56  ;;  %v4460_v54 = vpop.f32.mrb[33].mxu0  ;;  %5731 = vmatpush1.bf16.msra.mxu1 %v6771_v61  ;;  %5759 = vmatpush3.bf16.msra.mxu0 %v7914_v14  ;;  %v3609_v8 = vld [vmem:[#allocation10 + $0x10] sm:$0xff]  ;;  %v5815_v56 = vpack.c.bf16 %v3714_v27, %v3713_v7 }
 0x8dc   :  { %5733 = vmatprep.subr.bf16.mxu1 %v6775_v4  ;;  %5760 = vmatprep.subr.bf16.mxu0 %v7755_v63  ;;  %v6033_v61 = vpop.eup %6032  ;;  %v5776_v14 = vpack.c.bf16 %v3610_v57, %v3609_v8  ;;  %v3809_v7 = vld [vmem:[#allocation13 + $0x30] sm:$0xff] }
 0x8dd   :  { %v3254_v48 = vmul.f32 %v6031_v25, %v3253_v10  ;;  %v3257_v4 = vsub.f32 1.0, %v6033_v61 }
 0x8df   :  { %v3255_v29 = vadd.f32 %v3254_v48, %v3097_v60  ;;  %5735 = vmatpush1.bf16.msra.mxu1 %v6779_v28  ;;  %5762 = vmatpush3.bf16.msra.mxu0 %v7917_v38  ;;  %v3611_v38 = vld [vmem:[#allocation10 + $0x20] sm:$0xff] }
 0x8e0   :  { %5737 = vmatprep.subr.bf16.mxu1 %v6785_v21  ;;  %5763 = vmatprep.subr.bf16.mxu0 %v7755_v63 }
 0x8e1   :  { %6034 = vtanh.f32 %v3255_v29 }
 0x8e3   :  { %5739 = vmatpush1.bf16.msra.mxu1 %v6789_v59  ;;  %5765 = vmatpush3.bf16.msra.mxu0 %v7920_v62  ;;  %v3259_v59 = vmul.f32 %v6033_v61, %v7357_v53  ;;  %v3612_v62 = vld [vmem:[#allocation10 + $0x28] sm:$0xff] }
 0x8e4   :  { %5741 = vmatprep.subr.bf16.mxu1 %v6793_v24  ;;  %5766 = vmatprep.subr.bf16.mxu0 %v7755_v63 }
 0x8e7   :  { %5743 = vmatpush1.bf16.msra.mxu1 %v6797_v33  ;;  %5768 = vmatpush3.bf16.msra.mxu0 %v7923_v36  ;;  %v3607_v33 = vld [vmem:[#allocation10] sm:$0xff]  ;;  %v5779_v36 = vpack.c.bf16 %v3612_v62, %v3611_v38 }
 0x8e8   :  { %5745 = vmatprep.subr.bf16.mxu1 %v6801_v1  ;;  %5769 = vmatprep.subr.bf16.mxu0 %v7755_v63  ;;  %v3608_v1 = vld [vmem:[#allocation10 + $0x8] sm:$0xff] }
 0x8eb   :  { %v6035_v28 = vpop.eup %6034  ;;  %5747 = vmatpush1.bf16.msra.mxu1 %v6805_v12  ;;  %5771 = vmatpush3.bf16.msra.mxu0 %v7926_v34  ;;  %v5773_v12 = vpack.c.bf16 %v3608_v1, %v3607_v33  ;;  %v3613_v34 = vld [vmem:[#allocation10 + $0x30] sm:$0xff] }
 0x8ec   :  { %v3258_v21 = vmul.f32 %v6035_v28, %v3257_v4  ;;  %5772 = vmatprep.subr.bf16.mxu1 %v7755_v63  ;;  %5796 = vmatprep.subr.bf16.mxu0 %v7755_v63  ;;  %v5782_v46 = vpack.c.bf16 %v3614_v6, %v3613_v34 }
 0x8ee   :  { %v7458_v24 = vadd.f32 %v3259_v59, %v3258_v21 }
 0x8f0   :  { %3507 = vmatmul.mubr.f32.vlgmr.msra.gmra.mrb[40].mxu1 %v7458_v24  ;;  %4494 = vmatmul.mubr.f32.vlgmr.msra.gmra.mrb[36].mxu0 %v7458_v24 }
 0x8f1   :  { %4528 = vmatprep.mubr.msk.f32.mxu1 %vm6279_vm1, %v7718_v0  ;;  %4563 = vmatprep.mubr.msk.f32.mxu0 %vm6279_vm1, %v7718_v0 }
 0x8f2   :  { %5774 = vmatpush3.bf16.msra.mxu1 %v5773_v12  ;;  %5798 = vmatpush3.bf16.msra.mxu0 %v5797_v3 }
 0x8f3   :  { %5775 = vmatprep.subr.bf16.mxu1 %v7755_v63  ;;  %5799 = vmatprep.subr.bf16.mxu0 %v7755_v63 }
 0x8f6   :  { %5777 = vmatpush3.bf16.msra.mxu1 %v5776_v14  ;;  %5801 = vmatpush3.bf16.msra.mxu0 %v5800_v30 }
 0x8f7   :  { %5778 = vmatprep.subr.bf16.mxu1 %v7755_v63  ;;  %5802 = vmatprep.subr.bf16.mxu0 %v7755_v63 }
 0x8fa   :  { %5780 = vmatpush3.bf16.msra.mxu1 %v5779_v36  ;;  %5804 = vmatpush3.bf16.msra.mxu0 %v5803_v31 }
 0x8fb   :  { %5781 = vmatprep.subr.bf16.mxu1 %v7755_v63  ;;  %5805 = vmatprep.subr.bf16.mxu0 %v7755_v63 }
 0x8fe   :  { %5783 = vmatpush3.bf16.msra.mxu1 %v5782_v46  ;;  %5807 = vmatpush3.bf16.msra.mxu0 %v5806_v23  ;;  %v7932_v46 = vld [vmem:[#allocation69_spill] sm:$0xff]  ;;  %v5821_v23 = vpack.c.bf16 %v3804_v50, %v3803_v32  ;;  %v4052_v50 = vld [vmem:[%s7557_s15] ss:$0 sm:$0xff] }
 0x8ff   :  { %5784 = vmatprep.subr.bf16.mxu1 %v7755_v63  ;;  %5808 = vmatprep.subr.bf16.mxu0 %v7755_v63  ;;  %v1194_v13 = vadd.f32 %v7933_v5, %v7932_v46  ;;  %v3906_v46 = vld [vmem:[#allocation14 + $0x48] sm:$0xff] }
 0x902   :  { %5786 = vmatpush3.bf16.msra.mxu1 %v5785_v16  ;;  %5810 = vmatpush3.bf16.msra.mxu0 %v5809_v45  ;;  %v7934_v16 = vld [vmem:[#allocation61_spill] sm:$0xff]  ;;  %v5824_v45 = vpack.c.bf16 %v3806_v40, %v3805_v51 }
 0x903   :  { %5787 = vmatprep.subr.bf16.mxu1 %v7755_v63  ;;  %5811 = vmatprep.subr.bf16.mxu0 %v7755_v63  ;;  %v1610_v20 = vadd.f32 %v7934_v16, %v1194_v13  ;;  %v3907_v13 = vld [vmem:[#allocation14 + $0x50] sm:$0xff]  ;;  %v3908_v16 = vld [vmem:[#allocation14 + $0x58] sm:$0xff] }
 0x906   :  { %5789 = vmatpush3.bf16.msra.mxu1 %v5788_v22  ;;  %5813 = vmatpush3.bf16.msra.mxu0 %v5812_v19  ;;  %v7935_v22 = vld [vmem:[#allocation62_spill] sm:$0xff]  ;;  %v5827_v19 = vpack.c.bf16 %v3808_v58, %v3807_v2 }
 0x907   :  { %5790 = vmatprep.subr.bf16.mxu1 %v7755_v63  ;;  %5814 = vmatprep.subr.bf16.mxu0 %v7755_v63  ;;  %v2026_v41 = vadd.f32 %v7935_v22, %v1610_v20  ;;  %v5860_v20 = vpack.c.bf16 %v3908_v16, %v3907_v13  ;;  %v3910_v22 = vld [vmem:[#allocation14 + $0x68] sm:$0xff] }
 0x909   :  { %v2428_v43 = vadd.f32 %v7254_v35, %v2026_v41  ;;  %v3716_v35 = vld [vmem:[#allocation11 + $0x78] sm:$0xff] }
 0x90a   :  { %5792 = vmatpush3.bf16.msra.mxu1 %v5791_v52  ;;  %5816 = vmatpush3.bf16.msra.mxu0 %v5815_v56  ;;  %v5818_v30 = vpack.c.bf16 %v3716_v35, %v3715_v42  ;;  %v3811_v56 = vld [vmem:[#allocation13 + $0x40] sm:$0xff] }
 0x90b   :  { %5793 = vmatprep.subr.bf16.mxu1 %v7755_v63  ;;  %5817 = vmatprep.subr.bf16.mxu0 %v7755_v63  ;;  %v2845_v49 = vadd.f32 %v7357_v53, %v2428_v43  ;;  %v4048_v53 = vld [vmem:[%s7551_s9] ss:$0 sm:$0xff] }
 0x90c   :  { %v4049_v43 = vld [vmem:[%s7553_s11] ss:$0 sm:$0xff] }
 0x90d   :  { %v3261_v9 = vadd.f32 %v7458_v24, %v2845_v49 }
 0x90e   :  { %5795 = vmatpush3.bf16.msra.mxu1 %v5794_v11  ;;  %5819 = vmatpush3.bf16.msra.mxu0 %v5818_v30  ;;  %v3911_v30 = vld [vmem:[#allocation14 + $0x70] sm:$0xff] }
 0x90f   :  { %5820 = vmatprep.subr.bf16.mxu1 %v7755_v63  ;;  %5844 = vmatprep.subr.bf16.mxu0 %v7755_v63 }
 0x9a1   :  { %v3364_v10 = vpop.f32.mrb[38].mxu1  ;;  %v3434_v54 = vpop.f32.mrb[34].mxu0 }
 0x9a2   :  { %v3365_v25 = vpop.f32.mrb[39].mxu1  ;;  %v3436_v60 = vpop.f32.mrb[35].mxu0  ;;  %v3440_v29 = vadd.f32 %v3434_v54, %v6724_v37  ;;  %v3812_v10 = vld [vmem:[#allocation13 + $0x48] sm:$0xff] }
 0x9a3   :  { %v3439_v48 = vadd.f32 %v3365_v25, %v7748_v15  ;;  %v6052_v15 = vld [vmem:[%s7549_s7] ss:$0 sm:$0xff]  ;;  %v3441_v36 = vadd.f32 %v3436_v60, %v7754_v44  ;;  %v5833_v54 = vpack.c.bf16 %v3812_v10, %v3811_v56  ;;  %v3813_v25 = vld [vmem:[#allocation13 + $0x50] sm:$0xff]  ;;  %v3814_v60 = vld [vmem:[#allocation13 + $0x58] sm:$0xff] }
 0x9c3   :  { %v3508_v61 = vpop.f32.mrb[40].mxu1  ;;  %v3579_v4 = vpop.f32.mrb[36].mxu0 }
 0x9c4   :  { %v3583_v28 = vadd.f32 %v3508_v61, %v3439_v48  ;;  %v3510_v21 = vpop.f32.mrb[41].mxu1  ;;  %v4495_v59 = vpop.f32.mrb[37].mxu0  ;;  %v3597_v37 = vadd.f32 %v6052_v15, %v3579_v4  ;;  %v5836_v48 = vpack.c.bf16 %v3814_v60, %v3813_v25  ;;  %v3816_v61 = vld [vmem:[#allocation13 + $0x68] sm:$0xff] }
 0x9c5   :  { %v3590_v33 = vadd.f32 %v3510_v21, %v3440_v29  ;;  %v3815_v29 = vld [vmem:[#allocation13 + $0x60] sm:$0xff]  ;;  %v3818_v21 = vld [vmem:[#allocation13 + $0x78] sm:$0xff]  ;;  %v3902_v15 = vld [vmem:[#allocation14 + $0x28] sm:$0xff] }
 0x9c6   :  { %v4046_v1 = vmul.f32 -1.442695, %v3583_v28  ;;  %v5839_v4 = vpack.c.bf16 %v3816_v61, %v3815_v29  ;;  %v3817_v28 = vld [vmem:[#allocation13 + $0x70] sm:$0xff] }
 0x9c7   :  { %v4047_v12 = vmul.f32 -1.442695, %v3590_v33  ;;  %v5842_v59 = vpack.c.bf16 %v3818_v21, %v3817_v28  ;;  %v3897_v33 = vld [vmem:[#allocation14] sm:$0xff] }
 0x9c8   :  { %6036 = vpow2.f32 %v4046_v1  ;;  %v3898_v1 = vld [vmem:[#allocation14 + $0x8] sm:$0xff] }
 0x9c9   :  { %6038 = vpow2.f32 %v4047_v12  ;;  %v3899_v12 = vld [vmem:[#allocation14 + $0x10] sm:$0xff] }
 0x9d2   :  { %v6037_v8 = vpop.eup %6036 }
 0x9d3   :  { %v3587_v57 = vadd.f32 1.0, %v6037_v8  ;;  %v6039_v14 = vpop.eup %6038  ;;  %v5845_v8 = vpack.c.bf16 %v3898_v1, %v3897_v33 }
 0x9d4   :  { %v3594_v38 = vadd.f32 1.0, %v6039_v14 }
 0x9d5   :  { %6040 = vrcp.f32 %v3587_v57  ;;  %v3900_v57 = vld [vmem:[#allocation14 + $0x18] sm:$0xff] }
 0x9d6   :  { %6042 = vrcp.f32 %v3594_v38  ;;  %v5848_v14 = vpack.c.bf16 %v3900_v57, %v3899_v12  ;;  %v3901_v38 = vld [vmem:[#allocation14 + $0x20] sm:$0xff] }
 0x9df   :  { %v6041_v62 = vpop.eup %6040 }
 0x9e0   :  { %v3598_v34 = vmul.f32 %v6041_v62, %v3597_v37  ;;  %v6043_v26 = vpop.eup %6042  ;;  %v5851_v37 = vpack.c.bf16 %v3902_v15, %v3901_v38  ;;  %v3903_v62 = vld [vmem:[#allocation14 + $0x30] sm:$0xff] }
 0x9e1   :  { %v3601_v52 = vsub.f32 1.0, %v6043_v26  ;;  %v3603_v44 = vmul.f32 %v6043_v26, %v7458_v24  ;;  %v3909_v26 = vld [vmem:[#allocation14 + $0x60] sm:$0xff] }
 0x9e2   :  { %v3599_v6 = vadd.f32 %v3598_v34, %v3441_v36  ;;  %v3904_v36 = vld [vmem:[#allocation14 + $0x38] sm:$0xff]  ;;  %v5863_v41 = vpack.c.bf16 %v3910_v22, %v3909_v26 }
 0x9e3   :  { %v5854_v34 = vpack.c.bf16 %v3904_v36, %v3903_v62 }
 0x9e4   :  { %6044 = vtanh.f32 %v3599_v6  ;;  %v3905_v6 = vld [vmem:[#allocation14 + $0x40] sm:$0xff] }
 0x9e5   :  { %v5857_v5 = vpack.c.bf16 %v3906_v46, %v3905_v6 }
 0x9ee   :  { %v6045_v39 = vpop.eup %6044 }
 0x9ef   :  { %v3602_v11 = vmul.f32 %v6045_v39, %v3601_v52 }
 0x9f1   :  { %v7495_v18 = vadd.f32 %v3603_v44, %v3602_v11 }
 0x9f3   :  { %v3605_v17 = vadd.f32 %v7495_v18, %v3261_v9 }
 0x9f5   :  { %v3606_v3 = vmul.f32 0.125, %v3605_v17 }
 0x9f7   :  { %4529 = vmatmul.mubr.f32.vlgmr.msra.gmra.mrb[42].mxu1 %v3606_v3 }
 0x9f8   :  { %4598 = vmatprep.mubr.msk.f32.mxu1 %vm6279_vm1, %v7718_v0  ;;  %5822 = vmatpush3.bf16.msra.mxu1 %v5821_v23 }
 0x9f9   :  { %5823 = vmatprep.subr.bf16.mxu1 %v7755_v63 }
 0x9fc   :  { %5825 = vmatpush3.bf16.msra.mxu1 %v5824_v45 }
 0x9fd   :  { %5826 = vmatprep.subr.bf16.mxu1 %v7755_v63 }
 0xa00   :  { %5828 = vmatpush3.bf16.msra.mxu1 %v5827_v19 }
 0xa01   :  { %5829 = vmatprep.subr.bf16.mxu1 %v7755_v63 }
 0xaca   :  { %v3696_v24 = vpop.f32.mrb[42].mxu1 }
 0xacb   :  { %v3697_v47 = vadd.f32 %v4048_v53, %v3696_v24  ;;  %v4530_v55 = vpop.f32.mrb[43].mxu1  ;;  %v4051_v24 = vld [vmem:[%s7555_s13] ss:$0 sm:$0xff] }
 0xacd   :  { %v3700_v31 = vmax.f32 %v3697_v47, 0.0 }
 0xacf   :  { %4564 = vmatmul.mubr.f32.vlgmr.msra.gmra.mrb[38].mxu0 %v3700_v31 }
 0xad0   :  { %4633 = vmatprep.mubr.msk.f32.mxu0 %vm6279_vm1, %v7718_v0  ;;  %v3810_v0 = vld [vmem:[#allocation13 + $0x38] sm:$0xff]  ;;  %5846 = vmatpush3.bf16.msra.mxu0 %v5845_v8 }
 0xad1   :  { %v5830_v27 = vpack.c.bf16 %v3810_v0, %v3809_v7  ;;  %5847 = vmatprep.subr.bf16.mxu0 %v7755_v63 }
 0xad3   :  { %5831 = vmatpush3.bf16.msra.mxu1 %v5830_v27 }
 0xad4   :  { %5832 = vmatprep.subr.bf16.mxu1 %v7755_v63  ;;  %5849 = vmatpush3.bf16.msra.mxu0 %v5848_v14 }
 0xad5   :  { %5850 = vmatprep.subr.bf16.mxu0 %v7755_v63 }
 0xad7   :  { %5834 = vmatpush3.bf16.msra.mxu1 %v5833_v54 }
 0xad8   :  { %5835 = vmatprep.subr.bf16.mxu1 %v7755_v63  ;;  %5852 = vmatpush3.bf16.msra.mxu0 %v5851_v37 }
 0xad9   :  { %5853 = vmatprep.subr.bf16.mxu0 %v7755_v63 }
 0xadb   :  { %5837 = vmatpush3.bf16.msra.mxu1 %v5836_v48 }
 0xadc   :  { %5838 = vmatprep.subr.bf16.mxu1 %v7755_v63  ;;  %5855 = vmatpush3.bf16.msra.mxu0 %v5854_v34 }
 0xadd   :  { %5856 = vmatprep.subr.bf16.mxu0 %v7755_v63 }
 0xadf   :  { %5840 = vmatpush3.bf16.msra.mxu1 %v5839_v4 }
 0xae0   :  { %5841 = vmatprep.subr.bf16.mxu1 %v7755_v63  ;;  %5858 = vmatpush3.bf16.msra.mxu0 %v5857_v5 }
 0xae1   :  { %5859 = vmatprep.subr.bf16.mxu0 %v7755_v63 }
 0xae3   :  { %5843 = vmatpush3.bf16.msra.mxu1 %v5842_v59 }
 0xae4   :  { %5861 = vmatpush3.bf16.msra.mxu0 %v5860_v20 }
 0xae5   :  { %5862 = vmatprep.subr.bf16.mxu0 %v7755_v63 }
 0xae8   :  { %5864 = vmatpush3.bf16.msra.mxu0 %v5863_v41 }
 0xae9   :  { %5865 = vmatprep.subr.bf16.mxu0 %v7755_v63  ;;  %v3912_v63 = vld [vmem:[#allocation14 + $0x78] sm:$0xff] }
 0xaea   :  { %v5866_v53 = vpack.c.bf16 %v3912_v63, %v3911_v30 }
 0xaec   :  { %5867 = vmatpush3.bf16.msra.mxu0 %v5866_v53 }
 0xba2   :  { %v3790_v52 = vpop.f32.mrb[38].mxu0 }
 0xba3   :  { %v3791_v39 = vadd.f32 %v4049_v43, %v3790_v52  ;;  %v4565_v49 = vpop.f32.mrb[39].mxu0 }
 0xba5   :  { %v4050_v11 = vmul.f32 -1.442695, %v3791_v39 }
 0xba7   :  { %6046 = vpow2.f32 %v4050_v11 }
 0xbb1   :  { %v6047_v44 = vpop.eup %6046 }
 0xbb2   :  { %v3797_v9 = vadd.f32 1.0, %v6047_v44 }
 0xbb4   :  { %6048 = vrcp.f32 %v3797_v9 }
 0xbbe   :  { %v6049_v17 = vpop.eup %6048 }
 0xbbf   :  { %v3800_v3 = vadd.f32 1.0, %v6049_v17 }
 0xbc1   :  { %v3801_v42 = vmul.f32 %v3800_v3, %v7495_v18 }
 0xbc3   :  { %v3802_v35 = vmax.f32 %v3801_v42, 0.0 }
 0xbc5   :  { %4599 = vmatmul.mubr.f32.vlgmr.msra.gmra.mrb[44].mxu1 %v3802_v35 }
 0xc98   :  { %v3892_v47 = vpop.f32.mrb[44].mxu1 }
 0xc99   :  { %v3893_v55 = vadd.f32 %v4051_v24, %v3892_v47  ;;  %v4600_v31 = vpop.f32.mrb[45].mxu1 }
 0xc9b   :  { %v3896_v32 = vmax.f32 %v3893_v55, 0.0 }
 0xc9d   :  { %4634 = vmatmul.mubr.f32.vlgmr.msra.gmra.mrb[40].mxu0 %v3896_v32 }
 0xd70   :  { %v3986_v18 = vpop.f32.mrb[40].mxu0 }
 0xd71   :  { %v3987_v23 = vadd.f32 %v4052_v50, %v3986_v18  ;;  %v4635_v51 = vpop.f32.mrb[41].mxu0 }
 0xd73   :  { %3990 = vst [vmem:[#allocation16] sm:$0x3] %v3987_v23 }
 0xd74   :  { %6240 = shalt.err (!%p6237_p12)
}
 0xd75   :  { %s6241_s12 = scalar_lea.hbm %s7558_s16, 32 }
 0xd76   :  { %p6242_p13 = scmp.ne.s32.totalorder %s7558_s16, %s6241_s12  ;;  %p6245_p0 = scmp.lt.u32.totalorder %s6241_s12, %s7558_s16 }
 0xd78   :  { %p6247_p1 = pnand %p6245_p0, %p6242_p13 }
 0xd7a   :  { %6250 = shalt.err (!%p6247_p1)
}
 0xd7b   :  { %4000 = dma.vmem_to_hbm [thread:$0]  %s3998_s20, 32, %s7558_s16, [#allocation4]  }
 0xd7c   :  { %6261 = dma.done.wait [#allocation4], 32  }
 0xd7d   :  { %6262 = vsyncadd [#allocation4], 4294967264 }
 0xd7e   :  { %4004 = vsyncpa [#allocation3], 1 }
 0xd7f   :  { %4005 = vsyncpa [#allocation6], 1 }
 0xd80   :  { %4006 = vsyncpa [#allocation9], 1 }
 0xd81   :  { %4007 = vsyncpa [#allocation12], 1 }
 0xd82   :  { %4008 = vsyncpa [#allocation15], 1 }
 0xd83   :  { %4009 = vsyncpa [#allocation4], 1 }

</bundles_post_ra>
